<compile_context>
chip_gen: v6e
topology: v6e:2x2x1
jax: 0.10.0
libtpu: 0.0.40
codegen_flags: <defaults>
</compile_context>

<pallas_src>
import functools
import numpy as np
import jax
import jax.numpy as jnp
from jax.experimental import pallas as pl
from jax.experimental.pallas import tpu as pltpu

PACK = 128  # lane-dense packed output width


def ppo_evaluate_kernel(
    # batch-tiled inputs
    x_ref, action_ref,
    # fused weights (block-diagonal / concatenated, see prepare_params)
    w12_ref, b1_ref, w2_ref, b2_ref, wh1_ref, bh1_ref, wh2_ref, bh2_ref,
    # packed output: lanes [0:A]=probs, [A]=logp, [A+1]=value, [A+2]=entropy
    out_ref,
    *, action_dim,
):
    f32, bf16 = jnp.float32, jnp.bfloat16

    x = x_ref[...].astype(bf16)                                   # (tile, S+L)

    # fused state||latent encoders (block-diagonal => math identical to split)
    h = jnp.maximum(
        jnp.dot(x, w12_ref[...], preferred_element_type=f32) + b1_ref[...], 0.0)
    enc = jnp.maximum(
        jnp.dot(h.astype(bf16), w2_ref[...], preferred_element_type=f32)
        + b2_ref[...], 0.0)                                       # (tile, 384)

    # fused actor||critic first head layer (concat along N: 256 + 256 = 512)
    head = jnp.maximum(
        jnp.dot(enc.astype(bf16), wh1_ref[...], preferred_element_type=f32)
        + bh1_ref[...], 0.0)                                      # (tile, 512)

    # fused, lane-padded second head layer -> lanes [0:A]=logits, [A]=value
    out2 = (jnp.dot(head.astype(bf16), wh2_ref[...], preferred_element_type=f32)
            + bh2_ref[...])                                       # (tile, 128)

    A = action_dim
    tile, pack = out2.shape
    col = jax.lax.broadcasted_iota(jnp.int32, (tile, pack), 1)
    is_logit = col < A

    # numerically stable softmax / log-softmax over the real logit lanes only
    logits = jnp.where(is_logit, out2, -1e30)
    m = jnp.max(logits, axis=-1, keepdims=True)
    z = logits - m
    e = jnp.exp(z)                       # padded lanes underflow to exactly 0
    denom = jnp.sum(e, axis=-1, keepdims=True)
    probs = e / denom                    # exact reciprocal: probs sum to 1
    log_probs = z - jnp.log(denom)

    # Categorical.log_prob(action) via one-hot select
    act = action_ref[...]                                          # (tile, 1)
    onehot = (col == act).astype(f32)
    logp = jnp.sum(onehot * log_probs, axis=-1, keepdims=True)

    # Categorical.entropy() (padded lanes: 0 * -1e30 == 0, no NaN)
    ent = -jnp.sum(probs * log_probs, axis=-1, keepdims=True)

    value = out2[:, A:A + 1]

    # build the packed slab with lane selects; single unmasked 128-lane store
    out = jnp.where(is_logit, probs, 0.0)
    out = jnp.where(col == A, logp, out)
    out = jnp.where(col == A + 1, value, out)
    out = jnp.where(col == A + 2, ent, out)
    out_ref[...] = out


def init_params(key, state_dim, latent_dim, action_dim):
    """PyTorch-style uniform(-1/sqrt(fan_in), 1/sqrt(fan_in)) init, weights (in, out)."""
    def linear(key, fan_in, fan_out):
        kw, kb = jax.random.split(key)
        bound = 1.0 / np.sqrt(fan_in)
        w = jax.random.uniform(kw, (fan_in, fan_out), jnp.float32, -bound, bound)
        b = jax.random.uniform(kb, (1, fan_out), jnp.float32, -bound, bound)
        return w, b

    keys = jax.random.split(key, 8)
    p = {}
    p["w1s"], p["b1s"] = linear(keys[0], state_dim, 256)
    p["w2s"], p["b2s"] = linear(keys[1], 256, 256)
    p["w1l"], p["b1l"] = linear(keys[2], latent_dim, 128)
    p["w2l"], p["b2l"] = linear(keys[3], 128, 128)
    p["wa1"], p["ba1"] = linear(keys[4], 256 + 128, 256)
    p["wa2"], p["ba2"] = linear(keys[5], 256, action_dim)
    p["wc1"], p["bc1"] = linear(keys[6], 256 + 128, 256)
    p["wc2"], p["bc2"] = linear(keys[7], 256, 1)
    return p


def prepare_params(p, state_dim, latent_dim, action_dim):
    """One-time host-side prep: block-diagonal encoder fusion, actor/critic head
    fusion, lane-padded final layer; weight matrices bf16, biases f32."""
    bf16 = jnp.bfloat16
    assert action_dim + 3 <= PACK, "packed output layout needs action_dim + 3 <= 128"
    K_in = state_dim + latent_dim

    # encoder layer 1: blockdiag(w1s (S,256), w1l (L,128)) -> (S+L, 384)
    w12 = jnp.zeros((K_in, 384), jnp.float32)
    w12 = w12.at[:state_dim, :256].set(p["w1s"])
    w12 = w12.at[state_dim:, 256:].set(p["w1l"])
    b1 = jnp.concatenate([p["b1s"], p["b1l"]], axis=1)              # (1, 384)

    # encoder layer 2: blockdiag(w2s (256,256), w2l (128,128)) -> (384, 384)
    w2 = jnp.zeros((384, 384), jnp.float32)
    w2 = w2.at[:256, :256].set(p["w2s"])
    w2 = w2.at[256:, 256:].set(p["w2l"])
    b2 = jnp.concatenate([p["b2s"], p["b2l"]], axis=1)              # (1, 384)

    # head layer 1: [wa1 || wc1] along N -> (384, 512)
    wh1 = jnp.concatenate([p["wa1"], p["wc1"]], axis=1)
    bh1 = jnp.concatenate([p["ba1"], p["bc1"]], axis=1)             # (1, 512)

    # head layer 2: block-diag, padded to 128 out lanes -> [logits | value | 0]
    wh2 = jnp.zeros((512, PACK), jnp.float32)
    wh2 = wh2.at[:256, :action_dim].set(p["wa2"])
    wh2 = wh2.at[256:, action_dim].set(p["wc2"][:, 0])
    bh2 = jnp.zeros((1, PACK), jnp.float32)
    bh2 = bh2.at[:, :action_dim].set(p["ba2"][0])
    bh2 = bh2.at[:, action_dim].set(p["bc2"][0, 0])

    return {
        "w12": w12.astype(bf16), "b1": b1,
        "w2": w2.astype(bf16), "b2": b2,
        "wh1": wh1.astype(bf16), "bh1": bh1,
        "wh2": wh2.astype(bf16), "bh2": bh2,
    }


@functools.partial(jax.jit, static_argnames=("action_dim", "batch_tile"))
def ppo_evaluate(state, latent, action, kparams, *, action_dim, batch_tile=512):
    B = state.shape[0]
    tile = min(batch_tile, B)
    assert B % tile == 0, "batch must be divisible by the batch tile"
    grid = (B // tile,)

    # un-padded inputs, fused to one (B, S+L) array (feature dims << 128 is fine
    # because the block's last dim equals the full array dim)
    x = jnp.concatenate([state.astype(jnp.float32),
                         latent.astype(jnp.float32)], axis=-1)
    K_in = x.shape[1]
    action2d = action.reshape(B, 1).astype(jnp.int32)

    def batched(nfeat):
        return pl.BlockSpec((tile, nfeat), lambda i: (i, 0))

    def replicated(shape):
        return pl.BlockSpec(shape, lambda i: (0, 0))

    weight_order = ["w12", "b1", "w2", "b2", "wh1", "bh1", "wh2", "bh2"]
    weight_args = [kparams[k] for k in weight_order]

    in_specs = ([batched(K_in), batched(1)]
                + [replicated(kparams[k].shape) for k in weight_order])
    out_specs = batched(PACK)
    out_shape = jax.ShapeDtypeStruct((B, PACK), jnp.float32)

    kernel = functools.partial(ppo_evaluate_kernel, action_dim=action_dim)

    packed = pl.pallas_call(
        kernel,
        grid=grid,
        in_specs=in_specs,
        out_specs=out_specs,
        out_shape=out_shape,
        compiler_params=pltpu.CompilerParams(
            dimension_semantics=("parallel",),
            vmem_limit_bytes=32 * 1024 * 1024),
    )(x, action2d, *weight_args)

    probs = packed[:, :action_dim]
    logp = packed[:, action_dim]
    value = packed[:, action_dim + 1]
    ent = packed[:, action_dim + 2]
    # matches PyTorch evaluate() return convention (dist -> probs)
    return logp, value, ent, probs


def ppo_evaluate_reference(state, latent, action, params):
    """Pure-JAX reference mirroring the PyTorch module (same bf16 cast points)."""
    f32, bf16 = jnp.float32, jnp.bfloat16
    mm = lambda x, w: jnp.dot(x.astype(bf16), w.astype(bf16),
                              preferred_element_type=f32)
    relu = lambda x: jnp.maximum(x, 0.0)
    s = relu(mm(relu(mm(state, params["w1s"]) + params["b1s"]),
                params["w2s"]) + params["b2s"])
    l = relu(mm(relu(mm(latent, params["w1l"]) + params["b1l"]),
                params["w2l"]) + params["b2l"])
    comb = jnp.concatenate([s, l], axis=-1)
    logits = mm(relu(mm(comb, params["wa1"]) + params["ba1"]),
                params["wa2"]) + params["ba2"]
    probs = jax.nn.softmax(logits, axis=-1)
    logp_all = jax.nn.log_softmax(logits, axis=-1)
    logp = jnp.take_along_axis(logp_all, action[:, None].astype(jnp.int32),
                               axis=-1)[:, 0]
    ent = -jnp.sum(probs * logp_all, axis=-1)
    value = (mm(relu(mm(comb, params["wc1"]) + params["bc1"]),
                params["wc2"]) + params["bc2"])[:, 0]
    return logp, value, ent, probs


if __name__ == "__main__":
    state_dim, latent_dim, action_dim = 16, 8, 8
    B = 512  # tile=128 -> grid of 4 (>= 2 steps per v7x core, pipelined DMA)

    key = jax.random.PRNGKey(0)
    kp, ks, kl, ka = jax.random.split(key, 4)
    params = init_params(kp, state_dim, latent_dim, action_dim)
    kparams = prepare_params(params, state_dim, latent_dim, action_dim)

    state = jax.random.normal(ks, (B, state_dim), jnp.float32)
    latent = jax.random.normal(kl, (B, latent_dim), jnp.float32)
    action = jax.random.randint(ka, (B,), 0, action_dim, jnp.int32)

    logp, value, ent, probs = ppo_evaluate(state, latent, action, kparams,
                                           action_dim=action_dim,
                                           batch_tile=128)
    jax.block_until_ready((logp, value, ent, probs))

    r_logp, r_value, r_ent, r_probs = ppo_evaluate_reference(
        state, latent, action, params)
    # bf16 weights -> tolerances loosened accordingly
    assert np.allclose(np.asarray(probs), np.asarray(r_probs), atol=5e-3)
    assert np.allclose(np.asarray(logp), np.asarray(r_logp), atol=1e-2)
    assert np.allclose(np.asarray(value), np.asarray(r_value), atol=1e-2)
    assert np.allclose(np.asarray(ent), np.asarray(r_ent), atol=5e-2)

    print("KERNEL_OK")
</pallas_src>

<mosaic_0001>
module attributes {stable_mosaic.version = 11 : i64} {
  func.func @ppo_evaluate_kernel(%arg0: i32, %arg1: memref<128x24xf32, #tpu.memory_space<vmem>>, %arg2: memref<128x1xi32, #tpu.memory_space<vmem>>, %arg3: memref<24x384xbf16, #tpu.memory_space<vmem>>, %arg4: memref<1x384xf32, #tpu.memory_space<vmem>>, %arg5: memref<384x384xbf16, #tpu.memory_space<vmem>>, %arg6: memref<1x384xf32, #tpu.memory_space<vmem>>, %arg7: memref<384x512xbf16, #tpu.memory_space<vmem>>, %arg8: memref<1x512xf32, #tpu.memory_space<vmem>>, %arg9: memref<512x128xbf16, #tpu.memory_space<vmem>>, %arg10: memref<1x128xf32, #tpu.memory_space<vmem>>, %arg11: memref<128x128xf32, #tpu.memory_space<vmem>>) attributes {dimension_semantics = [#tpu.dimension_semantics<parallel>], iteration_bounds = array<i64: 4>, scalar_prefetch = 0 : i64, scratch_operands = 0 : i64, tpu.core_type = #tpu.core_type<tc>, window_params = [{transform_indices = @transform_0, window_bounds = array<i64: 128, 24>}, {transform_indices = @transform_1, window_bounds = array<i64: 128, 1>}, {pipeline_mode = #tpu.pipeline_mode<synchronous>, transform_indices = @transform_2, window_bounds = array<i64: 24, 384>}, {pipeline_mode = #tpu.pipeline_mode<synchronous>, transform_indices = @transform_3, window_bounds = array<i64: 1, 384>}, {pipeline_mode = #tpu.pipeline_mode<synchronous>, transform_indices = @transform_4, window_bounds = array<i64: 384, 384>}, {pipeline_mode = #tpu.pipeline_mode<synchronous>, transform_indices = @transform_5, window_bounds = array<i64: 1, 384>}, {pipeline_mode = #tpu.pipeline_mode<synchronous>, transform_indices = @transform_6, window_bounds = array<i64: 384, 512>}, {pipeline_mode = #tpu.pipeline_mode<synchronous>, transform_indices = @transform_7, window_bounds = array<i64: 1, 512>}, {pipeline_mode = #tpu.pipeline_mode<synchronous>, transform_indices = @transform_8, window_bounds = array<i64: 512, 128>}, {pipeline_mode = #tpu.pipeline_mode<synchronous>, transform_indices = @transform_9, window_bounds = array<i64: 1, 128>}, {transform_indices = @transform_10, window_bounds = array<i64: 128, 128>}]} {
    %c0 = arith.constant 0 : index
    %c0_0 = arith.constant 0 : index
    %0 = vector.load %arg1[%c0, %c0_0] : memref<128x24xf32, #tpu.memory_space<vmem>>, vector<128x24xf32>
    %1 = arith.truncf %0 : vector<128x24xf32> to vector<128x24xbf16>
    %c0_1 = arith.constant 0 : index
    %c0_2 = arith.constant 0 : index
    %2 = vector.load %arg3[%c0_1, %c0_2] : memref<24x384xbf16, #tpu.memory_space<vmem>>, vector<24x384xbf16>
    %cst = arith.constant dense<0.000000e+00> : vector<128x384xf32>
    %3 = tpu.matmul %1, %2, %cst {dimension_numbers = #tpu.dot_dimension_numbers<[1], [0], [0], [1], [0, 0, 1, 1], [], []>} : vector<128x24xbf16>, vector<24x384xbf16>, vector<128x384xf32> -> vector<128x384xf32>
    %c0_3 = arith.constant 0 : index
    %c0_4 = arith.constant 0 : index
    %4 = vector.load %arg4[%c0_3, %c0_4] : memref<1x384xf32, #tpu.memory_space<vmem>>, vector<1x384xf32>
    %5 = vector.broadcast %4 : vector<1x384xf32> to vector<128x384xf32>
    %6 = arith.addf %3, %5 : vector<128x384xf32>
    %cst_5 = arith.constant 0.000000e+00 : f32
    %7 = vector.broadcast %cst_5 : f32 to vector<128x384xf32>
    %8 = arith.maximumf %6, %7 : vector<128x384xf32>
    %9 = arith.truncf %8 : vector<128x384xf32> to vector<128x384xbf16>
    %c0_6 = arith.constant 0 : index
    %c0_7 = arith.constant 0 : index
    %10 = vector.load %arg5[%c0_6, %c0_7] : memref<384x384xbf16, #tpu.memory_space<vmem>>, vector<384x384xbf16>
    %cst_8 = arith.constant dense<0.000000e+00> : vector<128x384xf32>
    %11 = tpu.matmul %9, %10, %cst_8 {dimension_numbers = #tpu.dot_dimension_numbers<[1], [0], [0], [1], [0, 0, 1, 1], [], []>} : vector<128x384xbf16>, vector<384x384xbf16>, vector<128x384xf32> -> vector<128x384xf32>
    %c0_9 = arith.constant 0 : index
    %c0_10 = arith.constant 0 : index
    %12 = vector.load %arg6[%c0_9, %c0_10] : memref<1x384xf32, #tpu.memory_space<vmem>>, vector<1x384xf32>
    %13 = vector.broadcast %12 : vector<1x384xf32> to vector<128x384xf32>
    %14 = arith.addf %11, %13 : vector<128x384xf32>
    %cst_11 = arith.constant 0.000000e+00 : f32
    %15 = vector.broadcast %cst_11 : f32 to vector<128x384xf32>
    %16 = arith.maximumf %14, %15 : vector<128x384xf32>
    %17 = arith.truncf %16 : vector<128x384xf32> to vector<128x384xbf16>
    %c0_12 = arith.constant 0 : index
    %c0_13 = arith.constant 0 : index
    %18 = vector.load %arg7[%c0_12, %c0_13] : memref<384x512xbf16, #tpu.memory_space<vmem>>, vector<384x512xbf16>
    %cst_14 = arith.constant dense<0.000000e+00> : vector<128x512xf32>
    %19 = tpu.matmul %17, %18, %cst_14 {dimension_numbers = #tpu.dot_dimension_numbers<[1], [0], [0], [1], [0, 0, 1, 1], [], []>} : vector<128x384xbf16>, vector<384x512xbf16>, vector<128x512xf32> -> vector<128x512xf32>
    %c0_15 = arith.constant 0 : index
    %c0_16 = arith.constant 0 : index
    %20 = vector.load %arg8[%c0_15, %c0_16] : memref<1x512xf32, #tpu.memory_space<vmem>>, vector<1x512xf32>
    %21 = vector.broadcast %20 : vector<1x512xf32> to vector<128x512xf32>
    %22 = arith.addf %19, %21 : vector<128x512xf32>
    %cst_17 = arith.constant 0.000000e+00 : f32
    %23 = vector.broadcast %cst_17 : f32 to vector<128x512xf32>
    %24 = arith.maximumf %22, %23 : vector<128x512xf32>
    %25 = arith.truncf %24 : vector<128x512xf32> to vector<128x512xbf16>
    %c0_18 = arith.constant 0 : index
    %c0_19 = arith.constant 0 : index
    %26 = vector.load %arg9[%c0_18, %c0_19] : memref<512x128xbf16, #tpu.memory_space<vmem>>, vector<512x128xbf16>
    %cst_20 = arith.constant dense<0.000000e+00> : vector<128x128xf32>
    %27 = tpu.matmul %25, %26, %cst_20 {dimension_numbers = #tpu.dot_dimension_numbers<[1], [0], [0], [1], [0, 0, 1, 1], [], []>} : vector<128x512xbf16>, vector<512x128xbf16>, vector<128x128xf32> -> vector<128x128xf32>
    %c0_21 = arith.constant 0 : index
    %c0_22 = arith.constant 0 : index
    %28 = vector.load %arg10[%c0_21, %c0_22] : memref<1x128xf32, #tpu.memory_space<vmem>>, vector<1x128xf32>
    %29 = vector.broadcast %28 : vector<1x128xf32> to vector<128x128xf32>
    %30 = arith.addf %27, %29 : vector<128x128xf32>
    %31 = tpu.iota {dimensions = array<i32: 1>} : vector<128x128xi32>
    %c8_i32 = arith.constant 8 : i32
    %32 = vector.broadcast %c8_i32 : i32 to vector<128x128xi32>
    %33 = arith.cmpi slt, %31, %32 : vector<128x128xi32>
    %cst_23 = arith.constant -1.000000e+30 : f32
    %34 = vector.broadcast %cst_23 : f32 to vector<128x128xf32>
    %35 = arith.select %33, %30, %34 : vector<128x128xi1>, vector<128x128xf32>
    %cst_24 = arith.constant dense<0xFF800000> : vector<128xf32>
    %36 = vector.multi_reduction <maximumf>, %35, %cst_24 [1] : vector<128x128xf32> to vector<128xf32>
    %37 = vector.shape_cast %36 : vector<128xf32> to vector<128x1xf32>
    %38 = vector.broadcast %37 : vector<128x1xf32> to vector<128x128xf32>
    %39 = arith.subf %35, %38 : vector<128x128xf32>
    %40 = math.exp %39 : vector<128x128xf32>
    %cst_25 = arith.constant dense<0.000000e+00> : vector<128xf32>
    %41 = vector.multi_reduction <add>, %40, %cst_25 [1] : vector<128x128xf32> to vector<128xf32>
    %42 = vector.shape_cast %41 : vector<128xf32> to vector<128x1xf32>
    %43 = vector.broadcast %42 : vector<128x1xf32> to vector<128x128xf32>
    %44 = arith.divf %40, %43 : vector<128x128xf32>
    %45 = math.log %42 : vector<128x1xf32>
    %46 = vector.broadcast %45 : vector<128x1xf32> to vector<128x128xf32>
    %47 = arith.subf %39, %46 : vector<128x128xf32>
    %c0_26 = arith.constant 0 : index
    %c0_27 = arith.constant 0 : index
    %48 = vector.load %arg2[%c0_26, %c0_27] : memref<128x1xi32, #tpu.memory_space<vmem>>, vector<128x1xi32>
    %49 = vector.broadcast %48 : vector<128x1xi32> to vector<128x128xi32>
    %50 = arith.cmpi eq, %31, %49 : vector<128x128xi32>
    %51 = arith.extui %50 : vector<128x128xi1> to vector<128x128xi32>
    %52 = arith.sitofp %51 : vector<128x128xi32> to vector<128x128xf32>
    %53 = arith.mulf %52, %47 : vector<128x128xf32>
    %cst_28 = arith.constant dense<0.000000e+00> : vector<128xf32>
    %54 = vector.multi_reduction <add>, %53, %cst_28 [1] : vector<128x128xf32> to vector<128xf32>
    %55 = vector.shape_cast %54 : vector<128xf32> to vector<128x1xf32>
    %56 = arith.mulf %44, %47 : vector<128x128xf32>
    %cst_29 = arith.constant dense<0.000000e+00> : vector<128xf32>
    %57 = vector.multi_reduction <add>, %56, %cst_29 [1] : vector<128x128xf32> to vector<128xf32>
    %58 = vector.shape_cast %57 : vector<128xf32> to vector<128x1xf32>
    %cst_30 = arith.constant 0.000000e+00 : f32
    %59 = vector.broadcast %cst_30 : f32 to vector<128x1xf32>
    %60 = arith.subf %59, %58 : vector<128x1xf32>
    %61 = vector.extract_strided_slice %30 {offsets = [0, 8], sizes = [128, 1], strides = [1, 1]} : vector<128x128xf32> to vector<128x1xf32>
    %cst_31 = arith.constant 0.000000e+00 : f32
    %62 = vector.broadcast %cst_31 : f32 to vector<128x128xf32>
    %63 = arith.select %33, %44, %62 : vector<128x128xi1>, vector<128x128xf32>
    %c8_i32_32 = arith.constant 8 : i32
    %64 = vector.broadcast %c8_i32_32 : i32 to vector<128x128xi32>
    %65 = arith.cmpi eq, %31, %64 : vector<128x128xi32>
    %66 = vector.shape_cast %55 : vector<128x1xf32> to vector<128x1xf32>
    %67 = vector.broadcast %66 : vector<128x1xf32> to vector<128x128xf32>
    %68 = arith.select %65, %67, %63 : vector<128x128xi1>, vector<128x128xf32>
    %c9_i32 = arith.constant 9 : i32
    %69 = vector.broadcast %c9_i32 : i32 to vector<128x128xi32>
    %70 = arith.cmpi eq, %31, %69 : vector<128x128xi32>
    %71 = vector.shape_cast %61 : vector<128x1xf32> to vector<128x1xf32>
    %72 = vector.broadcast %71 : vector<128x1xf32> to vector<128x128xf32>
    %73 = arith.select %70, %72, %68 : vector<128x128xi1>, vector<128x128xf32>
    %c10_i32 = arith.constant 10 : i32
    %74 = vector.broadcast %c10_i32 : i32 to vector<128x128xi32>
    %75 = arith.cmpi eq, %31, %74 : vector<128x128xi32>
    %76 = vector.shape_cast %60 : vector<128x1xf32> to vector<128x1xf32>
    %77 = vector.broadcast %76 : vector<128x1xf32> to vector<128x128xf32>
    %78 = arith.select %75, %77, %73 : vector<128x128xi1>, vector<128x128xf32>
    %c0_33 = arith.constant 0 : index
    %c0_34 = arith.constant 0 : index
    %79 = vector.load %arg11[%c0_33, %c0_34] : memref<128x128xf32, #tpu.memory_space<vmem>>, vector<128x128xf32>
    tpu.vector_store %arg11[%c0_33, %c0_34], %78 {strides = array<i32>} : memref<128x128xf32, #tpu.memory_space<vmem>>, vector<128x128xf32>,
    return
  }
  func.func @transform_0(%arg0: i32) -> (i32, i32) {
    %c0_i32 = arith.constant 0 : i32
    %c0_i32_0 = arith.constant 0 : i32
    return %arg0, %c0_i32 : i32, i32
  }
  func.func @transform_1(%arg0: i32) -> (i32, i32) {
    %c0_i32 = arith.constant 0 : i32
    %c0_i32_0 = arith.constant 0 : i32
    return %arg0, %c0_i32 : i32, i32
  }
  func.func @transform_2(%arg0: i32) -> (i32, i32) {
    %c0_i32 = arith.constant 0 : i32
    %c0_i32_0 = arith.constant 0 : i32
    %c0_i32_1 = arith.constant 0 : i32
    return %c0_i32, %c0_i32_0 : i32, i32
  }
  func.func @transform_3(%arg0: i32) -> (i32, i32) {
    %c0_i32 = arith.constant 0 : i32
    %c0_i32_0 = arith.constant 0 : i32
    %c0_i32_1 = arith.constant 0 : i32
    return %c0_i32, %c0_i32_0 : i32, i32
  }
  func.func @transform_4(%arg0: i32) -> (i32, i32) {
    %c0_i32 = arith.constant 0 : i32
    %c0_i32_0 = arith.constant 0 : i32
    %c0_i32_1 = arith.constant 0 : i32
    return %c0_i32, %c0_i32_0 : i32, i32
  }
  func.func @transform_5(%arg0: i32) -> (i32, i32) {
    %c0_i32 = arith.constant 0 : i32
    %c0_i32_0 = arith.constant 0 : i32
    %c0_i32_1 = arith.constant 0 : i32
    return %c0_i32, %c0_i32_0 : i32, i32
  }
  func.func @transform_6(%arg0: i32) -> (i32, i32) {
    %c0_i32 = arith.constant 0 : i32
    %c0_i32_0 = arith.constant 0 : i32
    %c0_i32_1 = arith.constant 0 : i32
    return %c0_i32, %c0_i32_0 : i32, i32
  }
  func.func @transform_7(%arg0: i32) -> (i32, i32) {
    %c0_i32 = arith.constant 0 : i32
    %c0_i32_0 = arith.constant 0 : i32
    %c0_i32_1 = arith.constant 0 : i32
    return %c0_i32, %c0_i32_0 : i32, i32
  }
  func.func @transform_8(%arg0: i32) -> (i32, i32) {
    %c0_i32 = arith.constant 0 : i32
    %c0_i32_0 = arith.constant 0 : i32
    %c0_i32_1 = arith.constant 0 : i32
    return %c0_i32, %c0_i32_0 : i32, i32
  }
  func.func @transform_9(%arg0: i32) -> (i32, i32) {
    %c0_i32 = arith.constant 0 : i32
    %c0_i32_0 = arith.constant 0 : i32
    %c0_i32_1 = arith.constant 0 : i32
    return %c0_i32, %c0_i32_0 : i32, i32
  }
  func.func @transform_10(%arg0: i32) -> (i32, i32) {
    %c0_i32 = arith.constant 0 : i32
    %c0_i32_0 = arith.constant 0 : i32
    return %arg0, %c0_i32 : i32, i32
  }
}

</mosaic_0001>

<bundles_post_ra>
// kernel: ppo_evaluate.1
= control target key start
LH: loop header
LB: loop body
LE: loop exit
PB: predicated region body
PF: predicated region fallthrough
CT: control target
= control target key end

     0   :  { %15 = vsyncpa [#allocation3], 0  ;;  %s5087_s13 = smov 0   ;;  %s6852_s0 = inlined_call_operand.vmem [shape: f32[512,24], index: 0, kind: input, shape index: {}]   ;;  %s6853_s1 = inlined_call_operand.vmem [shape: s32[512,1], index: 1, kind: input, shape index: {}]   ;;  %s6854_s2 = inlined_call_operand.vmem [shape: bf16[24,384], index: 2, kind: input, shape index: {}]   ;;  %s6855_s3 = inlined_call_operand.vmem [shape: f32[1,384], index: 3, kind: input, shape index: {}]   ;;  %s6856_s4 = inlined_call_operand.hbm [shape: bf16[384,384], index: 4, kind: input, shape index: {}]   ;;  %s6857_s5 = inlined_call_operand.vmem [shape: f32[1,384], index: 5, kind: input, shape index: {}]   ;;  %s6858_s6 = inlined_call_operand.vmem [shape: bf16[384,512], index: 6, kind: input, shape index: {}]   ;;  %s6859_s7 = inlined_call_operand.vmem [shape: f32[1,512], index: 7, kind: input, shape index: {}]   ;;  %s6860_s8 = inlined_call_operand.vmem [shape: bf16[512,128], index: 8, kind: input, shape index: {}]   ;;  %s6861_s9 = inlined_call_operand.vmem [shape: f32[1,128], index: 9, kind: input, shape index: {}]   ;;  %s6862_s10 = inlined_call_operand.vmem [shape: f32[512,128], index: 10, kind: output, shape index: {}]  }
   0x1 LB: > { %s4059_s14 = sadd.s32 4294967295, %s5024_s13   ;;  %p4061_p0 = scmp.ge.s32.totalorder %s5024_s13, 1  ;;  %s5024_s13 = sphi %s5087_s13, %s21_s13  }
   0x2   : > { %p272_p1 = scmp.lt.s32.totalorder %s5024_s13, 5  ;;  %s5026_s15 = smov [#allocation2]  }
   0x3   : > { %s290_s16 = sshll.u32 %s5026_s15, 4  ;;  %p5099_p3 = scmp.eq.s32.totalorder %s4059_s14, 0  ;;  %s291_s16 = int_to_ptr.vmem [resolvable:$true] %s290_s16 }
   0x4   : > { %p5095_p2 = pnand %p4061_p0, %p272_p1  ;;  %s4999_s19 = scalar_lea.vmem %s291_s16, 9216 }
   0x5   : > { %p5000_p7 = scmp.ne.s32.totalorder %s291_s16, %s4999_s19  ;;  %p5007_p10 = scmp.lt.s32.totalorder %s291_s16, %s291_s16 }
   0x6   : > { %p4589_p4 = pneg %p5095_p2  ;;  %p5008_p11 = scmp.lt.s32.totalorder %s4999_s19, %s4999_s19 }
   0x8   : > { %p4590_p5 = pnand %p5099_p3, %p4589_p4  ;;  %p5009_p12 = por %p5008_p11, %p5007_p10 }
   0xa   : > { %p4990_p6 = pneg %p4590_p5 }
   0xc   : > { %p5002_p8 = pnand %p5000_p7, %p4990_p6 }
   0xe   : > { %p5003_p9 = pneg %p5002_p8 }
  0x10   : > { %p5010_p13 = pnand %p5009_p12, %p5003_p9 }
  0x12   : > { %5013 = shalt.err (!%p5010_p13)
}
  0x13   : > { %s5027_s20 = smov 192   ;;  %s5028_s21 = smov 12  }
  0x14   : > { %4592 = dma.hbm_to_vmem [thread:$0]  (!%p4590_p5), %s6856_s4, 9216, %s291_s16, [#allocation3], %s5027_s20, %s5027_s20, %s5028_s21  }
  0x15   : > { %339 = sbr.rel (%p5095_p2) target bundleno = 1692 (0x69c), region = 60 }
  0x1a   : > { %5019 = dma.done.wait (%p5099_p3), [#allocation3], 9216  }
  0x1b   : > { %5021 = vsyncadd (%p5099_p3), [#allocation3], 4294958080  ;;  %s4066_s24 = sshll.u32 %s4059_s14, 4  ;;  %v5029_v0 = vmov 0   ;;  %vm497_vm0 = vcmask 1043456   ;;  %v429_v1 = vld [vmem:[%s6854_s2 + $0x18] sm:$0xff] }
  0x1c   : > { %539 = vmatprep.mubr.bf16.mxu0 %v5029_v0  ;;  %p383_p0 = scmp.lt.s32.totalorder %s4066_s24, 63  ;;  %4610 = vset.pattern.permute.xlu1 %v5029_v0  ;;  %v4614_v2 = vld [vmem:[%s6854_s2 + $0x20] ss:$0 sps:$4 sm:$0xff]   ;;  %v4076_v3 = vcombine.high %v429_v1, %v429_v1  ;;  %v4075_v4 = vcombine.low %v429_v1, %v429_v1  ;;  %v4616_v5 = vld [vmem:[%s6854_s2 + $0x4] ss:$12 sps:$4 sm:$0xff]   ;;  %vm472_vm1 = vcmask 195584  }
  0x1d   : > { %4609 = vset.pattern.permute.xlu0 %v5029_v0  ;;  %4584 = vmatprep.subr.msk.bf16.mxu1 %vm497_vm0, %v4614_v2  ;;  %v505_v6 = vsel %vm497_vm0, %v4614_v2, 0  ;;  %v4618_v9 = vld [vmem:[%s6854_s2 + $0x8] ss:$12 sps:$4 sm:$0xff]   ;;  %v4619_v10 = vld [vmem:[%s6854_s2] ss:$12 sps:$4 sm:$0xff]  }
  0x1e   : > { %s6896_s24 = smov (!%p383_p0, %s4066_s24), 63  ;;  %4078 = vmatprep.subr.msk.bf16.mxu0 %vm497_vm0, %v4076_v3  ;;  %v499_v8 = vsel %vm497_vm0, %v4075_v4, 0  ;;  %4533 = vmatpush3.bf16.msra.mxu1 %v505_v6  ;;  %v4620_v20 = vld [vmem:[#allocation2 + $0xa8] ss:$12 sps:$4 sm:$0xff]   ;;  %v4622_v21 = vld [vmem:[#allocation2 + $0xac] ss:$12 sps:$4 sm:$0xff]  }
  0x1f   : > { %s5119_s25 = sshll.u32 %s6896_s24, 3  ;;  %520 = vmatpush1.bf16.msra.mxu0 %v499_v8  ;;  %4534 = vmatprep.subr.bf16.mxu1 %v4618_v9  ;;  %v4625_v23 = vld [vmem:[#allocation2 + $0x94] ss:$12 sps:$4 sm:$0xff]   ;;  %v4623_v26 = vld [vmem:[#allocation2 + $0x90] ss:$12 sps:$4 sm:$0xff]  }
  0x20   : > { %s5125_s28 = scalar_lea.vmem %s6852_s0, %s5119_s25  ;;  %521 = vmatprep.subr.bf16.mxu0 %v4616_v5  ;;  %v4628_v28 = vld [vmem:[#allocation2 + $0x7c] ss:$12 sps:$4 sm:$0xff]   ;;  %v4626_v32 = vld [vmem:[#allocation2 + $0x78] ss:$12 sps:$4 sm:$0xff]   ;;  %v4629_v38 = vld [vmem:[#allocation2 + $0x60] ss:$12 sps:$4 sm:$0xff]   ;;  %s5981_s14 = scalar_lea.vmem %s6853_s1, %s5119_s25 }
  0x21   : > { %v401_v7 = vld [vmem:[%s5125_s28] sm:$0xff]  ;;  %v402_v11 = vld [vmem:[%s5125_s28 + $0x8] sm:$0xff]  ;;  %v403_v13 = vld [vmem:[%s5125_s28 + $0x10] sm:$0xff]  ;;  %s6644_s19 = scalar_lea.vmem %s6862_s10, %s5119_s25 }
  0x22   : > { %v417_v12 = vpack.c.bf16 %v402_v11, %v401_v7  ;;  %v404_v14 = vld [vmem:[%s5125_s28 + $0x18] sm:$0xff]  ;;  %v405_v15 = vld [vmem:[%s5125_s28 + $0x20] sm:$0xff]  ;;  %v406_v16 = vld [vmem:[%s5125_s28 + $0x28] sm:$0xff]  ;;  %4535 = vmatpush3.bf16.msra.mxu1 %v4618_v9 }
  0x23   : > { %v418_v17 = vpack.c.bf16 %v404_v14, %v403_v13  ;;  %v419_v18 = vpack.c.bf16 %v406_v16, %v405_v15  ;;  %522 = vmatpush1.bf16.msra.mxu0 %v4619_v10  ;;  %v407_v19 = vld [vmem:[%s5125_s28 + $0x30] sm:$0xff]  ;;  %v408_v22 = vld [vmem:[%s5125_s28 + $0x38] sm:$0xff]  ;;  %v409_v24 = vld [vmem:[%s5125_s28 + $0x40] sm:$0xff] }
  0x24   : > { %4536 = vmatprep.mubr.msk.bf16.mxu1 %vm472_vm1, %v417_v12  ;;  %v410_v25 = vld [vmem:[%s5125_s28 + $0x48] sm:$0xff]  ;;  %1286 = vmatprep.subr.bf16.mxu0 %v4622_v21  ;;  %v420_v27 = vpack.c.bf16 %v408_v22, %v407_v19  ;;  %v411_v30 = vld [vmem:[%s5125_s28 + $0x50] sm:$0xff]  ;;  %v412_v31 = vld [vmem:[%s5125_s28 + $0x58] sm:$0xff]  ;;  %v433_v21 = vlaneseq }
  0x25   : > { %4537 = vmatmul.mubr.msk.bf16.vlgmr.msra.gmra.mxu1 %vm472_vm1, %v418_v17  ;;  %v5157_v29 = vpack.c.bf16 %v410_v25, %v409_v24  ;;  %v413_v33 = vld [vmem:[%s5125_s28 + $0x60] sm:$0xff]  ;;  %v414_v35 = vld [vmem:[%s5125_s28 + $0x68] sm:$0xff]  ;;  %v5168_v39 = vpack.c.bf16 %v412_v31, %v411_v30  ;;  %v4650_v43 = vld [vmem:[#allocation2 + $0x210] ss:$12 sps:$4 sm:$0xff]  }
  0x26   : > { %4079 = vmatmul.mubr.msk.bf16.vlgmr.msra.gmra.mxu0 %vm472_vm1, %v417_v12  ;;  %4540 = vmatprep.mubr.msk.bf16.mxu1 %vm472_vm1, %v419_v18  ;;  %v4631_v34 = vld [vmem:[#allocation2 + $0x64] ss:$12 sps:$4 sm:$0xff]   ;;  %v4644_v36 = vld [vmem:[#allocation2 + $0x228] ss:$12 sps:$4 sm:$0xff]   ;;  %v4646_v37 = vld [vmem:[#allocation2 + $0x22c] ss:$12 sps:$4 sm:$0xff]   ;;  %v5170_v41 = vpack.c.bf16 %v414_v35, %v413_v33 }
  0x27   : > { %549 = vmatprep.mubr.bf16.mxu0 %v5029_v0  ;;  %1287 = vmatpush1.bf16.msra.mxu0 %v4620_v20  ;;  %v4634_v40 = vld [vmem:[#allocation2 + $0x4c] ss:$12 sps:$4 sm:$0xff]   ;;  %v4652_v42 = vld [vmem:[#allocation2 + $0x214] ss:$12 sps:$4 sm:$0xff]   ;;  %v4658_v46 = vld [vmem:[#allocation2 + $0x1fc] ss:$12 sps:$4 sm:$0xff]  }
  0x28   : > { %1288 = vmatprep.subr.bf16.mxu0 %v4625_v23  ;;  %1399 = vmatprep.subr.bf16.mxu1 %v4646_v37  ;;  %v415_v44 = vld [vmem:[%s5125_s28 + $0x70] sm:$0xff]  ;;  %v416_v48 = vld [vmem:[%s5125_s28 + $0x78] sm:$0xff]  ;;  %v4662_v56 = vld [vmem:[#allocation2 + $0x1e0] ss:$12 sps:$4 sm:$0xff]   ;;  %v5195_v22 = vshrl.u32 %v433_v21, 7 }
  0x29   : > { %1400 = vmatpush1.bf16.msra.mxu1 %v4644_v36  ;;  %v4632_v45 = vld [vmem:[#allocation2 + $0x48] ss:$12 sps:$4 sm:$0xff]   ;;  %v4656_v49 = vld [vmem:[#allocation2 + $0x1f8] ss:$12 sps:$4 sm:$0xff]   ;;  %v4635_v50 = vld [vmem:[#allocation2 + $0x30] ss:$12 sps:$4 sm:$0xff]   ;;  %v424_v52 = vpack.c.bf16 %v416_v48, %v415_v44 }
  0x2a   : > { %1401 = vmatprep.subr.bf16.mxu1 %v4652_v42  ;;  %v4637_v47 = vld [vmem:[#allocation2 + $0x34] ss:$12 sps:$4 sm:$0xff]   ;;  %v4664_v51 = vld [vmem:[#allocation2 + $0x1e4] ss:$12 sps:$4 sm:$0xff]   ;;  %v4640_v53 = vld [vmem:[#allocation2 + $0x1c] ss:$12 sps:$4 sm:$0xff]  }
  0x2b   : > { %1289 = vmatpush1.bf16.msra.mxu0 %v4623_v26  ;;  %v4638_v54 = vld [vmem:[#allocation2 + $0x18] ss:$12 sps:$4 sm:$0xff]   ;;  %v4668_v58 = vld [vmem:[#allocation2 + $0x1c8] ss:$12 sps:$4 sm:$0xff]   ;;  %v4641_v59 = vld [vmem:[#allocation2] ss:$12 sps:$4 sm:$0xff]  }
  0x2c   : > { %1290 = vmatprep.subr.bf16.mxu0 %v4628_v28  ;;  %v4643_v55 = vld [vmem:[#allocation2 + $0x4] ss:$12 sps:$4 sm:$0xff]   ;;  %v4670_v57 = vld [vmem:[#allocation2 + $0x1cc] ss:$12 sps:$4 sm:$0xff]   ;;  %v4647_v61 = vld [vmem:[#allocation2 + $0x168] ss:$12 sps:$4 sm:$0xff]  }
  0x2d   : > { %4541 = vmatmul.mubr.msk.bf16.gmra.mxu1 %vm472_vm1, %v420_v27  ;;  %v4649_v60 = vld [vmem:[#allocation2 + $0x16c] ss:$12 sps:$4 sm:$0xff]   ;;  %v4655_v62 = vld [vmem:[#allocation2 + $0x154] ss:$12 sps:$4 sm:$0xff]   ;;  %v4653_v63 = vld [vmem:[#allocation2 + $0x150] ss:$12 sps:$4 sm:$0xff]  }
  0x2e   : > { %4080 = vmatmul.mubr.msk.bf16.gmra.mxu0 %vm472_vm1, %v418_v17  ;;  %4544 = vmatprep.mubr.msk.bf16.mxu1 %vm472_vm1, %v5157_v29  ;;  %v4661_v1 = vld [vmem:[#allocation2 + $0x13c] ss:$12 sps:$4 sm:$0xff]   ;;  %v4659_v2 = vld [vmem:[#allocation2 + $0x138] ss:$12 sps:$4 sm:$0xff]   ;;  %v4665_v4 = vld [vmem:[#allocation2 + $0x120] ss:$12 sps:$4 sm:$0xff]  }
  0x2f   : > { %559 = vmatprep.mubr.bf16.mxu0 %v5029_v0  ;;  %1291 = vmatpush1.bf16.msra.mxu0 %v4626_v32  ;;  %v4667_v3 = vld [vmem:[#allocation2 + $0x124] ss:$12 sps:$4 sm:$0xff]   ;;  %v4673_v5 = vld [vmem:[#allocation2 + $0x10c] ss:$12 sps:$4 sm:$0xff]   ;;  %v4671_v6 = vld [vmem:[#allocation2 + $0x108] ss:$12 sps:$4 sm:$0xff]  }
  0x30   : > { %1292 = vmatprep.subr.bf16.mxu0 %v4631_v34  ;;  %1402 = vmatpush1.bf16.msra.mxu1 %v4650_v43  ;;  %v4676_v7 = vld [vmem:[#allocation2 + $0x1b4] ss:$12 sps:$4 sm:$0xff]   ;;  %v4674_v8 = vld [vmem:[#allocation2 + $0x1b0] ss:$12 sps:$4 sm:$0xff]   ;;  %v4680_v12 = vld [vmem:[#allocation2 + $0x198] ss:$12 sps:$4 sm:$0xff]  }
  0x31   : > { %1403 = vmatprep.subr.bf16.mxu1 %v4658_v46  ;;  %v4679_v9 = vld [vmem:[#allocation2 + $0xf4] ss:$12 sps:$4 sm:$0xff]   ;;  %v4677_v10 = vld [vmem:[#allocation2 + $0xf0] ss:$12 sps:$4 sm:$0xff]   ;;  %v4683_v14 = vld [vmem:[#allocation2 + $0xd8] ss:$12 sps:$4 sm:$0xff]  }
  0x32   : > { %v4682_v11 = vld [vmem:[#allocation2 + $0x19c] ss:$12 sps:$4 sm:$0xff]   ;;  %v4688_v15 = vld [vmem:[#allocation2 + $0x184] ss:$12 sps:$4 sm:$0xff]   ;;  %v4686_v16 = vld [vmem:[#allocation2 + $0x180] ss:$12 sps:$4 sm:$0xff]  }
  0x33   : > { %1293 = vmatpush1.bf16.msra.mxu0 %v4629_v38  ;;  %v4685_v13 = vld [vmem:[#allocation2 + $0xdc] ss:$12 sps:$4 sm:$0xff]   ;;  %v4691_v17 = vld [vmem:[#allocation2 + $0xc4] ss:$12 sps:$4 sm:$0xff]   ;;  %v5198_v23 = vsub.s32 1, %v5195_v22  ;;  %v5201_v24 = vsub.s32 0, %v5195_v22 }
  0x34   : > { %1294 = vmatprep.subr.bf16.mxu0 %v4634_v40  ;;  %1404 = vmatpush1.bf16.msra.mxu1 %v4656_v49  ;;  %v4692_v19 = vld [vmem:[#allocation2 + $0x170] ss:$12 sps:$4 sm:$0xff]   ;;  %v5204_v25 = vsub.s32 2, %v5195_v22  ;;  %v431_v26 = vld [vmem:[%s6855_s3] sm:$0x7] }
  0x35   : > { %4545 = vmatmul.mubr.msk.bf16.gmra.mxu1 %vm472_vm1, %v5168_v39  ;;  %1405 = vmatprep.subr.bf16.mxu1 %v4664_v51  ;;  %v4694_v20 = vld [vmem:[#allocation2 + $0x230] ss:$12 sps:$4 sm:$0xff]   ;;  %v5213_v31 = vrot.slane %v431_v26, %v5201_v24 }
  0x36   : > { %4081 = vmatmul.mubr.msk.bf16.gmra.mxu0 %vm472_vm1, %v419_v18  ;;  %4548 = vmatprep.mubr.msk.bf16.mxu1 %vm472_vm1, %v5170_v41  ;;  %v4689_v18 = vld [vmem:[#allocation2 + $0xc0] ss:$12 sps:$4 sm:$0xff]   ;;  %v5216_v32 = vrot.slane %v431_v26, %v5204_v25 }
  0x37   : > { %569 = vmatprep.mubr.bf16.mxu0 %v5029_v0  ;;  %1295 = vmatpush1.bf16.msra.mxu0 %v4632_v45 }
  0x38   : > { %1296 = vmatprep.subr.bf16.mxu0 %v4637_v47  ;;  %1406 = vmatpush1.bf16.msra.mxu1 %v4662_v56 }
  0x39   : > { %1407 = vmatprep.subr.bf16.mxu1 %v4670_v57 }
  0x3b   : > { %1297 = vmatpush1.bf16.msra.mxu0 %v4635_v50 }
  0x3c   : > { %1298 = vmatprep.subr.bf16.mxu0 %v4640_v53  ;;  %1408 = vmatpush1.bf16.msra.mxu1 %v4668_v58 }
  0x3d   : > { %4549 = vmatmul.mubr.msk.bf16.gmra.mxu1 %vm472_vm1, %v424_v52  ;;  %1409 = vmatprep.subr.bf16.mxu1 %v4676_v7  ;;  %v4698_v7 = vld [vmem:[#allocation2 + $0x140] ss:$12 sps:$4 sm:$0xff]  }
  0x3e   : > { %4082 = vmatmul.mubr.msk.bf16.gmra.mxu0 %vm472_vm1, %v420_v27  ;;  %1431 = vmatprep.mubr.bf16.mxu1 %v5029_v0 }
  0x3f   : > { %579 = vmatprep.mubr.bf16.mxu0 %v5029_v0  ;;  %1299 = vmatpush1.bf16.msra.mxu0 %v4638_v54 }
  0x40   : > { %1300 = vmatprep.subr.bf16.mxu0 %v4643_v55  ;;  %1410 = vmatpush1.bf16.msra.mxu1 %v4674_v8 }
  0x41   : > { %1411 = vmatprep.subr.bf16.mxu1 %v4682_v11 }
  0x43   : > { %1301 = vmatpush1.bf16.msra.mxu0 %v4641_v59  ;;  %v4695_v59 = vld [vmem:[#allocation2 + $0x158] ss:$12 sps:$4 sm:$0xff]  }
  0x44   : > { %1302 = vmatprep.subr.bf16.mxu0 %v4649_v60  ;;  %1412 = vmatpush1.bf16.msra.mxu1 %v4680_v12 }
  0x45   : > { %1413 = vmatprep.subr.bf16.mxu1 %v4688_v15 }
  0x46   : > { %4083 = vmatmul.mubr.msk.bf16.gmra.mxu0 %vm472_vm1, %v5157_v29  ;;  %v5210_v29 = vrot.slane %v431_v26, %v5198_v23 }
  0x47   : > { %589 = vmatprep.mubr.bf16.mxu0 %v5029_v0  ;;  %1303 = vmatpush2.bf16.msra.mxu0 %v4647_v61 }
  0x48   : > { %1304 = vmatprep.subr.bf16.mxu0 %v4655_v62  ;;  %1414 = vmatpush1.bf16.msra.mxu1 %v4686_v16 }
  0x49   : > { %4324 = vmatprep.subr.bf16.mxu1 %v4692_v19 }
  0x4b   : > { %1305 = vmatpush2.bf16.msra.mxu0 %v4653_v63  ;;  %v4697_v63 = vld [vmem:[#allocation2 + $0x218] ss:$12 sps:$4 sm:$0xff]  }
  0x4c   : > { %1306 = vmatprep.subr.bf16.mxu0 %v4661_v1 }
  0x4e   : > { %4084 = vmatmul.mubr.msk.bf16.gmra.mxu0 %vm472_vm1, %v5168_v39 }
  0x4f   : > { %599 = vmatprep.mubr.bf16.mxu0 %v5029_v0  ;;  %1307 = vmatpush2.bf16.msra.mxu0 %v4659_v2 }
  0x50   : > { %1308 = vmatprep.subr.bf16.mxu0 %v4667_v3  ;;  %v4696_v3 = vld [vmem:[#allocation2 + $0x98] ss:$12 sps:$4 sm:$0xff]  }
  0x53   : > { %1309 = vmatpush2.bf16.msra.mxu0 %v4665_v4 }
  0x54   : > { %1310 = vmatprep.subr.bf16.mxu0 %v4673_v5 }
  0x56   : > { %4085 = vmatmul.mubr.msk.bf16.gmra.mxu0 %vm472_vm1, %v5170_v41 }
  0x57   : > { %609 = vmatprep.mubr.bf16.mxu0 %v5029_v0  ;;  %1311 = vmatpush2.bf16.msra.mxu0 %v4671_v6 }
  0x58   : > { %1312 = vmatprep.subr.bf16.mxu0 %v4679_v9 }
  0x5b   : > { %1313 = vmatpush2.bf16.msra.mxu0 %v4677_v10 }
  0x5c   : > { %1314 = vmatprep.subr.bf16.mxu0 %v4685_v13  ;;  %v4700_v13 = vld [vmem:[#allocation2 + $0x200] ss:$12 sps:$4 sm:$0xff]  }
  0x5e   : > { %4086 = vmatmul.mubr.msk.bf16.gmra.mxu0 %vm472_vm1, %v424_v52  ;;  %v4693_v52 = vld [vmem:[#allocation2 + $0xb0] ss:$12 sps:$4 sm:$0xff]  }
  0x5f   : > { %1315 = vmatpush2.bf16.msra.mxu0 %v4683_v14 }
  0x60   : > { %1316 = vmatprep.subr.bf16.mxu0 %v4691_v17 }
  0x63   : > { %1317 = vmatpush2.bf16.msra.mxu0 %v4689_v18 }
  0x64   : > { %4552 = vmatprep.subr.bf16.mxu0 %v4694_v20 }
  0xe5   : > { %v4538_v27 = vpop.f32.mrf.mxu1 }
  0xe6   : > { %v541_v28 = vpop.f32.mrf.mxu0  ;;  %v663_v60 = vadd.f32 %v4538_v27, %v5216_v32  ;;  %v4699_v27 = vld [vmem:[#allocation2 + $0x80] ss:$12 sps:$4 sm:$0xff]  }
  0xe7   : > { %v654_v30 = vpop.f32.mrf.mxu1  ;;  %v542_v40 = vadd.f32 %v541_v28, %v5213_v31 }
  0xe8   : > { %v543_v33 = vpop.f32.mrf.mxu0  ;;  %v655_v35 = vadd.f32 %v654_v30, %v5216_v32  ;;  %v725_v10 = vmax.f32 %v663_v60, 0.0  ;;  %v4701_v30 = vld [vmem:[#allocation2 + $0x128] ss:$12 sps:$4 sm:$0xff]   ;;  %v4705_v60 = vld [vmem:[#allocation2 + $0x50] ss:$12 sps:$4 sm:$0xff]  }
  0xe9   : > { %v4539_v34 = vpop.f32.mrf.mxu1  ;;  %v544_v37 = vadd.f32 %v543_v33, %v5210_v29  ;;  %v717_v53 = vmax.f32 %v542_v40, 0.0 }
  0xea   : > { %v545_v36 = vpop.f32.mrf.mxu0  ;;  %v719_v45 = vmax.f32 %v655_v35, 0.0  ;;  %v666_v54 = vadd.f32 %v4539_v34, %v5216_v32  ;;  %v4703_v35 = vld [vmem:[#allocation2 + $0x1e8] ss:$12 sps:$4 sm:$0xff]  }
  0xeb   : > { %v546_v38 = vadd.f32 %v545_v36, %v5213_v31  ;;  %v657_v39 = vpop.f32.mrf.mxu1  ;;  %v718_v49 = vmax.f32 %v544_v37, 0.0 }
  0xec   : > { %v547_v41 = vpop.f32.mrf.mxu0  ;;  %v658_v42 = vadd.f32 %v657_v39, %v5216_v32  ;;  %v728_v4 = vmax.f32 %v666_v54, 0.0 }
  0xed   : > { %v548_v43 = vadd.f32 %v547_v41, %v5210_v29  ;;  %v5224_v44 = vpop.f32.mrf.mxu1  ;;  %v720_v46 = vmax.f32 %v546_v38, 0.0 }
  0xee   : > { %v722_v47 = vmax.f32 %v658_v42, 0.0  ;;  %v551_v48 = vpop.f32.mrf.mxu0  ;;  %v5244_v16 = vpack.c.bf16 %v728_v4, %v725_v10  ;;  %v4702_v42 = vld [vmem:[#allocation2 + $0x68] ss:$12 sps:$4 sm:$0xff]  }
  0xef   : > { %v721_v50 = vmax.f32 %v548_v43, 0.0  ;;  %v670_v51 = vpop.f32.mrf.mxu1  ;;  %v5234_v61 = vpack.c.bf16 %v720_v46, %v717_v53  ;;  %v552_v5 = vadd.f32 %v551_v48, %v5213_v31  ;;  %v4704_v46 = vld [vmem:[#allocation2 + $0x110] ss:$12 sps:$4 sm:$0xff]  }
  0xf0   : > { %v5227_v55 = vpack.c.bf16 %v722_v47, %v719_v45  ;;  %v553_v56 = vpop.f32.mrf.mxu0  ;;  %v671_v18 = vadd.f32 %v670_v51, %v5216_v32 }
  0xf1   : > { %v5229_v57 = vpack.c.bf16 %v721_v50, %v718_v49  ;;  %v5231_v58 = vpop.f32.mrf.mxu1  ;;  %v554_v1 = vadd.f32 %v553_v56, %v5210_v29  ;;  %v723_v17 = vmax.f32 %v552_v5, 0.0  ;;  %v4706_v49 = vld [vmem:[#allocation2 + $0x1d0] ss:$12 sps:$4 sm:$0xff]  }
  0xf2   : > { %v555_v62 = vpop.f32.mrf.mxu0  ;;  %1432 = vmatmul.mubr.bf16.vlgmr.msra.gmra.mxu1 %v5227_v55  ;;  %v731_v38 = vmax.f32 %v671_v18, 0.0  ;;  %v682_v53 = vadd.f32 %v5231_v58, %v5216_v32 }
  0xf3   : > { %v556_v2 = vadd.f32 %v555_v62, %v5213_v31  ;;  %1318 = vmatprep.mubr.bf16.mxu0 %v5229_v57  ;;  %4325 = vmatpush3.bf16.msra.mxu1 %v4693_v52  ;;  %v673_v9 = vpop.f32.mrf.mxu1  ;;  %v724_v14 = vmax.f32 %v554_v1, 0.0  ;;  %v679_v52 = vadd.f32 %v5224_v44, %v5216_v32  ;;  %v4707_v1 = vld [vmem:[#allocation2 + $0xf8] ss:$12 sps:$4 sm:$0xff]  }
  0xf4   : > { %v557_v6 = vpop.f32.mrf.mxu0  ;;  %1319 = vmatmul.mubr.bf16.vlgmr.msra.gmra.mxu0 %v5234_v61  ;;  %1441 = vmatprep.mubr.bf16.mxu1 %v5029_v0  ;;  %v674_v19 = vadd.f32 %v673_v9, %v5216_v32  ;;  %v4709_v44 = vld [vmem:[#allocation2 + $0x1b8] ss:$12 sps:$4 sm:$0xff]  }
  0xf5   : > { %v558_v8 = vadd.f32 %v557_v6, %v5210_v29  ;;  %4553 = vmatpush3.bf16.msra.mxu0 %v4694_v20  ;;  %4326 = vmatprep.subr.bf16.mxu1 %v4695_v59  ;;  %v726_v11 = vmax.f32 %v556_v2, 0.0  ;;  %v5250_v28 = vpop.f32.mrf.mxu1  ;;  %v737_v5 = vmax.f32 %v679_v52, 0.0  ;;  %v740_v6 = vmax.f32 %v682_v53, 0.0  ;;  %v4708_v9 = vld [vmem:[#allocation2 + $0x38] ss:$12 sps:$4 sm:$0xff]  }
  0xf6   : > { %v561_v12 = vpop.f32.mrf.mxu0  ;;  %4554 = vmatprep.subr.bf16.mxu0 %v4697_v63  ;;  %v734_v40 = vmax.f32 %v674_v19, 0.0  ;;  %v4718_v52 = vld [vmem:[%s6858_s6 + $0xe4] ss:$16 sps:$4 sm:$0xff]  }
  0xf7   : > { %v727_v15 = vmax.f32 %v558_v8, 0.0  ;;  %4327 = vmatpush3.bf16.msra.mxu1 %v4696_v3  ;;  %v5252_v33 = vpack.c.bf16 %v726_v11, %v723_v17  ;;  %v562_v39 = vadd.f32 %v561_v12, %v5213_v31  ;;  %v686_v45 = vpop.f32.mrf.mxu1  ;;  %v4710_v12 = vld [vmem:[#allocation2 + $0xe0] ss:$12 sps:$4 sm:$0xff]   ;;  %v5282_v19 = vpack.c.bf16 %v740_v6, %v737_v5 }
  0xf8   : > { %v563_v26 = vpop.f32.mrf.mxu0  ;;  %4328 = vmatprep.subr.bf16.mxu1 %v4698_v7  ;;  %v5266_v59 = vpack.c.bf16 %v734_v40, %v731_v38  ;;  %v4713_v38 = vld [vmem:[#allocation2 + $0xc8] ss:$12 sps:$4 sm:$0xff]  }
  0xf9   : > { %v5248_v20 = vpack.c.bf16 %v727_v15, %v724_v14  ;;  %4555 = vmatpush3.bf16.msra.mxu0 %v4697_v63  ;;  %v564_v36 = vadd.f32 %v563_v26, %v5210_v29  ;;  %v729_v54 = vmax.f32 %v562_v39, 0.0  ;;  %v5270_v63 = vpop.f32.mrf.mxu1  ;;  %v4712_v15 = vld [vmem:[#allocation2 + $0x1a0] ss:$12 sps:$4 sm:$0xff]  }
  0xfa   : > { %v565_v34 = vpop.f32.mrf.mxu0  ;;  %1442 = vmatmul.mubr.bf16.gmra.mxu1 %v5244_v16  ;;  %4556 = vmatprep.subr.bf16.mxu0 %v4700_v13 }
  0xfb   : > { %v566_v37 = vadd.f32 %v565_v34, %v5213_v31  ;;  %1328 = vmatprep.mubr.bf16.mxu0 %v5248_v20  ;;  %1451 = vmatprep.mubr.bf16.mxu1 %v5029_v0  ;;  %v730_v50 = vmax.f32 %v564_v36, 0.0  ;;  %v689_v11 = vpop.f32.mrf.mxu1 }
  0xfc   : > { %v567_v41 = vpop.f32.mrf.mxu0  ;;  %1329 = vmatmul.mubr.bf16.gmra.mxu0 %v5252_v33  ;;  %4329 = vmatpush3.bf16.msra.mxu1 %v4699_v27  ;;  %v687_v27 = vadd.f32 %v686_v45, %v5216_v32 }
  0xfd   : > { %v568_v43 = vadd.f32 %v567_v41, %v5210_v29  ;;  %4557 = vmatpush3.bf16.msra.mxu0 %v4700_v13  ;;  %4330 = vmatprep.subr.bf16.mxu1 %v4701_v30  ;;  %v732_v47 = vmax.f32 %v566_v37, 0.0  ;;  %v690_v30 = vadd.f32 %v689_v11, %v5216_v32  ;;  %v5288_v37 = vpop.f32.mrf.mxu1  ;;  %v4715_v41 = vld [vmem:[#allocation2 + $0x188] ss:$12 sps:$4 sm:$0xff]  }
  0xfe   : > { %v571_v48 = vpop.f32.mrf.mxu0  ;;  %4558 = vmatprep.subr.bf16.mxu0 %v4703_v35  ;;  %v743_v45 = vmax.f32 %v687_v27, 0.0 }
  0xff   : > { %v733_v51 = vmax.f32 %v568_v43, 0.0  ;;  %v5272_v2 = vpack.c.bf16 %v732_v47, %v729_v54  ;;  %v572_v7 = vadd.f32 %v571_v48, %v5213_v31  ;;  %v746_v47 = vmax.f32 %v690_v30, 0.0 }
 0x100   : > { %v573_v56 = vpop.f32.mrf.mxu0  ;;  %4331 = vmatpush3.bf16.msra.mxu1 %v4702_v42 }
 0x101   : > { %v5268_v62 = vpack.c.bf16 %v733_v51, %v730_v50  ;;  %4559 = vmatpush3.bf16.msra.mxu0 %v4703_v35  ;;  %4332 = vmatprep.subr.bf16.mxu1 %v4704_v46  ;;  %v574_v58 = vadd.f32 %v573_v56, %v5210_v29  ;;  %v735_v26 = vmax.f32 %v572_v7, 0.0  ;;  %v4711_v35 = vld [vmem:[#allocation2 + $0x20] ss:$12 sps:$4 sm:$0xff]   ;;  %v702_v51 = vpop.f32.mrf.mxu1 }
 0x102   : > { %v575_v3 = vpop.f32.mrf.mxu0  ;;  %1452 = vmatmul.mubr.bf16.gmra.mxu1 %v5266_v59  ;;  %4560 = vmatprep.subr.bf16.mxu0 %v4706_v49 }
 0x103   : > { %v576_v4 = vadd.f32 %v575_v3, %v5213_v31  ;;  %1338 = vmatprep.mubr.bf16.mxu0 %v5268_v62  ;;  %1461 = vmatprep.mubr.bf16.mxu1 %v5029_v0  ;;  %v736_v17 = vmax.f32 %v574_v58, 0.0  ;;  %v698_v3 = vadd.f32 %v5270_v63, %v5216_v32  ;;  %v4551_v6 = vpop.f32.mrf.mxu1 }
 0x104   : > { %v577_v8 = vpop.f32.mrf.mxu0  ;;  %1339 = vmatmul.mubr.bf16.gmra.mxu0 %v5272_v2  ;;  %4333 = vmatpush3.bf16.msra.mxu1 %v4705_v60 }
 0x105   : > { %v578_v10 = vadd.f32 %v577_v8, %v5210_v29  ;;  %4561 = vmatpush3.bf16.msra.mxu0 %v4706_v49  ;;  %4334 = vmatprep.subr.bf16.mxu1 %v4707_v1  ;;  %v738_v13 = vmax.f32 %v576_v4, 0.0  ;;  %v4714_v49 = vld [vmem:[#allocation2 + $0x8] ss:$12 sps:$4 sm:$0xff]   ;;  %v695_v1 = vadd.f32 %v5250_v28, %v5216_v32  ;;  %v5307_v4 = vpack.c.bf16 %v746_v47, %v743_v45 }
 0x106   : > { %v581_v14 = vpop.f32.mrf.mxu0  ;;  %4562 = vmatprep.subr.bf16.mxu0 %v4709_v44 }
 0x107   : > { %v739_v18 = vmax.f32 %v578_v10, 0.0  ;;  %v5290_v39 = vpack.c.bf16 %v738_v13, %v735_v26  ;;  %v582_v46 = vadd.f32 %v581_v14, %v5213_v31  ;;  %v749_v63 = vmax.f32 %v695_v1, 0.0  ;;  %v705_v14 = vpop.f32.mrf.mxu1 }
 0x108   : > { %v583_v34 = vpop.f32.mrf.mxu0  ;;  %4335 = vmatpush3.bf16.msra.mxu1 %v4708_v9  ;;  %v752_v10 = vmax.f32 %v698_v3, 0.0 }
 0x109   : > { %v5286_v36 = vpack.c.bf16 %v739_v18, %v736_v17  ;;  %4563 = vmatpush3.bf16.msra.mxu0 %v4709_v44  ;;  %4336 = vmatprep.subr.bf16.mxu1 %v4710_v12  ;;  %v584_v42 = vadd.f32 %v583_v34, %v5210_v29  ;;  %v741_v44 = vmax.f32 %v582_v46, 0.0  ;;  %v703_v34 = vadd.f32 %v702_v51, %v5216_v32 }
 0x10a   : > { %v585_v40 = vpop.f32.mrf.mxu0  ;;  %1462 = vmatmul.mubr.bf16.gmra.mxu1 %v5282_v19  ;;  %4564 = vmatprep.subr.bf16.mxu0 %v4712_v15  ;;  %v5321_v27 = vpack.c.bf16 %v752_v10, %v749_v63 }
 0x10b   : > { %v586_v43 = vadd.f32 %v585_v40, %v5213_v31  ;;  %1348 = vmatprep.mubr.bf16.mxu0 %v5286_v36  ;;  %1471 = vmatprep.mubr.bf16.mxu1 %v5029_v0  ;;  %v742_v56 = vmax.f32 %v584_v42, 0.0  ;;  %v755_v46 = vmax.f32 %v703_v34, 0.0  ;;  %v4743_v34 = vld [vmem:[%s6858_s6 + $0x1c0] ss:$16 sps:$4 sm:$0xff]  }
 0x10c   : > { %v587_v48 = vpop.f32.mrf.mxu0  ;;  %1349 = vmatmul.mubr.bf16.gmra.mxu0 %v5290_v39  ;;  %4337 = vmatpush3.bf16.msra.mxu1 %v4711_v35  ;;  %v706_v35 = vadd.f32 %v705_v14, %v5216_v32 }
 0x10d   : > { %v588_v50 = vadd.f32 %v587_v48, %v5210_v29  ;;  %4565 = vmatpush3.bf16.msra.mxu0 %v4712_v15  ;;  %4338 = vmatprep.subr.bf16.mxu1 %v4713_v38  ;;  %v744_v53 = vmax.f32 %v586_v43, 0.0 }
 0x10e   : > { %v591_v54 = vpop.f32.mrf.mxu0  ;;  %4566 = vmatprep.subr.bf16.mxu0 %v4715_v41  ;;  %v758_v48 = vmax.f32 %v706_v35, 0.0  ;;  %v4748_v35 = vld [vmem:[%s6858_s6 + $0x1a4] ss:$16 sps:$4 sm:$0xff]  }
 0x10f   : > { %v745_v60 = vmax.f32 %v588_v50, 0.0  ;;  %v5311_v7 = vpack.c.bf16 %v744_v53, %v741_v44  ;;  %v592_v11 = vadd.f32 %v591_v54, %v5213_v31 }
 0x110   : > { %v593_v58 = vpop.f32.mrf.mxu0  ;;  %4339 = vmatpush3.bf16.msra.mxu1 %v4714_v49  ;;  %v785_v44 = vpack.c.bf16 %v758_v48, %v755_v46  ;;  %v4764_v46 = vld [vmem:[%s6858_s6 + $0x2e0] ss:$16 sps:$4 sm:$0xff]   ;;  %v4760_v48 = vld [vmem:[%s6858_s6 + $0x124] ss:$16 sps:$4 sm:$0xff]  }
 0x111   : > { %v5309_v5 = vpack.c.bf16 %v745_v60, %v742_v56  ;;  %4567 = vmatpush3.bf16.msra.mxu0 %v4715_v41  ;;  %2376 = vmatprep.subr.bf16.mxu1 %v4718_v52  ;;  %v594_v28 = vadd.f32 %v593_v58, %v5210_v29  ;;  %v747_v30 = vmax.f32 %v592_v11, 0.0  ;;  %v711_v56 = vadd.f32 %v5288_v37, %v5216_v32 }
 0x112   : > { %v595_v8 = vpop.f32.mrf.mxu0  ;;  %1472 = vmatmul.mubr.bf16.gmra.mxu1 %v5307_v4  ;;  %v714_v60 = vadd.f32 %v4551_v6, %v5216_v32 }
 0x113   : > { %v596_v9 = vadd.f32 %v595_v8, %v5213_v31  ;;  %1358 = vmatprep.mubr.bf16.mxu0 %v5309_v5  ;;  %1481 = vmatprep.mubr.bf16.mxu1 %v5029_v0  ;;  %v748_v18 = vmax.f32 %v594_v28, 0.0  ;;  %v761_v37 = vmax.f32 %v711_v56, 0.0  ;;  %v4761_v56 = vld [vmem:[%s6858_s6 + $0x100] ss:$16 sps:$4 sm:$0xff]  }
 0x114   : > { %v597_v12 = vpop.f32.mrf.mxu0  ;;  %1359 = vmatmul.mubr.bf16.gmra.mxu0 %v5311_v7  ;;  %v764_v10 = vmax.f32 %v714_v60, 0.0  ;;  %v4769_v60 = vld [vmem:[%s6858_s6 + $0x2ec] ss:$16 sps:$4 sm:$0xff]  }
 0x115   : > { %v598_v13 = vadd.f32 %v597_v12, %v5210_v29  ;;  %v750_v15 = vmax.f32 %v596_v9, 0.0 }
 0x116   : > { %v601_v17 = vpop.f32.mrf.mxu0 }
 0x117   : > { %v751_v26 = vmax.f32 %v598_v13, 0.0  ;;  %v5327_v41 = vpack.c.bf16 %v750_v15, %v747_v30  ;;  %v602_v47 = vadd.f32 %v601_v17, %v5213_v31  ;;  %v788_v15 = vpack.c.bf16 %v764_v10, %v761_v37  ;;  %v4742_v30 = vld [vmem:[%s6858_s6 + $0x1e4] ss:$16 sps:$4 sm:$0xff]   ;;  %v4806_v10 = vld [vmem:[%s6858_s6 + $0x200] ss:$16 sps:$4 sm:$0xff]  }
 0x118   : > { %v603_v38 = vpop.f32.mrf.mxu0  ;;  %v4808_v37 = vld [vmem:[%s6858_s6 + $0x204] ss:$16 sps:$4 sm:$0xff]  }
 0x119   : > { %v5325_v40 = vpack.c.bf16 %v751_v26, %v748_v18  ;;  %v604_v43 = vadd.f32 %v603_v38, %v5210_v29  ;;  %v753_v1 = vmax.f32 %v602_v47, 0.0  ;;  %v4746_v38 = vld [vmem:[%s6858_s6 + $0x1a0] ss:$16 sps:$4 sm:$0xff]  }
 0x11a   : > { %v605_v42 = vpop.f32.mrf.mxu0  ;;  %1482 = vmatmul.mubr.bf16.gmra.mxu1 %v5321_v27  ;;  %v4755_v47 = vld [vmem:[%s6858_s6 + $0x140] ss:$16 sps:$4 sm:$0xff]  }
 0x11b   : > { %v606_v45 = vadd.f32 %v605_v42, %v5213_v31  ;;  %1368 = vmatprep.mubr.bf16.mxu0 %v5325_v40  ;;  %1491 = vmatprep.mubr.bf16.mxu1 %v5029_v0  ;;  %v754_v53 = vmax.f32 %v604_v43, 0.0  ;;  %v4754_v42 = vld [vmem:[%s6858_s6 + $0x164] ss:$16 sps:$4 sm:$0xff]   ;;  %v4752_v43 = vld [vmem:[%s6858_s6 + $0x160] ss:$16 sps:$4 sm:$0xff]  }
 0x11c   : > { %v607_v49 = vpop.f32.mrf.mxu0  ;;  %1369 = vmatmul.mubr.bf16.gmra.mxu0 %v5327_v41 }
 0x11d   : > { %v608_v50 = vadd.f32 %v607_v49, %v5210_v29  ;;  %v756_v51 = vmax.f32 %v606_v45, 0.0  ;;  %v4766_v45 = vld [vmem:[%s6858_s6 + $0x2e4] ss:$16 sps:$4 sm:$0xff]  }
 0x11e   : > { %v611_v52 = vpop.f32.mrf.mxu0  ;;  %2489 = vmatprep.subr.bf16.mxu0 %v4766_v45  ;;  %v4772_v49 = vld [vmem:[%s6858_s6 + $0x2c4] ss:$16 sps:$4 sm:$0xff]  }
 0x11f   : > { %v757_v54 = vmax.f32 %v608_v50, 0.0  ;;  %v5342_v8 = vpack.c.bf16 %v756_v51, %v753_v1  ;;  %v612_v32 = vadd.f32 %v611_v52, %v5213_v31  ;;  %v4770_v50 = vld [vmem:[%s6858_s6 + $0x2c0] ss:$16 sps:$4 sm:$0xff]   ;;  %v4763_v52 = vld [vmem:[%s6858_s6 + $0x104] ss:$16 sps:$4 sm:$0xff]  }
 0x120   : > { %v613_v3 = vpop.f32.mrf.mxu0  ;;  %v4758_v51 = vld [vmem:[%s6858_s6 + $0x120] ss:$16 sps:$4 sm:$0xff]   ;;  %v4784_v1 = vld [vmem:[%s6858_s6 + $0x284] ss:$16 sps:$4 sm:$0xff]  }
 0x121   : > { %v5340_v58 = vpack.c.bf16 %v757_v54, %v754_v53  ;;  %v614_v9 = vadd.f32 %v613_v3, %v5210_v29  ;;  %v759_v17 = vmax.f32 %v612_v32, 0.0  ;;  %v4778_v53 = vld [vmem:[%s6858_s6 + $0x2a4] ss:$16 sps:$4 sm:$0xff]   ;;  %v4776_v54 = vld [vmem:[%s6858_s6 + $0x2a0] ss:$16 sps:$4 sm:$0xff]  }
 0x122   : > { %v615_v28 = vpop.f32.mrf.mxu0  ;;  %1492 = vmatmul.mubr.bf16.gmra.mxu1 %v785_v44  ;;  %v4782_v3 = vld [vmem:[%s6858_s6 + $0x280] ss:$16 sps:$4 sm:$0xff]   ;;  %v4814_v32 = vld [vmem:[%s6858_s6 + $0xec] ss:$16 sps:$4 sm:$0xff]  }
 0x123   : > { %v616_v63 = vadd.f32 %v615_v28, %v5213_v31  ;;  %1378 = vmatprep.mubr.bf16.mxu0 %v5340_v58  ;;  %1501 = vmatprep.mubr.bf16.mxu1 %v5029_v0  ;;  %v760_v13 = vmax.f32 %v614_v9, 0.0  ;;  %v4721_v31 = vld [vmem:[%s6858_s6 + $0xc4] ss:$16 sps:$4 sm:$0xff]   ;;  %v4794_v28 = vld [vmem:[%s6858_s6 + $0x240] ss:$16 sps:$4 sm:$0xff]  }
 0x124   : > { %v617_v6 = vpop.f32.mrf.mxu0  ;;  %1379 = vmatmul.mubr.bf16.gmra.mxu0 %v5342_v8  ;;  %v4802_v9 = vld [vmem:[%s6858_s6 + $0x224] ss:$16 sps:$4 sm:$0xff]  }
 0x125   : > { %v618_v11 = vadd.f32 %v617_v6, %v5210_v29  ;;  %v762_v12 = vmax.f32 %v616_v63, 0.0  ;;  %v4716_v29 = vld [vmem:[%s6858_s6 + $0xe0] ss:$16 sps:$4 sm:$0xff]  }
 0x126   : > { %v4800_v63 = vld [vmem:[%s6858_s6 + $0x220] ss:$16 sps:$4 sm:$0xff]  }
 0x127   : > { %v763_v14 = vmax.f32 %v618_v11, 0.0  ;;  %v5353_v26 = vpack.c.bf16 %v762_v12, %v759_v17  ;;  %v5530_v6 = vld [vmem:[%s6857_s5] sm:$0x7] }
 0x128   : > { %v5534_v12 = vrot.slane %v5530_v6, %v5198_v23 }
 0x129   : > { %v5351_v18 = vpack.c.bf16 %v763_v14, %v760_v13  ;;  %v5538_v13 = vrot.slane %v5530_v6, %v5201_v24 }
 0x12a   : > { %1502 = vmatmul.mubr.bf16.gmra.mxu1 %v788_v15 }
 0x12b   : > { %1388 = vmatprep.mubr.bf16.mxu0 %v5351_v18  ;;  %1544 = vmatprep.mubr.bf16.mxu1 %v5229_v57  ;;  %v4719_v57 = vld [vmem:[%s6858_s6 + $0xc0] ss:$16 sps:$4 sm:$0xff]  }
 0x12c   : > { %1389 = vmatmul.mubr.bf16.gmra.mxu0 %v5353_v26 }
 0x12d   : > { %4568 = vmatprep.mubr.bf16.mxu0 %v5227_v55  ;;  %v4724_v55 = vld [vmem:[%s6858_s6 + $0xa4] ss:$16 sps:$4 sm:$0xff]  }
 0x132   : > { %1545 = vmatmul.mubr.bf16.vlgmr.msra.gmra.mxu1 %v5234_v61  ;;  %v4722_v61 = vld [vmem:[%s6858_s6 + $0xa0] ss:$16 sps:$4 sm:$0xff]  }
 0x133   : > { %1552 = vmatprep.mubr.bf16.mxu1 %v5248_v20  ;;  %2377 = vmatpush1.bf16.msra.mxu1 %v4716_v29  ;;  %v4727_v20 = vld [vmem:[%s6858_s6 + $0x84] ss:$16 sps:$4 sm:$0xff]  }
 0x134   : > { %4569 = vmatmul.mubr.bf16.vlgmr.msra.gmra.mxu0 %v5244_v16  ;;  %2378 = vmatprep.subr.bf16.mxu1 %v4721_v31  ;;  %v4725_v16 = vld [vmem:[%s6858_s6 + $0x80] ss:$16 sps:$4 sm:$0xff]  }
 0x135   : > { %4572 = vmatprep.mubr.bf16.mxu0 %v5266_v59  ;;  %v4730_v59 = vld [vmem:[%s6858_s6 + $0x64] ss:$16 sps:$4 sm:$0xff]   ;;  %2490 = vmatpush1.bf16.msra.mxu0 %v4764_v46 }
 0x136   : > { %2491 = vmatprep.subr.bf16.mxu0 %v4772_v49 }
 0x137   : > { %2379 = vmatpush1.bf16.msra.mxu1 %v4719_v57 }
 0x138   : > { %2380 = vmatprep.subr.bf16.mxu1 %v4724_v55 }
 0x139   : > { %2492 = vmatpush1.bf16.msra.mxu0 %v4770_v50 }
 0x13a   : > { %1553 = vmatmul.mubr.bf16.gmra.mxu1 %v5252_v33  ;;  %v4728_v33 = vld [vmem:[%s6858_s6 + $0x60] ss:$16 sps:$4 sm:$0xff]   ;;  %2493 = vmatprep.subr.bf16.mxu0 %v4778_v53 }
 0x13b   : > { %1560 = vmatprep.mubr.bf16.mxu1 %v5268_v62  ;;  %2381 = vmatpush1.bf16.msra.mxu1 %v4722_v61  ;;  %v4733_v62 = vld [vmem:[%s6858_s6 + $0x44] ss:$16 sps:$4 sm:$0xff]  }
 0x13c   : > { %4573 = vmatmul.mubr.bf16.gmra.mxu0 %v5282_v19  ;;  %2382 = vmatprep.subr.bf16.mxu1 %v4727_v20  ;;  %v4731_v19 = vld [vmem:[%s6858_s6 + $0x40] ss:$16 sps:$4 sm:$0xff]  }
 0x13d   : > { %4576 = vmatprep.mubr.bf16.mxu0 %v5307_v4  ;;  %v4736_v4 = vld [vmem:[%s6858_s6 + $0x24] ss:$16 sps:$4 sm:$0xff]   ;;  %2494 = vmatpush1.bf16.msra.mxu0 %v4776_v54 }
 0x13e   : > { %2495 = vmatprep.subr.bf16.mxu0 %v4784_v1 }
 0x13f   : > { %2383 = vmatpush1.bf16.msra.mxu1 %v4725_v16 }
 0x140   : > { %2384 = vmatprep.subr.bf16.mxu1 %v4730_v59 }
 0x141   : > { %2496 = vmatpush1.bf16.msra.mxu0 %v4782_v3 }
 0x142   : > { %1561 = vmatmul.mubr.bf16.gmra.mxu1 %v5272_v2  ;;  %v4734_v2 = vld [vmem:[%s6858_s6 + $0x20] ss:$16 sps:$4 sm:$0xff]  }
 0x143   : > { %1568 = vmatprep.mubr.bf16.mxu1 %v5286_v36  ;;  %2385 = vmatpush1.bf16.msra.mxu1 %v4728_v33  ;;  %v4739_v36 = vld [vmem:[%s6858_s6 + $0x4] ss:$16 sps:$4 sm:$0xff]  }
 0x144   : > { %4577 = vmatmul.mubr.bf16.gmra.mxu0 %v5321_v27  ;;  %2386 = vmatprep.subr.bf16.mxu1 %v4733_v62  ;;  %v4737_v27 = vld [vmem:[%s6858_s6] ss:$16 sps:$4 sm:$0xff]  }
 0x145   : > { %4580 = vmatprep.mubr.bf16.mxu0 %v785_v44  ;;  %v4790_v44 = vld [vmem:[%s6858_s6 + $0x264] ss:$16 sps:$4 sm:$0xff]  }
 0x146   : > { %2497 = vmatprep.subr.bf16.mxu0 %v4790_v44 }
 0x147   : > { %2387 = vmatpush1.bf16.msra.mxu1 %v4731_v19 }
 0x148   : > { %2388 = vmatprep.subr.bf16.mxu1 %v4736_v4 }
 0x14a   : > { %1569 = vmatmul.mubr.bf16.gmra.mxu1 %v5290_v39  ;;  %v4740_v39 = vld [vmem:[%s6858_s6 + $0x1e0] ss:$16 sps:$4 sm:$0xff]  }
 0x14b   : > { %1576 = vmatprep.mubr.bf16.mxu1 %v5309_v5  ;;  %2389 = vmatpush1.bf16.msra.mxu1 %v4734_v2  ;;  %v4745_v5 = vld [vmem:[%s6858_s6 + $0x1c4] ss:$16 sps:$4 sm:$0xff]  }
 0x14c   : > { %4581 = vmatmul.mubr.bf16.gmra.mxu0 %v788_v15  ;;  %2390 = vmatprep.subr.bf16.mxu1 %v4739_v36 }
 0x14d   : > { %2521 = vmatprep.mubr.bf16.mxu0 %v5029_v0 }
 0x14f   : > { %2391 = vmatpush1.bf16.msra.mxu1 %v4737_v27 }
 0x150   : > { %2392 = vmatprep.subr.bf16.mxu1 %v4742_v30 }
 0x152   : > { %1577 = vmatmul.mubr.bf16.gmra.mxu1 %v5311_v7  ;;  %v4751_v7 = vld [vmem:[%s6858_s6 + $0x184] ss:$16 sps:$4 sm:$0xff]  }
 0x153   : > { %1584 = vmatprep.mubr.bf16.mxu1 %v5325_v40  ;;  %2393 = vmatpush2.bf16.msra.mxu1 %v4740_v39  ;;  %v4749_v40 = vld [vmem:[%s6858_s6 + $0x180] ss:$16 sps:$4 sm:$0xff]  }
 0x154   : > { %2394 = vmatprep.subr.bf16.mxu1 %v4745_v5 }
 0x157   : > { %2395 = vmatpush2.bf16.msra.mxu1 %v4743_v34 }
 0x158   : > { %2396 = vmatprep.subr.bf16.mxu1 %v4748_v35 }
 0x15a   : > { %1585 = vmatmul.mubr.bf16.gmra.mxu1 %v5327_v41  ;;  %v4757_v41 = vld [vmem:[%s6858_s6 + $0x144] ss:$16 sps:$4 sm:$0xff]  }
 0x15b   : > { %1592 = vmatprep.mubr.bf16.mxu1 %v5340_v58  ;;  %2397 = vmatpush2.bf16.msra.mxu1 %v4746_v38  ;;  %v4788_v58 = vld [vmem:[%s6858_s6 + $0x260] ss:$16 sps:$4 sm:$0xff]  }
 0x15c   : > { %2398 = vmatprep.subr.bf16.mxu1 %v4751_v7  ;;  %2498 = vmatpush1.bf16.msra.mxu0 %v4788_v58  ;;  %v4781_v58 = vld [vmem:[%s6858_s6 + $0x2ac] ss:$16 sps:$4 sm:$0xff]  }
 0x15f   : > { %2399 = vmatpush2.bf16.msra.mxu1 %v4749_v40 }
 0x160   : > { %2400 = vmatprep.subr.bf16.mxu1 %v4754_v42 }
 0x162   : > { %1593 = vmatmul.mubr.bf16.gmra.mxu1 %v5342_v8  ;;  %v4796_v8 = vld [vmem:[%s6858_s6 + $0x244] ss:$16 sps:$4 sm:$0xff]  }
 0x163   : > { %1600 = vmatprep.mubr.bf16.mxu1 %v5351_v18  ;;  %2401 = vmatpush2.bf16.msra.mxu1 %v4752_v43 }
 0x164   : > { %2402 = vmatprep.subr.bf16.mxu1 %v4757_v41  ;;  %2499 = vmatprep.subr.bf16.mxu0 %v4796_v8  ;;  %v4767_v41 = vld [vmem:[%s6858_s6 + $0x2e8] ss:$16 sps:$4 sm:$0xff]  }
 0x165   : > { %2500 = vmatpush1.bf16.msra.mxu0 %v4794_v28 }
 0x166   : > { %2501 = vmatprep.subr.bf16.mxu0 %v4802_v9 }
 0x167   : > { %2403 = vmatpush2.bf16.msra.mxu1 %v4755_v47 }
 0x168   : > { %2404 = vmatprep.subr.bf16.mxu1 %v4760_v48  ;;  %v4775_v48 = vld [vmem:[%s6858_s6 + $0x2cc] ss:$16 sps:$4 sm:$0xff]  }
 0x169   : > { %2502 = vmatpush1.bf16.msra.mxu0 %v4800_v63 }
 0x16a   : > { %1601 = vmatmul.mubr.bf16.gmra.mxu1 %v5353_v26  ;;  %2503 = vmatprep.subr.bf16.mxu0 %v4808_v37 }
 0x16b   : > { %2405 = vmatpush2.bf16.msra.mxu1 %v4758_v51 }
 0x16c   : > { %2406 = vmatprep.subr.bf16.mxu1 %v4763_v52 }
 0x16d   : > { %2504 = vmatpush1.bf16.msra.mxu0 %v4806_v10 }
 0x16e   : > { %2602 = vmatprep.subr.bf16.mxu0 %v4814_v32 }
 0x16f   : > { %2407 = vmatpush2.bf16.msra.mxu1 %v4761_v56 }
 0x170   : > { %2715 = vmatprep.subr.bf16.mxu1 %v4769_v60  ;;  %v4773_v60 = vld [vmem:[%s6858_s6 + $0x2c8] ss:$16 sps:$4 sm:$0xff]  }
 0x1b2   : > { %v1433_v11 = vpop.f32.mrf.mxu1 }
 0x1b4   : > { %v1320_v14 = vpop.f32.mrf.mxu0  ;;  %v1435_v15 = vpop.f32.mrf.mxu1 }
 0x1b5   : > { %v1321_v29 = vadd.f32 %v1320_v14, %v5538_v13 }
 0x1b6   : > { %v1322_v17 = vpop.f32.mrf.mxu0  ;;  %v1437_v18 = vpop.f32.mrf.mxu1 }
 0x1b7   : > { %v1323_v26 = vadd.f32 %v1322_v17, %v5534_v12  ;;  %v1434_v62 = vadd.f32 %v1433_v11, %v1321_v29  ;;  %v4787_v29 = vld [vmem:[%s6858_s6 + $0x28c] ss:$16 sps:$4 sm:$0xff]  }
 0x1b8   : > { %v1324_v31 = vpop.f32.mrf.mxu0  ;;  %v1439_v57 = vpop.f32.mrf.mxu1 }
 0x1b9   : > { %v1325_v55 = vadd.f32 %v1324_v31, %v5538_v13  ;;  %v1436_v16 = vadd.f32 %v1435_v15, %v1323_v26  ;;  %v1706_v35 = vmax.f32 %v1434_v62, 0.0  ;;  %v4779_v15 = vld [vmem:[%s6858_s6 + $0x2a8] ss:$16 sps:$4 sm:$0xff]  }
 0x1ba   : > { %v1326_v61 = vpop.f32.mrf.mxu0  ;;  %v1443_v20 = vpop.f32.mrf.mxu1 }
 0x1bb   : > { %v1438_v59 = vadd.f32 %v1437_v18, %v1325_v55  ;;  %v1327_v33 = vadd.f32 %v1326_v61, %v5534_v12  ;;  %v1707_v39 = vmax.f32 %v1436_v16, 0.0 }
 0x1bc   : > { %v1330_v19 = vpop.f32.mrf.mxu0  ;;  %v1445_v4 = vpop.f32.mrf.mxu1 }
 0x1bd   : > { %v1440_v2 = vadd.f32 %v1439_v57, %v1327_v33  ;;  %v1709_v36 = vmax.f32 %v1438_v59, 0.0  ;;  %v1331_v38 = vadd.f32 %v1330_v19, %v5538_v13  ;;  %v4785_v33 = vld [vmem:[%s6858_s6 + $0x288] ss:$16 sps:$4 sm:$0xff]  }
 0x1be   : > { %v1332_v27 = vpop.f32.mrf.mxu0  ;;  %v1447_v30 = vpop.f32.mrf.mxu1 }
 0x1bf   : > { %v1710_v5 = vmax.f32 %v1440_v2, 0.0  ;;  %v1333_v34 = vadd.f32 %v1332_v27, %v5534_v12  ;;  %v5552_v45 = vpack.c.bf16 %v1709_v36, %v1706_v35  ;;  %v1444_v52 = vadd.f32 %v1443_v20, %v1331_v38  ;;  %v4793_v2 = vld [vmem:[%s6858_s6 + $0x26c] ss:$16 sps:$4 sm:$0xff]  }
 0x1c0   : > { %v1334_v7 = vpop.f32.mrf.mxu0  ;;  %v1449_v40 = vpop.f32.mrf.mxu1 }
 0x1c1   : > { %v1335_v42 = vadd.f32 %v1334_v7, %v5538_v13  ;;  %v5547_v43 = vpack.c.bf16 %v1710_v5, %v1707_v39  ;;  %v1446_v49 = vadd.f32 %v1445_v4, %v1333_v34  ;;  %v1712_v63 = vmax.f32 %v1444_v52, 0.0 }
 0x1c2   : > { %v1336_v46 = vpop.f32.mrf.mxu0  ;;  %v1453_v47 = vpop.f32.mrf.mxu1 }
 0x1c3   : > { %v1448_v50 = vadd.f32 %v1447_v30, %v1335_v42  ;;  %v1337_v51 = vadd.f32 %v1336_v46, %v5534_v12  ;;  %2408 = vmatprep.mubr.bf16.mxu1 %v5547_v43  ;;  %v1713_v8 = vmax.f32 %v1446_v49, 0.0 }
 0x1c4   : > { %v1340_v53 = vpop.f32.mrf.mxu0  ;;  %2409 = vmatmul.mubr.bf16.vlgmr.msra.gmra.mxu1 %v5552_v45  ;;  %v1455_v54 = vpop.f32.mrf.mxu1 }
 0x1c5   : > { %v1450_v56 = vadd.f32 %v1449_v40, %v1337_v51  ;;  %2716 = vmatpush1.bf16.msra.mxu1 %v4767_v41  ;;  %v1715_v1 = vmax.f32 %v1448_v50, 0.0  ;;  %v1341_v37 = vadd.f32 %v1340_v53, %v5538_v13  ;;  %v4791_v40 = vld [vmem:[%s6858_s6 + $0x268] ss:$16 sps:$4 sm:$0xff]  }
 0x1c6   : > { %v1342_v3 = vpop.f32.mrf.mxu0  ;;  %v1457_v44 = vpop.f32.mrf.mxu1  ;;  %2717 = vmatprep.subr.bf16.mxu1 %v4775_v48 }
 0x1c7   : > { %v1716_v28 = vmax.f32 %v1450_v56, 0.0  ;;  %v1343_v9 = vadd.f32 %v1342_v3, %v5534_v12  ;;  %v5574_v26 = vpack.c.bf16 %v1715_v1, %v1712_v63  ;;  %v1454_v61 = vadd.f32 %v1453_v47, %v1341_v37  ;;  %v4799_v47 = vld [vmem:[%s6858_s6 + $0x24c] ss:$16 sps:$4 sm:$0xff]   ;;  %v4797_v56 = vld [vmem:[%s6858_s6 + $0x248] ss:$16 sps:$4 sm:$0xff]  }
 0x1c8   : > { %v1344_v10 = vpop.f32.mrf.mxu0  ;;  %v1459_v32 = vpop.f32.mrf.mxu1 }
 0x1c9   : > { %v1345_v11 = vadd.f32 %v1344_v10, %v5538_v13  ;;  %v5569_v14 = vpack.c.bf16 %v1716_v28, %v1713_v8  ;;  %2718 = vmatpush1.bf16.msra.mxu1 %v4773_v60  ;;  %v1456_v31 = vadd.f32 %v1455_v54, %v1343_v9  ;;  %v1718_v39 = vmax.f32 %v1454_v61, 0.0 }
 0x1ca   : > { %v1346_v17 = vpop.f32.mrf.mxu0  ;;  %v1463_v18 = vpop.f32.mrf.mxu1  ;;  %2719 = vmatprep.subr.bf16.mxu1 %v4781_v58 }
 0x1cb   : > { %v1458_v57 = vadd.f32 %v1457_v44, %v1345_v11  ;;  %v1347_v55 = vadd.f32 %v1346_v17, %v5534_v12  ;;  %2418 = vmatprep.mubr.bf16.mxu1 %v5569_v14  ;;  %v1719_v36 = vmax.f32 %v1456_v31, 0.0  ;;  %v4805_v44 = vld [vmem:[%s6858_s6 + $0x22c] ss:$16 sps:$4 sm:$0xff]  }
 0x1cc   : > { %v1350_v20 = vpop.f32.mrf.mxu0  ;;  %2419 = vmatmul.mubr.bf16.gmra.mxu1 %v5574_v26  ;;  %v1465_v16 = vpop.f32.mrf.mxu1  ;;  %v4811_v31 = vld [vmem:[%s6858_s6 + $0x20c] ss:$16 sps:$4 sm:$0xff]  }
 0x1cd   : > { %v1460_v59 = vadd.f32 %v1459_v32, %v1347_v55  ;;  %2720 = vmatpush1.bf16.msra.mxu1 %v4779_v15  ;;  %v1721_v62 = vmax.f32 %v1458_v57, 0.0  ;;  %v1351_v5 = vadd.f32 %v1350_v20, %v5538_v13  ;;  %v4803_v15 = vld [vmem:[%s6858_s6 + $0x228] ss:$16 sps:$4 sm:$0xff]  }
 0x1ce   : > { %v1352_v19 = vpop.f32.mrf.mxu0  ;;  %v1467_v4 = vpop.f32.mrf.mxu1  ;;  %2721 = vmatprep.subr.bf16.mxu1 %v4787_v29 }
 0x1cf   : > { %v1722_v27 = vmax.f32 %v1460_v59, 0.0  ;;  %v1353_v30 = vadd.f32 %v1352_v19, %v5534_v12  ;;  %v5596_v46 = vpack.c.bf16 %v1721_v62, %v1718_v39  ;;  %v1464_v51 = vadd.f32 %v1463_v18, %v1351_v5  ;;  %v4809_v62 = vld [vmem:[%s6858_s6 + $0x208] ss:$16 sps:$4 sm:$0xff]  }
 0x1d0   : > { %v1354_v34 = vpop.f32.mrf.mxu0  ;;  %v1469_v35 = vpop.f32.mrf.mxu1 }
 0x1d1   : > { %v1355_v38 = vadd.f32 %v1354_v34, %v5538_v13  ;;  %v5591_v7 = vpack.c.bf16 %v1722_v27, %v1719_v36  ;;  %2722 = vmatpush1.bf16.msra.mxu1 %v4785_v33  ;;  %v1466_v48 = vadd.f32 %v1465_v16, %v1353_v30  ;;  %v1724_v9 = vmax.f32 %v1464_v51, 0.0 }
 0x1d2   : > { %v1356_v42 = vpop.f32.mrf.mxu0  ;;  %v1473_v41 = vpop.f32.mrf.mxu1  ;;  %2723 = vmatprep.subr.bf16.mxu1 %v4793_v2 }
 0x1d3   : > { %v1468_v49 = vadd.f32 %v1467_v4, %v1355_v38  ;;  %v1357_v50 = vadd.f32 %v1356_v42, %v5534_v12  ;;  %2428 = vmatprep.mubr.bf16.mxu1 %v5591_v7  ;;  %v1725_v58 = vmax.f32 %v1466_v48, 0.0 }
 0x1d4   : > { %v1360_v52 = vpop.f32.mrf.mxu0  ;;  %2429 = vmatmul.mubr.bf16.gmra.mxu1 %v5596_v46  ;;  %v1475_v53 = vpop.f32.mrf.mxu1 }
 0x1d5   : > { %v1470_v54 = vadd.f32 %v1469_v35, %v1357_v50  ;;  %2724 = vmatpush1.bf16.msra.mxu1 %v4791_v40  ;;  %v1727_v60 = vmax.f32 %v1468_v49, 0.0  ;;  %v1361_v63 = vadd.f32 %v1360_v52, %v5538_v13 }
 0x1d6   : > { %v1362_v1 = vpop.f32.mrf.mxu0  ;;  %v1477_v3 = vpop.f32.mrf.mxu1  ;;  %2725 = vmatprep.subr.bf16.mxu1 %v4799_v47 }
 0x1d7   : > { %v1728_v8 = vmax.f32 %v1470_v54, 0.0  ;;  %v1363_v28 = vadd.f32 %v1362_v1, %v5534_v12  ;;  %v5618_v29 = vpack.c.bf16 %v1727_v60, %v1724_v9  ;;  %v1474_v20 = vadd.f32 %v1473_v41, %v1361_v63 }
 0x1d8   : > { %v1364_v37 = vpop.f32.mrf.mxu0  ;;  %v1479_v10 = vpop.f32.mrf.mxu1 }
 0x1d9   : > { %v1365_v32 = vadd.f32 %v1364_v37, %v5538_v13  ;;  %v5613_v11 = vpack.c.bf16 %v1728_v8, %v1725_v58  ;;  %2726 = vmatpush1.bf16.msra.mxu1 %v4797_v56  ;;  %v1476_v57 = vadd.f32 %v1475_v53, %v1363_v28  ;;  %v1730_v39 = vmax.f32 %v1474_v20, 0.0 }
 0x1da   : > { %v1366_v17 = vpop.f32.mrf.mxu0  ;;  %v1483_v18 = vpop.f32.mrf.mxu1  ;;  %2727 = vmatprep.subr.bf16.mxu1 %v4805_v44 }
 0x1db   : > { %v1478_v55 = vadd.f32 %v1477_v3, %v1365_v32  ;;  %v1367_v61 = vadd.f32 %v1366_v17, %v5534_v12  ;;  %2438 = vmatprep.mubr.bf16.mxu1 %v5613_v11  ;;  %v1731_v36 = vmax.f32 %v1476_v57, 0.0 }
 0x1dc   : > { %v1370_v16 = vpop.f32.mrf.mxu0  ;;  %2439 = vmatmul.mubr.bf16.gmra.mxu1 %v5618_v29  ;;  %v1485_v59 = vpop.f32.mrf.mxu1 }
 0x1dd   : > { %v1480_v33 = vadd.f32 %v1479_v10, %v1367_v61  ;;  %2728 = vmatpush1.bf16.msra.mxu1 %v4803_v15  ;;  %v1733_v19 = vmax.f32 %v1478_v55, 0.0  ;;  %v1371_v5 = vadd.f32 %v1370_v16, %v5538_v13 }
 0x1de   : > { %v1372_v4 = vpop.f32.mrf.mxu0  ;;  %v1487_v2 = vpop.f32.mrf.mxu1  ;;  %2729 = vmatprep.subr.bf16.mxu1 %v4811_v31 }
 0x1df   : > { %v1734_v27 = vmax.f32 %v1480_v33, 0.0  ;;  %v1373_v30 = vadd.f32 %v1372_v4, %v5534_v12  ;;  %v5634_v47 = vpack.c.bf16 %v1733_v19, %v1730_v39  ;;  %v1484_v51 = vadd.f32 %v1483_v18, %v1371_v5 }
 0x1e0   : > { %v1374_v34 = vpop.f32.mrf.mxu0  ;;  %v1489_v35 = vpop.f32.mrf.mxu1 }
 0x1e1   : > { %v1375_v38 = vadd.f32 %v1374_v34, %v5538_v13  ;;  %v5632_v40 = vpack.c.bf16 %v1734_v27, %v1731_v36  ;;  %2730 = vmatpush1.bf16.msra.mxu1 %v4809_v62  ;;  %v1486_v48 = vadd.f32 %v1485_v59, %v1373_v30  ;;  %v1736_v8 = vmax.f32 %v1484_v51, 0.0 }
 0x1e2   : > { %v1376_v42 = vpop.f32.mrf.mxu0  ;;  %v1493_v41 = vpop.f32.mrf.mxu1 }
 0x1e3   : > { %v1488_v49 = vadd.f32 %v1487_v2, %v1375_v38  ;;  %v1377_v50 = vadd.f32 %v1376_v42, %v5534_v12  ;;  %2448 = vmatprep.mubr.bf16.mxu1 %v5632_v40  ;;  %v1737_v3 = vmax.f32 %v1486_v48, 0.0 }
 0x1e4   : > { %v1380_v52 = vpop.f32.mrf.mxu0  ;;  %2449 = vmatmul.mubr.bf16.gmra.mxu1 %v5634_v47  ;;  %v1495_v53 = vpop.f32.mrf.mxu1 }
 0x1e5   : > { %v1490_v54 = vadd.f32 %v1489_v35, %v1377_v50  ;;  %v1739_v56 = vmax.f32 %v1488_v49, 0.0  ;;  %v1381_v28 = vadd.f32 %v1380_v52, %v5538_v13  ;;  %v5660_v50 = vrot.slane %v5530_v6, %v5204_v25 }
 0x1e6   : > { %v1382_v60 = vpop.f32.mrf.mxu0  ;;  %v1497_v1 = vpop.f32.mrf.mxu1 }
 0x1e7   : > { %v1740_v44 = vmax.f32 %v1490_v54, 0.0  ;;  %v1383_v58 = vadd.f32 %v1382_v60, %v5534_v12  ;;  %v5644_v17 = vpack.c.bf16 %v1739_v56, %v1736_v8  ;;  %v1494_v55 = vadd.f32 %v1493_v41, %v1381_v28 }
 0x1e8   : > { %v1384_v9 = vpop.f32.mrf.mxu0  ;;  %v1499_v63 = vpop.f32.mrf.mxu1 }
 0x1e9   : > { %v1385_v37 = vadd.f32 %v1384_v9, %v5538_v13  ;;  %v5642_v10 = vpack.c.bf16 %v1740_v44, %v1737_v3  ;;  %v1496_v18 = vadd.f32 %v1495_v53, %v1383_v58  ;;  %v1742_v36 = vmax.f32 %v1494_v55, 0.0 }
 0x1ea   : > { %v1386_v32 = vpop.f32.mrf.mxu0  ;;  %v1503_v15 = vpop.f32.mrf.mxu1 }
 0x1eb   : > { %v1498_v31 = vadd.f32 %v1497_v1, %v1385_v37  ;;  %v1387_v57 = vadd.f32 %v1386_v32, %v5534_v12  ;;  %2458 = vmatprep.mubr.bf16.mxu1 %v5642_v10  ;;  %v1743_v19 = vmax.f32 %v1496_v18, 0.0 }
 0x1ec   : > { %v1390_v61 = vpop.f32.mrf.mxu0  ;;  %2459 = vmatmul.mubr.bf16.gmra.mxu1 %v5644_v17  ;;  %v1505_v20 = vpop.f32.mrf.mxu1 }
 0x1ed   : > { %v1500_v16 = vadd.f32 %v1499_v63, %v1387_v57  ;;  %v1745_v59 = vmax.f32 %v1498_v31, 0.0  ;;  %v1391_v27 = vadd.f32 %v1390_v61, %v5538_v13 }
 0x1ee   : > { %v1392_v33 = vpop.f32.mrf.mxu0  ;;  %v1507_v62 = vpop.f32.mrf.mxu1 }
 0x1ef   : > { %v1746_v4 = vmax.f32 %v1500_v16, 0.0  ;;  %v1393_v2 = vadd.f32 %v1392_v33, %v5534_v12  ;;  %v5654_v42 = vpack.c.bf16 %v1745_v59, %v1742_v36  ;;  %v1504_v51 = vadd.f32 %v1503_v15, %v1391_v27  ;;  %v4817_v36 = vld [vmem:[%s6858_s6 + $0xcc] ss:$16 sps:$4 sm:$0xff]  }
 0x1f0   : > { %v1394_v30 = vpop.f32.mrf.mxu0  ;;  %v1509_v39 = vpop.f32.mrf.mxu1 }
 0x1f1   : > { %v1395_v5 = vadd.f32 %v1394_v30, %v5538_v13  ;;  %v5652_v34 = vpack.c.bf16 %v1746_v4, %v1743_v19  ;;  %v1506_v41 = vadd.f32 %v1505_v20, %v1393_v2  ;;  %v1748_v58 = vmax.f32 %v1504_v51, 0.0  ;;  %v4812_v19 = vld [vmem:[%s6858_s6 + $0xe8] ss:$16 sps:$4 sm:$0xff]  }
 0x1f2   : > { %v1396_v35 = vpop.f32.mrf.mxu0  ;;  %v4340_v38 = vpop.f32.mrf.mxu1 }
 0x1f3   : > { %v1508_v48 = vadd.f32 %v1507_v62, %v1395_v5  ;;  %v1397_v49 = vadd.f32 %v1396_v35, %v5534_v12  ;;  %2468 = vmatprep.mubr.bf16.mxu1 %v5652_v34  ;;  %v1749_v3 = vmax.f32 %v1506_v41, 0.0 }
 0x1f4   : > { %v4570_v52 = vpop.f32.mrf.mxu0  ;;  %2469 = vmatmul.mubr.bf16.gmra.mxu1 %v5654_v42  ;;  %v4341_v13 = vpop.f32.mrf.mxu1 }
 0x1f5   : > { %v1510_v53 = vadd.f32 %v1509_v39, %v1397_v49  ;;  %v4342_v54 = vadd.f32 %v4341_v13, %v4340_v38  ;;  %v1751_v56 = vmax.f32 %v1508_v48, 0.0  ;;  %v4815_v38 = vld [vmem:[%s6858_s6 + $0xc8] ss:$16 sps:$4 sm:$0xff]   ;;  %v4820_v49 = vld [vmem:[%s6858_s6 + $0xac] ss:$16 sps:$4 sm:$0xff]  }
 0x1f6   : > { %v1643_v60 = vpop.f32.mrf.mxu0  ;;  %v4343_v1 = vpop.f32.mrf.mxu1 }
 0x1f7   : > { %v1752_v44 = vmax.f32 %v1510_v53, 0.0  ;;  %v1547_v12 = vadd.f32 %v4342_v54, %v5660_v50  ;;  %v5666_v37 = vpack.c.bf16 %v1751_v56, %v1748_v58 }
 0x1f8   : > { %v4571_v8 = vpop.f32.mrf.mxu0  ;;  %v4344_v28 = vpop.f32.mrf.mxu1 }
 0x1f9   : > { %v4345_v9 = vadd.f32 %v4344_v28, %v4343_v1  ;;  %v5664_v6 = vpack.c.bf16 %v1752_v44, %v1749_v3  ;;  %v1644_v32 = vadd.f32 %v1643_v60, %v1547_v12  ;;  %v4818_v60 = vld [vmem:[%s6858_s6 + $0xa8] ss:$16 sps:$4 sm:$0xff]   ;;  %v4823_v44 = vld [vmem:[%s6858_s6 + $0x8c] ss:$16 sps:$4 sm:$0xff]  }
 0x1fa   : > { %v4346_v63 = vpop.f32.mrf.mxu1  ;;  %v1646_v18 = vpop.f32.mrf.mxu0 }
 0x1fb   : > { %v1550_v15 = vadd.f32 %v4345_v9, %v5660_v50  ;;  %2478 = vmatprep.mubr.bf16.mxu1 %v5664_v6  ;;  %v1708_v20 = vmax.f32 %v1644_v32, 0.0 }
 0x1fc   : > { %2479 = vmatmul.mubr.bf16.gmra.mxu1 %v5666_v37  ;;  %v4347_v31 = vpop.f32.mrf.mxu1  ;;  %v4574_v33 = vpop.f32.mrf.mxu0 }
 0x1fd   : > { %v1647_v57 = vadd.f32 %v1646_v18, %v1550_v15  ;;  %v4348_v55 = vadd.f32 %v4347_v31, %v4346_v63  ;;  %2747 = vmatprep.mubr.bf16.mxu1 %v5029_v0  ;;  %v4821_v63 = vld [vmem:[%s6858_s6 + $0x88] ss:$16 sps:$4 sm:$0xff]   ;;  %v4826_v18 = vld [vmem:[%s6858_s6 + $0x6c] ss:$16 sps:$4 sm:$0xff]  }
 0x1fe   : > { %v4349_v61 = vpop.f32.mrf.mxu1  ;;  %v1659_v5 = vpop.f32.mrf.mxu0 }
 0x1ff   : > { %v1711_v16 = vmax.f32 %v1647_v57, 0.0  ;;  %v1555_v59 = vadd.f32 %v4348_v55, %v5660_v50 }
 0x200   : > { %v4350_v62 = vpop.f32.mrf.mxu1  ;;  %v4575_v54 = vpop.f32.mrf.mxu0 }
 0x201   : > { %v1756_v4 = vpack.c.bf16 %v1711_v16, %v1708_v20  ;;  %v4351_v2 = vadd.f32 %v4350_v62, %v4349_v61  ;;  %v1652_v30 = vadd.f32 %v4570_v52, %v1555_v59  ;;  %v4824_v59 = vld [vmem:[%s6858_s6 + $0x68] ss:$16 sps:$4 sm:$0xff]  }
 0x202   : > { %v4352_v27 = vpop.f32.mrf.mxu1  ;;  %v1662_v28 = vpop.f32.mrf.mxu0 }
 0x203   : > { %v1558_v39 = vadd.f32 %v4351_v2, %v5660_v50  ;;  %2522 = vmatmul.mubr.bf16.vlgmr.msra.gmra.mxu0 %v1756_v4  ;;  %v1714_v52 = vmax.f32 %v1652_v30, 0.0 }
 0x204   : > { %2603 = vmatpush1.bf16.msra.mxu0 %v4812_v19  ;;  %2748 = vmatmul.mubr.bf16.vlgmr.msra.gmra.mxu1 %v1756_v4  ;;  %v4353_v35 = vpop.f32.mrf.mxu1  ;;  %v5705_v20 = vpop.f32.mrf.mxu0  ;;  %v4829_v4 = vld [vmem:[%s6858_s6 + $0x4c] ss:$16 sps:$4 sm:$0xff]  }
 0x205   : > { %v1655_v41 = vadd.f32 %v4571_v8, %v1558_v39  ;;  %v4354_v48 = vadd.f32 %v4353_v35, %v4352_v27  ;;  %2604 = vmatprep.subr.bf16.mxu0 %v4817_v36  ;;  %2531 = vmatprep.mubr.bf16.mxu0 %v5029_v0 }
 0x206   : > { %v4355_v51 = vpop.f32.mrf.mxu1  ;;  %2757 = vmatprep.mubr.bf16.mxu1 %v5029_v0  ;;  %v1675_v30 = vpop.f32.mrf.mxu0 }
 0x207   : > { %v1563_v13 = vadd.f32 %v4354_v48, %v5660_v50  ;;  %v1717_v53 = vmax.f32 %v1655_v41, 0.0 }
 0x208   : > { %2605 = vmatpush1.bf16.msra.mxu0 %v4815_v38  ;;  %v4356_v56 = vpop.f32.mrf.mxu1 }
 0x209   : > { %v4357_v1 = vadd.f32 %v4356_v56, %v4355_v51  ;;  %2606 = vmatprep.subr.bf16.mxu0 %v4820_v49  ;;  %v1759_v3 = vpack.c.bf16 %v1717_v53, %v1714_v52  ;;  %v1660_v58 = vadd.f32 %v1659_v5, %v1563_v13  ;;  %v4827_v5 = vld [vmem:[%s6858_s6 + $0x48] ss:$16 sps:$4 sm:$0xff]   ;;  %v4579_v52 = vpop.f32.mrf.mxu0 }
 0x20a   : > { %v4358_v12 = vpop.f32.mrf.mxu1  ;;  %v4830_v53 = vld [vmem:[%s6858_s6 + $0x28] ss:$16 sps:$4 sm:$0xff]  }
 0x20b   : > { %v1566_v8 = vadd.f32 %v4357_v1, %v5660_v50  ;;  %2532 = vmatmul.mubr.bf16.gmra.mxu0 %v1759_v3  ;;  %v1720_v57 = vmax.f32 %v1660_v58, 0.0 }
 0x20c   : > { %2607 = vmatpush1.bf16.msra.mxu0 %v4818_v60  ;;  %2758 = vmatmul.mubr.bf16.gmra.mxu1 %v1759_v3  ;;  %v4359_v9 = vpop.f32.mrf.mxu1  ;;  %v4835_v60 = vld [vmem:[%s6858_s6 + $0xc] ss:$16 sps:$4 sm:$0xff]  }
 0x20d   : > { %v1663_v32 = vadd.f32 %v1662_v28, %v1566_v8  ;;  %v4360_v15 = vadd.f32 %v4359_v9, %v4358_v12  ;;  %2608 = vmatprep.subr.bf16.mxu0 %v4823_v44  ;;  %2541 = vmatprep.mubr.bf16.mxu0 %v5029_v0  ;;  %v1678_v12 = vpop.f32.mrf.mxu0  ;;  %v4833_v8 = vld [vmem:[%s6858_s6 + $0x8] ss:$16 sps:$4 sm:$0xff]  }
 0x20e   : > { %v4361_v31 = vpop.f32.mrf.mxu1  ;;  %2767 = vmatprep.mubr.bf16.mxu1 %v5029_v0 }
 0x20f   : > { %v1571_v55 = vadd.f32 %v4360_v15, %v5660_v50  ;;  %v1723_v61 = vmax.f32 %v1663_v32, 0.0 }
 0x210   : > { %2609 = vmatpush1.bf16.msra.mxu0 %v4821_v63  ;;  %v4362_v16 = vpop.f32.mrf.mxu1  ;;  %v4838_v63 = vld [vmem:[%s6858_s6 + $0x1ec] ss:$16 sps:$4 sm:$0xff]  }
 0x211   : > { %v4363_v62 = vadd.f32 %v4362_v16, %v4361_v31  ;;  %2610 = vmatprep.subr.bf16.mxu0 %v4826_v18  ;;  %v1762_v19 = vpack.c.bf16 %v1723_v61, %v1720_v57  ;;  %v1668_v36 = vadd.f32 %v4574_v33, %v1571_v55  ;;  %v4832_v33 = vld [vmem:[%s6858_s6 + $0x2c] ss:$16 sps:$4 sm:$0xff]   ;;  %v4582_v57 = vpop.f32.mrf.mxu0  ;;  %v4836_v61 = vld [vmem:[%s6858_s6 + $0x1e8] ss:$16 sps:$4 sm:$0xff]  }
 0x212   : > { %v4364_v2 = vpop.f32.mrf.mxu1 }
 0x213   : > { %v1574_v27 = vadd.f32 %v4363_v62, %v5660_v50  ;;  %2542 = vmatmul.mubr.bf16.gmra.mxu0 %v1762_v19  ;;  %v1726_v48 = vmax.f32 %v1668_v36, 0.0  ;;  %v4841_v62 = vld [vmem:[%s6858_s6 + $0x1cc] ss:$16 sps:$4 sm:$0xff]   ;;  %v1691_v36 = vpop.f32.mrf.mxu0 }
 0x214   : > { %2611 = vmatpush1.bf16.msra.mxu0 %v4824_v59  ;;  %2768 = vmatmul.mubr.bf16.gmra.mxu1 %v1762_v19  ;;  %v4365_v39 = vpop.f32.mrf.mxu1 }
 0x215   : > { %v1671_v35 = vadd.f32 %v4575_v54, %v1574_v27  ;;  %v4366_v38 = vadd.f32 %v4365_v39, %v4364_v2  ;;  %2612 = vmatprep.subr.bf16.mxu0 %v4829_v4  ;;  %2551 = vmatprep.mubr.bf16.mxu0 %v5029_v0 }
 0x216   : > { %v4367_v41 = vpop.f32.mrf.mxu1  ;;  %2777 = vmatprep.mubr.bf16.mxu1 %v5029_v0 }
 0x217   : > { %v1579_v49 = vadd.f32 %v4366_v38, %v5660_v50  ;;  %v1729_v51 = vmax.f32 %v1671_v35, 0.0 }
 0x218   : > { %2613 = vmatpush1.bf16.msra.mxu0 %v4827_v5  ;;  %v4368_v13 = vpop.f32.mrf.mxu1 }
 0x219   : > { %v4369_v54 = vadd.f32 %v4368_v13, %v4367_v41  ;;  %2614 = vmatprep.subr.bf16.mxu0 %v4832_v33  ;;  %v1765_v56 = vpack.c.bf16 %v1729_v51, %v1726_v48  ;;  %v1676_v3 = vadd.f32 %v1675_v30, %v1579_v49  ;;  %v4839_v30 = vld [vmem:[%s6858_s6 + $0x1c8] ss:$16 sps:$4 sm:$0xff]   ;;  %v4583_v48 = vpop.f32.mrf.mxu0 }
 0x21a   : > { %v4370_v1 = vpop.f32.mrf.mxu1  ;;  %v4842_v51 = vld [vmem:[%s6858_s6 + $0x1a8] ss:$16 sps:$4 sm:$0xff]  }
 0x21b   : > { %v1582_v44 = vadd.f32 %v4369_v54, %v5660_v50  ;;  %2552 = vmatmul.mubr.bf16.gmra.mxu0 %v1765_v56  ;;  %v1732_v15 = vmax.f32 %v1676_v3, 0.0 }
 0x21c   : > { %2615 = vmatpush1.bf16.msra.mxu0 %v4830_v53  ;;  %2778 = vmatmul.mubr.bf16.gmra.mxu1 %v1765_v56  ;;  %v4371_v58 = vpop.f32.mrf.mxu1  ;;  %v4847_v53 = vld [vmem:[%s6858_s6 + $0x18c] ss:$16 sps:$4 sm:$0xff]  }
 0x21d   : > { %v1679_v28 = vadd.f32 %v1678_v12, %v1582_v44  ;;  %v4372_v9 = vadd.f32 %v4371_v58, %v4370_v1  ;;  %2616 = vmatprep.subr.bf16.mxu0 %v4835_v60  ;;  %2561 = vmatprep.mubr.bf16.mxu0 %v5029_v0  ;;  %v1694_v1 = vpop.f32.mrf.mxu0  ;;  %v4845_v44 = vld [vmem:[%s6858_s6 + $0x188] ss:$16 sps:$4 sm:$0xff]  }
 0x21e   : > { %v4373_v32 = vpop.f32.mrf.mxu1  ;;  %2787 = vmatprep.mubr.bf16.mxu1 %v5029_v0 }
 0x21f   : > { %v1735_v18 = vmax.f32 %v1679_v28, 0.0  ;;  %v1587_v31 = vadd.f32 %v4372_v9, %v5660_v50 }
 0x220   : > { %2617 = vmatpush1.bf16.msra.mxu0 %v4833_v8  ;;  %v4374_v55 = vpop.f32.mrf.mxu1  ;;  %v4850_v8 = vld [vmem:[%s6858_s6 + $0x16c] ss:$16 sps:$4 sm:$0xff]  }
 0x221   : > { %v4375_v16 = vadd.f32 %v4374_v55, %v4373_v32  ;;  %2618 = vmatprep.subr.bf16.mxu0 %v4838_v63  ;;  %v1768_v59 = vpack.c.bf16 %v1735_v18, %v1732_v15  ;;  %v1684_v4 = vadd.f32 %v5705_v20, %v1587_v31  ;;  %v4844_v20 = vld [vmem:[%s6858_s6 + $0x1ac] ss:$16 sps:$4 sm:$0xff]   ;;  %v4848_v18 = vld [vmem:[%s6858_s6 + $0x168] ss:$16 sps:$4 sm:$0xff]  }
 0x222   : > { %v4376_v19 = vpop.f32.mrf.mxu1 }
 0x223   : > { %v1590_v2 = vadd.f32 %v4375_v16, %v5660_v50  ;;  %2562 = vmatmul.mubr.bf16.gmra.mxu0 %v1768_v59  ;;  %v1738_v38 = vmax.f32 %v1684_v4, 0.0  ;;  %v4856_v4 = vld [vmem:[%s6858_s6 + $0x12c] ss:$16 sps:$4 sm:$0xff]  }
 0x224   : > { %2619 = vmatpush2.bf16.msra.mxu0 %v4836_v61  ;;  %2788 = vmatmul.mubr.bf16.gmra.mxu1 %v1768_v59  ;;  %v4377_v27 = vpop.f32.mrf.mxu1  ;;  %v4853_v61 = vld [vmem:[%s6858_s6 + $0x14c] ss:$16 sps:$4 sm:$0xff]  }
 0x225   : > { %v1687_v39 = vadd.f32 %v4579_v52, %v1590_v2  ;;  %v4378_v5 = vadd.f32 %v4377_v27, %v4376_v19  ;;  %2620 = vmatprep.subr.bf16.mxu0 %v4841_v62  ;;  %2571 = vmatprep.mubr.bf16.mxu0 %v5029_v0  ;;  %v4851_v62 = vld [vmem:[%s6858_s6 + $0x148] ss:$16 sps:$4 sm:$0xff]   ;;  %v4859_v27 = vld [vmem:[%s6858_s6 + $0x10c] ss:$16 sps:$4 sm:$0xff]  }
 0x226   : > { %v4379_v35 = vpop.f32.mrf.mxu1  ;;  %2797 = vmatprep.mubr.bf16.mxu1 %v5029_v0 }
 0x227   : > { %v1741_v33 = vmax.f32 %v1687_v39, 0.0  ;;  %v1595_v41 = vadd.f32 %v4378_v5, %v5660_v50  ;;  %v4861_v39 = vld [vmem:[%s6860_s8 + $0x38] sm:$0xff]   ;;  %v4862_v5 = vld [vmem:[%s6860_s8 + $0x70] sm:$0xff]  }
 0x228   : > { %2621 = vmatpush2.bf16.msra.mxu0 %v4839_v30  ;;  %v4380_v49 = vpop.f32.mrf.mxu1  ;;  %v4860_v30 = vld [vmem:[%s6860_s8 + $0x78] sm:$0xff]  }
 0x229   : > { %v4381_v52 = vadd.f32 %v4380_v49, %v4379_v35  ;;  %2622 = vmatprep.subr.bf16.mxu0 %v4844_v20  ;;  %v1771_v13 = vpack.c.bf16 %v1741_v33, %v1738_v38  ;;  %v1692_v56 = vadd.f32 %v1691_v36, %v1595_v41  ;;  %v4864_v20 = vld [vmem:[%s6860_s8 + $0x68] sm:$0xff]   ;;  %v4868_v38 = vld [vmem:[%s6860_s8 + $0x58] sm:$0xff]   ;;  %v4874_v49 = vld [vmem:[%s6860_s8 + $0x40] sm:$0xff]  }
 0x22a   : > { %v4382_v54 = vpop.f32.mrf.mxu1  ;;  %v4865_v35 = vld [vmem:[%s6860_s8 + $0x28] sm:$0xff]   ;;  %v4869_v33 = vld [vmem:[%s6860_s8 + $0x18] sm:$0xff]  }
 0x22b   : > { %v1598_v60 = vadd.f32 %v4381_v52, %v5660_v50  ;;  %2572 = vmatmul.mubr.bf16.gmra.mxu0 %v1771_v13  ;;  %v1744_v9 = vmax.f32 %v1692_v56, 0.0  ;;  %v4872_v41 = vld [vmem:[%s6860_s8 + $0x48] sm:$0xff]   ;;  %v4878_v52 = vld [vmem:[%s6860_s8 + $0xf0] sm:$0xff]  }
 0x22c   : > { %2623 = vmatpush2.bf16.msra.mxu0 %v4842_v51  ;;  %2798 = vmatmul.mubr.bf16.gmra.mxu1 %v1771_v13  ;;  %v4383_v3 = vpop.f32.mrf.mxu1  ;;  %v4875_v51 = vld [vmem:[%s6860_s8] sm:$0xff]   ;;  %v4879_v13 = vld [vmem:[%s6860_s8 + $0xb0] sm:$0xff]   ;;  %v4888_v56 = vld [vmem:[%s6860_s8 + $0xc8] sm:$0xff]  }
 0x22d   : > { %v1695_v12 = vadd.f32 %v1694_v1, %v1598_v60  ;;  %v4384_v58 = vadd.f32 %v4383_v3, %v4382_v54  ;;  %2624 = vmatprep.subr.bf16.mxu0 %v4847_v53  ;;  %2581 = vmatprep.mubr.bf16.mxu0 %v5029_v0  ;;  %v4886_v53 = vld [vmem:[%s6860_s8 + $0xd0] sm:$0xff]  }
 0x22e   : > { %v4385_v28 = vpop.f32.mrf.mxu1  ;;  %2807 = vmatprep.mubr.bf16.mxu1 %v5029_v0 }
 0x22f   : > { %v1747_v63 = vmax.f32 %v1695_v12, 0.0  ;;  %v1603_v32 = vadd.f32 %v4384_v58, %v5660_v50  ;;  %v4890_v12 = vld [vmem:[%s6860_s8 + $0xc0] sm:$0xff]  }
 0x230   : > { %2625 = vmatpush2.bf16.msra.mxu0 %v4845_v44  ;;  %v4386_v15 = vpop.f32.mrf.mxu1  ;;  %v4891_v58 = vld [vmem:[%s6860_s8 + $0x80] sm:$0xff]  }
 0x231   : > { %v4387_v31 = vadd.f32 %v4386_v15, %v4385_v28  ;;  %2626 = vmatprep.subr.bf16.mxu0 %v4850_v8  ;;  %v1774_v55 = vpack.c.bf16 %v1747_v63, %v1744_v9  ;;  %v1700_v16 = vadd.f32 %v4582_v57, %v1603_v32 }
 0x233   : > { %v1606_v59 = vadd.f32 %v4387_v31, %v5660_v50  ;;  %2582 = vmatmul.mubr.bf16.gmra.mxu0 %v1774_v55  ;;  %v1750_v57 = vmax.f32 %v1700_v16, 0.0  ;;  %v4854_v50 = vld [vmem:[%s6858_s6 + $0x128] ss:$16 sps:$4 sm:$0xff]  }
 0x234   : > { %2627 = vmatpush2.bf16.msra.mxu0 %v4848_v18  ;;  %2808 = vmatmul.mubr.bf16.gmra.mxu1 %v1774_v55 }
 0x235   : > { %v1703_v19 = vadd.f32 %v4583_v48, %v1606_v59  ;;  %2628 = vmatprep.subr.bf16.mxu0 %v4853_v61  ;;  %2591 = vmatprep.mubr.bf16.mxu0 %v5029_v0  ;;  %v4876_v48 = vld [vmem:[%s6860_s8 + $0xf8] sm:$0xff]  }
 0x236   : > { %2817 = vmatprep.mubr.bf16.mxu1 %v5029_v0  ;;  %v4857_v0 = vld [vmem:[%s6858_s6 + $0x108] ss:$16 sps:$4 sm:$0xff]   ;;  %4468 = vmatprep.subr.bf16.mxu1 %v4876_v48 }
 0x237   : > { %v1753_v2 = vmax.f32 %v1703_v19, 0.0 }
 0x238   : > { %2629 = vmatpush2.bf16.msra.mxu0 %v4851_v62 }
 0x239   : > { %2630 = vmatprep.subr.bf16.mxu0 %v4856_v4  ;;  %v1777_v36 = vpack.c.bf16 %v1753_v2, %v1750_v57 }
 0x23b   : > { %2592 = vmatmul.mubr.bf16.gmra.mxu0 %v1777_v36 }
 0x23c   : > { %2631 = vmatpush2.bf16.msra.mxu0 %v4854_v50  ;;  %2818 = vmatmul.mubr.bf16.gmra.mxu1 %v1777_v36 }
 0x23d   : > { %2634 = vmatprep.mubr.bf16.mxu0 %v5547_v43  ;;  %2632 = vmatprep.subr.bf16.mxu0 %v4859_v27  ;;  %v4863_v43 = vld [vmem:[%s6860_s8 + $0x30] sm:$0xff]  }
 0x240   : > { %2633 = vmatpush2.bf16.msra.mxu0 %v4857_v0 }
 0x241   : > { %4404 = vmatprep.subr.bf16.mxu0 %v4860_v30 }
 0x243   : > { %2635 = vmatmul.mubr.bf16.vlgmr.msra.gmra.mxu0 %v5552_v45  ;;  %v4866_v45 = vld [vmem:[%s6860_s8 + $0x60] sm:$0xff]  }
 0x244   : > { %2644 = vmatprep.mubr.bf16.mxu0 %v5569_v14  ;;  %4405 = vmatpush3.bf16.msra.mxu0 %v4861_v39  ;;  %v4867_v14 = vld [vmem:[%s6860_s8 + $0x20] sm:$0xff]  }
 0x245   : > { %4406 = vmatprep.subr.bf16.mxu0 %v4862_v5 }
 0x248   : > { %4407 = vmatpush3.bf16.msra.mxu0 %v4863_v43  ;;  %v5955_v43 = vld [vmem:[%s6859_s7] sm:$0xf] }
 0x249   : > { %4408 = vmatprep.subr.bf16.mxu0 %v4864_v20 }
 0x24b   : > { %2645 = vmatmul.mubr.bf16.gmra.mxu0 %v5574_v26  ;;  %v4870_v26 = vld [vmem:[%s6860_s8 + $0x50] sm:$0xff]  }
 0x24c   : > { %2654 = vmatprep.mubr.bf16.mxu0 %v5591_v7  ;;  %4409 = vmatpush3.bf16.msra.mxu0 %v4865_v35  ;;  %v4871_v7 = vld [vmem:[%s6860_s8 + $0x10] sm:$0xff]   ;;  %v5961_v35 = vrot.slane %v5955_v43, %v5198_v23 }
 0x24d   : > { %4410 = vmatprep.subr.bf16.mxu0 %v4866_v45  ;;  %v5965_v45 = vrot.slane %v5955_v43, %v5201_v24 }
 0x250   : > { %4411 = vmatpush3.bf16.msra.mxu0 %v4867_v14 }
 0x251   : > { %4412 = vmatprep.subr.bf16.mxu0 %v4868_v38 }
 0x253   : > { %2655 = vmatmul.mubr.bf16.gmra.mxu0 %v5596_v46  ;;  %v4877_v46 = vld [vmem:[%s6860_s8 + $0xb8] sm:$0xff]  }
 0x254   : > { %2664 = vmatprep.mubr.bf16.mxu0 %v5613_v11  ;;  %4413 = vmatpush3.bf16.msra.mxu0 %v4869_v33  ;;  %v4873_v11 = vld [vmem:[%s6860_s8 + $0x8] sm:$0xff]  }
 0x255   : > { %4414 = vmatprep.subr.bf16.mxu0 %v4870_v26  ;;  %4469 = vmatpush3.bf16.msra.mxu1 %v4877_v46 }
 0x256   : > { %4470 = vmatprep.subr.bf16.mxu1 %v4878_v52 }
 0x258   : > { %4415 = vmatpush3.bf16.msra.mxu0 %v4871_v7 }
 0x259   : > { %4416 = vmatprep.subr.bf16.mxu0 %v4872_v41  ;;  %4471 = vmatpush3.bf16.msra.mxu1 %v4879_v13 }
 0x25b   : > { %2665 = vmatmul.mubr.bf16.gmra.mxu0 %v5618_v29  ;;  %v4880_v29 = vld [vmem:[%s6860_s8 + $0xe8] sm:$0xff]  }
 0x25c   : > { %2674 = vmatprep.mubr.bf16.mxu0 %v5632_v40  ;;  %4417 = vmatpush3.bf16.msra.mxu0 %v4873_v11  ;;  %v4881_v40 = vld [vmem:[%s6860_s8 + $0xa8] sm:$0xff]  }
 0x25d   : > { %4418 = vmatprep.subr.bf16.mxu0 %v4874_v49  ;;  %4472 = vmatprep.subr.bf16.mxu1 %v4880_v29 }
 0x25e   : > { %4473 = vmatpush3.bf16.msra.mxu1 %v4881_v40 }
 0x260   : > { %4419 = vmatpush3.bf16.msra.mxu0 %v4875_v51 }
 0x263   : > { %2675 = vmatmul.mubr.bf16.gmra.mxu0 %v5634_v47  ;;  %v4882_v47 = vld [vmem:[%s6860_s8 + $0xe0] sm:$0xff]  }
 0x264   : > { %2684 = vmatprep.mubr.bf16.mxu0 %v5642_v10  ;;  %v4883_v10 = vld [vmem:[%s6860_s8 + $0xa0] sm:$0xff]   ;;  %4474 = vmatprep.subr.bf16.mxu1 %v4882_v47 }
 0x265   : > { %4475 = vmatpush3.bf16.msra.mxu1 %v4883_v10 }
 0x26b   : > { %2685 = vmatmul.mubr.bf16.gmra.mxu0 %v5644_v17  ;;  %v4884_v17 = vld [vmem:[%s6860_s8 + $0xd8] sm:$0xff]  }
 0x26c   : > { %2694 = vmatprep.mubr.bf16.mxu0 %v5652_v34  ;;  %v4885_v34 = vld [vmem:[%s6860_s8 + $0x98] sm:$0xff]   ;;  %4476 = vmatprep.subr.bf16.mxu1 %v4884_v17  ;;  %v3593_v17 = vld [vmem:[%s5981_s14 + $0x8] sm:$0xff] }
 0x26d   : > { %4477 = vmatpush3.bf16.msra.mxu1 %v4885_v34  ;;  %3612 = vperm.xlu1 %4610, %v3593_v17  }
 0x26e   : > { %4478 = vmatprep.subr.bf16.mxu1 %v4886_v53 }
 0x273   : > { %2695 = vmatmul.mubr.bf16.gmra.mxu0 %v5654_v42  ;;  %v4887_v42 = vld [vmem:[%s6860_s8 + $0x90] sm:$0xff]  }
 0x274   : > { %2704 = vmatprep.mubr.bf16.mxu0 %v5664_v6  ;;  %4479 = vmatpush3.bf16.msra.mxu1 %v4887_v42 }
 0x275   : > { %4480 = vmatprep.subr.bf16.mxu1 %v4888_v56  ;;  %v3594_v56 = vld [vmem:[%s5981_s14 + $0x10] sm:$0xff] }
 0x276   : > { %3615 = vperm.xlu1 %4610, %v3594_v56  }
 0x27b   : > { %2705 = vmatmul.mubr.bf16.gmra.mxu0 %v5666_v37  ;;  %v4889_v37 = vld [vmem:[%s6860_s8 + $0x88] sm:$0xff]  }
 0x27c   : > { %4481 = vmatpush3.bf16.msra.mxu1 %v4889_v37 }
 0x27d   : > { %4482 = vmatprep.subr.bf16.mxu1 %v4890_v12 }
 0x280   : > { %4483 = vmatpush3.bf16.msra.mxu1 %v4891_v58 }
 0x284   : > { %v2410_v6 = vpop.f32.mrf.mxu1 }
 0x285   : > { %v2411_v41 = vadd.f32 %v2410_v6, %v5965_v45 }
 0x286   : > { %v2412_v54 = vpop.f32.mrf.mxu1 }
 0x287   : > { %v2413_v26 = vadd.f32 %v2412_v54, %v5961_v35 }
 0x288   : > { %v2414_v60 = vpop.f32.mrf.mxu1 }
 0x289   : > { %v2415_v7 = vadd.f32 %v2414_v60, %v5965_v45 }
 0x28a   : > { %v2416_v1 = vpop.f32.mrf.mxu1 }
 0x28b   : > { %v2417_v23 = vadd.f32 %v2416_v1, %v5961_v35 }
 0x28c   : > { %v2420_v3 = vpop.f32.mrf.mxu1 }
 0x28d   : > { %v2421_v60 = vadd.f32 %v2420_v3, %v5965_v45 }
 0x28e   : > { %v2422_v44 = vpop.f32.mrf.mxu1 }
 0x28f   : > { %v2423_v42 = vadd.f32 %v2422_v44, %v5961_v35 }
 0x290   : > { %v2424_v8 = vpop.f32.mrf.mxu1 }
 0x291   : > { %v2425_v6 = vadd.f32 %v2424_v8, %v5965_v45  ;;  %v3595_v8 = vld [vmem:[%s5981_s14 + $0x18] sm:$0xff] }
 0x292   : > { %v2426_v28 = vpop.f32.mrf.mxu1  ;;  %3618 = vperm.xlu1 %4610, %v3595_v8  }
 0x293   : > { %v2427_v58 = vadd.f32 %v2426_v28, %v5961_v35 }
 0x294   : > { %v5908_v9 = vpop.f32.mrf.mxu1 }
 0x296   : > { %v5910_v63 = vpop.f32.mrf.mxu1 }
 0x297   : > { %v2433_v28 = vadd.f32 %v5910_v63, %v5961_v35 }
 0x298   : > { %v5912_v32 = vpop.f32.mrf.mxu1 }
 0x29a   : > { %v5914_v15 = vpop.f32.mrf.mxu1 }
 0x29b   : > { %v2437_v17 = vadd.f32 %v5914_v15, %v5961_v35 }
 0x29c   : > { %v5916_v18 = vpop.f32.mrf.mxu1 }
 0x29e   : > { %v5918_v31 = vpop.f32.mrf.mxu1 }
 0x2a0   : > { %v5920_v55 = vpop.f32.mrf.mxu1 }
 0x2a1   : > { %v2445_v15 = vadd.f32 %v5920_v55, %v5965_v45 }
 0x2a2   : > { %v5922_v61 = vpop.f32.mrf.mxu1 }
 0x2a3   : > { %v2447_v8 = vadd.f32 %v5922_v61, %v5961_v35 }
 0x2a4   : > { %v5924_v16 = vpop.f32.mrf.mxu1 }
 0x2a6   : > { %v5926_v59 = vpop.f32.mrf.mxu1 }
 0x2a8   : > { %v5928_v62 = vpop.f32.mrf.mxu1 }
 0x2a9   : > { %v2455_v61 = vadd.f32 %v5928_v62, %v5965_v45 }
 0x2aa   : > { %v5930_v19 = vpop.f32.mrf.mxu1 }
 0x2ac   : > { %v5932_v4 = vpop.f32.mrf.mxu1 }
 0x2ae   : > { %v5934_v57 = vpop.f32.mrf.mxu1 }
 0x2b0   : > { %v5936_v2 = vpop.f32.mrf.mxu1 }
 0x2b2   : > { %v5938_v50 = vpop.f32.mrf.mxu1 }
 0x2b4   : > { %v5940_v36 = vpop.f32.mrf.mxu1 }
 0x2b6   : > { %v5942_v27 = vpop.f32.mrf.mxu1 }
 0x2b8   : > { %v5944_v0 = vpop.f32.mrf.mxu1 }
 0x2ba   : > { %v5946_v30 = vpop.f32.mrf.mxu1 }
 0x2bc   : > { %v5948_v39 = vpop.f32.mrf.mxu1 }
 0x2be   : > { %v5950_v5 = vpop.f32.mrf.mxu1 }
 0x2c0   : > { %v5957_v20 = vpop.f32.mrf.mxu1 }
 0x2c2   : > { %v5967_v14 = vpop.f32.mrf.mxu1 }
 0x2c3   : > { %v2523_v38 = vpop.f32.mrf.mxu0 }
 0x2c4   : > { %v5972_v48 = vpop.f32.mrf.mxu1  ;;  %v2524_v24 = vadd.f32 %v2523_v38, %v2411_v41 }
 0x2c5   : > { %v2525_v33 = vpop.f32.mrf.mxu0 }
 0x2c6   : > { %v2526_v11 = vadd.f32 %v2525_v33, %v2413_v26  ;;  %v5975_v13 = vpop.f32.mrf.mxu1  ;;  %v2828_v34 = vmax.f32 %v2524_v24, 0.0 }
 0x2c7   : > { %v2527_v46 = vpop.f32.mrf.mxu0 }
 0x2c8   : > { %v2528_v49 = vadd.f32 %v2527_v46, %v2415_v7  ;;  %v2829_v47 = vmax.f32 %v2526_v11, 0.0  ;;  %v5988_v1 = vpop.f32.mrf.mxu1 }
 0x2c9   : > { %v2529_v51 = vpop.f32.mrf.mxu0 }
 0x2ca   : > { %v2530_v52 = vadd.f32 %v2529_v51, %v2417_v23  ;;  %v2832_v29 = vmax.f32 %v2528_v49, 0.0  ;;  %v5992_v41 = vpop.f32.mrf.mxu1  ;;  %v2435_v51 = vadd.f32 %v5912_v32, %v5965_v45 }
 0x2cb   : > { %v2533_v40 = vpop.f32.mrf.mxu0 }
 0x2cc   : > { %v2833_v10 = vmax.f32 %v2530_v52, 0.0  ;;  %v2892_v37 = vpack.c.bf16 %v2832_v29, %v2828_v34  ;;  %v2534_v26 = vadd.f32 %v2533_v40, %v2421_v60  ;;  %v2431_v29 = vadd.f32 %v5908_v9, %v5965_v45  ;;  %v6000_v40 = vpop.f32.mrf.mxu1 }
 0x2cd   : > { %v2535_v53 = vpop.f32.mrf.mxu0 }
 0x2ce   : > { %v2893_v54 = vpack.c.bf16 %v2833_v10, %v2829_v47  ;;  %v2536_v38 = vadd.f32 %v2535_v53, %v2423_v42  ;;  %v2836_v49 = vmax.f32 %v2534_v26, 0.0 }
 0x2cf   : > { %v2537_v12 = vpop.f32.mrf.mxu0 }
 0x2d0   : > { %v2538_v33 = vadd.f32 %v2537_v12, %v2425_v6  ;;  %3219 = vmatprep.mubr.bf16.mxu0 %v2893_v54  ;;  %v2837_v3 = vmax.f32 %v2536_v38, 0.0  ;;  %v6004_v54 = vpop.f32.mrf.mxu1 }
 0x2d1   : > { %v2539_v7 = vpop.f32.mrf.mxu0  ;;  %3220 = vmatmul.mubr.bf16.vlgmr.msra.gmra.mxu0 %v2892_v37 }
 0x2d2   : > { %v2540_v44 = vadd.f32 %v2539_v7, %v2427_v58  ;;  %v2840_v46 = vmax.f32 %v2538_v33, 0.0  ;;  %v2443_v58 = vadd.f32 %v5918_v31, %v5961_v35  ;;  %v2441_v33 = vadd.f32 %v5916_v18, %v5965_v45  ;;  %v6012_v26 = vpop.f32.mrf.mxu1 }
 0x2d3   : > { %v2543_v23 = vpop.f32.mrf.mxu0 }
 0x2d4   : > { %v2841_v11 = vmax.f32 %v2540_v44, 0.0  ;;  %v2896_v47 = vpack.c.bf16 %v2840_v46, %v2836_v49  ;;  %v2544_v42 = vadd.f32 %v2543_v23, %v2431_v29  ;;  %v6016_v49 = vpop.f32.mrf.mxu1  ;;  %v2453_v29 = vadd.f32 %v5926_v59, %v5961_v35 }
 0x2d5   : > { %v2545_v24 = vpop.f32.mrf.mxu0 }
 0x2d6   : > { %v2897_v52 = vpack.c.bf16 %v2841_v11, %v2837_v3  ;;  %v2546_v34 = vadd.f32 %v2545_v24, %v2433_v28  ;;  %v2844_v37 = vmax.f32 %v2544_v42, 0.0  ;;  %v2457_v42 = vadd.f32 %v5930_v19, %v5961_v35 }
 0x2d7   : > { %v2547_v10 = vpop.f32.mrf.mxu0  ;;  %v2465_v19 = vadd.f32 %v5936_v2, %v5965_v45 }
 0x2d8   : > { %v2548_v53 = vadd.f32 %v2547_v10, %v2435_v51  ;;  %3227 = vmatprep.mubr.bf16.mxu0 %v2897_v52  ;;  %v2845_v60 = vmax.f32 %v2546_v34, 0.0  ;;  %v2451_v10 = vadd.f32 %v5924_v16, %v5965_v45 }
 0x2d9   : > { %v2549_v6 = vpop.f32.mrf.mxu0  ;;  %3228 = vmatmul.mubr.bf16.gmra.mxu0 %v2896_v47 }
 0x2da   : > { %v2550_v63 = vadd.f32 %v2549_v6, %v2437_v17  ;;  %v2848_v32 = vmax.f32 %v2548_v53, 0.0  ;;  %v6024_v17 = vpop.f32.mrf.mxu1 }
 0x2db   : > { %v2553_v56 = vpop.f32.mrf.mxu0 }
 0x2dc   : > { %v2849_v9 = vmax.f32 %v2550_v63, 0.0  ;;  %v2900_v7 = vpack.c.bf16 %v2848_v32, %v2844_v37  ;;  %v2554_v3 = vadd.f32 %v2553_v56, %v2441_v33  ;;  %v2461_v33 = vadd.f32 %v5932_v4, %v5965_v45 }
 0x2dd   : > { %v2555_v12 = vpop.f32.mrf.mxu0 }
 0x2de   : > { %v2901_v38 = vpack.c.bf16 %v2849_v9, %v2845_v60  ;;  %v2556_v46 = vadd.f32 %v2555_v12, %v2443_v58  ;;  %v2852_v51 = vmax.f32 %v2554_v3, 0.0  ;;  %v6028_v60 = vpop.f32.mrf.mxu1 }
 0x2df   : > { %v2557_v44 = vpop.f32.mrf.mxu0 }
 0x2e0   : > { %v2558_v23 = vadd.f32 %v2557_v44, %v2445_v15  ;;  %3235 = vmatprep.mubr.bf16.mxu0 %v2901_v38  ;;  %v2853_v28 = vmax.f32 %v2556_v46, 0.0  ;;  %v2463_v15 = vadd.f32 %v5934_v57, %v5961_v35  ;;  %v2467_v46 = vadd.f32 %v5938_v50, %v5961_v35 }
 0x2e1   : > { %v2559_v11 = vpop.f32.mrf.mxu0  ;;  %3236 = vmatmul.mubr.bf16.gmra.mxu0 %v2900_v7  ;;  %v6036_v7 = vpop.f32.mrf.mxu1  ;;  %v2475_v50 = vadd.f32 %v5944_v0, %v5965_v45 }
 0x2e2   : > { %v2560_v31 = vadd.f32 %v2559_v11, %v2447_v8  ;;  %v2856_v55 = vmax.f32 %v2558_v23, 0.0 }
 0x2e3   : > { %v2563_v24 = vpop.f32.mrf.mxu0 }
 0x2e4   : > { %v2857_v18 = vmax.f32 %v2560_v31, 0.0  ;;  %v2904_v34 = vpack.c.bf16 %v2856_v55, %v2852_v51  ;;  %v2564_v32 = vadd.f32 %v2563_v24, %v2451_v10  ;;  %v6040_v55 = vpop.f32.mrf.mxu1 }
 0x2e5   : > { %v2565_v52 = vpop.f32.mrf.mxu0 }
 0x2e6   : > { %v2905_v47 = vpack.c.bf16 %v2857_v18, %v2853_v28  ;;  %v2566_v6 = vadd.f32 %v2565_v52, %v2453_v29  ;;  %v2860_v12 = vmax.f32 %v2564_v32, 0.0  ;;  %v2473_v52 = vadd.f32 %v5942_v27, %v5961_v35 }
 0x2e7   : > { %v2567_v53 = vpop.f32.mrf.mxu0 }
 0x2e8   : > { %v2568_v63 = vadd.f32 %v2567_v53, %v2455_v61  ;;  %3243 = vmatprep.mubr.bf16.mxu0 %v2905_v47  ;;  %v2861_v37 = vmax.f32 %v2566_v6, 0.0  ;;  %v2471_v61 = vadd.f32 %v5940_v36, %v5965_v45  ;;  %v6048_v47 = vpop.f32.mrf.mxu1  ;;  %v2477_v53 = vadd.f32 %v5946_v30, %v5961_v35 }
 0x2e9   : > { %v2569_v56 = vpop.f32.mrf.mxu0  ;;  %3244 = vmatmul.mubr.bf16.gmra.mxu0 %v2904_v34  ;;  %v2485_v30 = vadd.f32 %v5957_v20, %v5965_v45 }
 0x2ea   : > { %v2570_v59 = vadd.f32 %v2569_v56, %v2457_v42  ;;  %v2864_v62 = vmax.f32 %v2568_v63, 0.0  ;;  %v6052_v56 = vpop.f32.mrf.mxu1 }
 0x2eb   : > { %v2573_v9 = vpop.f32.mrf.mxu0 }
 0x2ec   : > { %v2865_v16 = vmax.f32 %v2570_v59, 0.0  ;;  %v2908_v44 = vpack.c.bf16 %v2864_v62, %v2860_v12  ;;  %v2574_v11 = vadd.f32 %v2573_v9, %v2461_v33 }
 0x2ed   : > { %v2575_v58 = vpop.f32.mrf.mxu0 }
 0x2ee   : > { %v2909_v38 = vpack.c.bf16 %v2865_v16, %v2861_v37  ;;  %v2576_v23 = vadd.f32 %v2575_v58, %v2463_v15  ;;  %v2868_v18 = vmax.f32 %v2574_v11, 0.0  ;;  %v2483_v16 = vadd.f32 %v5950_v5, %v5961_v35 }
 0x2ef   : > { %v2577_v8 = vpop.f32.mrf.mxu0  ;;  %v1890_v58 = vsub.s32 3, %v5195_v22  ;;  %v2481_v15 = vadd.f32 %v5948_v39, %v5965_v45  ;;  %v6072_v45 = vrot.slane %v5955_v43, %v5204_v25 }
 0x2f0   : > { %v2578_v3 = vadd.f32 %v2577_v8, %v2465_v19  ;;  %3251 = vmatprep.mubr.bf16.mxu0 %v2909_v38  ;;  %v2869_v28 = vmax.f32 %v2576_v23, 0.0  ;;  %v6061_v19 = vpop.f32.mrf.mxu1 }
 0x2f1   : > { %v2579_v31 = vpop.f32.mrf.mxu0  ;;  %3252 = vmatmul.mubr.bf16.gmra.mxu0 %v2908_v44  ;;  %v2487_v44 = vadd.f32 %v5967_v14, %v5961_v35 }
 0x2f2   : > { %v2580_v57 = vadd.f32 %v2579_v31, %v2467_v46  ;;  %v2872_v2 = vmax.f32 %v2578_v3, 0.0  ;;  %v6066_v3 = vrot.slane %v5955_v43, %v1890_v58  ;;  %v6068_v22 = vpop.f32.mrf.mxu1 }
 0x2f3   : > { %v2583_v24 = vpop.f32.mrf.mxu0 }
 0x2f4   : > { %v2873_v4 = vmax.f32 %v2580_v57, 0.0  ;;  %v2912_v10 = vpack.c.bf16 %v2872_v2, %v2868_v18  ;;  %v2584_v63 = vadd.f32 %v2583_v24, %v2471_v61 }
 0x2f5   : > { %v2585_v51 = vpop.f32.mrf.mxu0 }
 0x2f6   : > { %v2913_v29 = vpack.c.bf16 %v2873_v4, %v2869_v28  ;;  %v2586_v42 = vadd.f32 %v2585_v51, %v2473_v52  ;;  %v2876_v9 = vmax.f32 %v2584_v63, 0.0  ;;  %v6075_v28 = vpop.f32.mrf.mxu1 }
 0x2f7   : > { %v2587_v34 = vpop.f32.mrf.mxu0 }
 0x2f8   : > { %v2588_v6 = vadd.f32 %v2587_v34, %v2475_v50  ;;  %3259 = vmatprep.mubr.bf16.mxu0 %v2913_v29  ;;  %v2877_v62 = vmax.f32 %v2586_v42, 0.0  ;;  %v6082_v61 = vpop.f32.mrf.mxu1 }
 0x2f9   : > { %v2589_v32 = vpop.f32.mrf.mxu0  ;;  %3260 = vmatmul.mubr.bf16.gmra.mxu0 %v2912_v10 }
 0x2fa   : > { %v2590_v27 = vadd.f32 %v2589_v32, %v2477_v53  ;;  %v2880_v0 = vmax.f32 %v2588_v6, 0.0 }
 0x2fb   : > { %v2593_v59 = vpop.f32.mrf.mxu0 }
 0x2fc   : > { %v2881_v36 = vmax.f32 %v2590_v27, 0.0  ;;  %v2916_v38 = vpack.c.bf16 %v2880_v0, %v2876_v9  ;;  %v2594_v5 = vadd.f32 %v2593_v59, %v2481_v15  ;;  %v6087_v0 = vpop.f32.mrf.mxu1 }
 0x2fd   : > { %v2595_v37 = vpop.f32.mrf.mxu0 }
 0x2fe   : > { %v2917_v12 = vpack.c.bf16 %v2881_v36, %v2877_v62  ;;  %v2596_v8 = vadd.f32 %v2595_v37, %v2483_v16  ;;  %v2884_v14 = vmax.f32 %v2594_v5, 0.0 }
 0x2ff   : > { %v2597_v33 = vpop.f32.mrf.mxu0 }
 0x300   : > { %v2598_v46 = vadd.f32 %v2597_v33, %v2485_v30  ;;  %3267 = vmatprep.mubr.bf16.mxu0 %v2917_v12  ;;  %v2885_v31 = vmax.f32 %v2596_v8, 0.0  ;;  %v6094_v30 = vpop.f32.mrf.mxu1 }
 0x301   : > { %v2599_v23 = vpop.f32.mrf.mxu0  ;;  %3268 = vmatmul.mubr.bf16.gmra.mxu0 %v2916_v38 }
 0x302   : > { %v2600_v20 = vadd.f32 %v2599_v23, %v2487_v44  ;;  %v2888_v39 = vmax.f32 %v2598_v46, 0.0  ;;  %v3596_v44 = vld [vmem:[%s5981_s14 + $0x20] sm:$0xff] }
 0x303   : > { %v2636_v11 = vpop.f32.mrf.mxu0  ;;  %3621 = vperm.xlu1 %4610, %v3596_v44  }
 0x304   : > { %v2889_v35 = vmax.f32 %v2600_v20, 0.0  ;;  %v2920_v4 = vpack.c.bf16 %v2888_v39, %v2884_v14  ;;  %v2637_v18 = vadd.f32 %v2636_v11, %v6072_v45 }
 0x305   : > { %v2638_v57 = vpop.f32.mrf.mxu0 }
 0x306   : > { %v2921_v2 = vpack.c.bf16 %v2889_v35, %v2885_v31  ;;  %v2639_v24 = vadd.f32 %v2638_v57, %v6066_v3  ;;  %v2750_v10 = vadd.f32 %v5972_v48, %v2637_v18  ;;  %v3597_v31 = vld [vmem:[%s5981_s14 + $0x28] sm:$0xff] }
 0x307   : > { %v2640_v51 = vpop.f32.mrf.mxu0  ;;  %3624 = vperm.xlu1 %4610, %v3597_v31  }
 0x308   : > { %v2641_v52 = vadd.f32 %v2640_v51, %v6072_v45  ;;  %3275 = vmatprep.mubr.bf16.mxu0 %v2921_v2  ;;  %v2752_v25 = vadd.f32 %v5975_v13, %v2639_v24  ;;  %v2830_v13 = vmax.f32 %v2750_v10, 0.0 }
 0x309   : > { %v2642_v50 = vpop.f32.mrf.mxu0  ;;  %3276 = vmatmul.mubr.bf16.gmra.mxu0 %v2920_v4 }
 0x30a   : > { %v2754_v43 = vadd.f32 %v5988_v1, %v2641_v52  ;;  %v2643_v29 = vadd.f32 %v2642_v50, %v6066_v3  ;;  %v2831_v63 = vmax.f32 %v2752_v25, 0.0  ;;  %v3598_v50 = vld [vmem:[%s5981_s14 + $0x30] sm:$0xff] }
 0x30b   : > { %v2646_v34 = vpop.f32.mrf.mxu0  ;;  %3627 = vperm.xlu1 %4610, %v3598_v50  }
 0x30c   : > { %v2756_v53 = vadd.f32 %v5992_v41, %v2643_v29  ;;  %v2834_v42 = vmax.f32 %v2754_v43, 0.0  ;;  %v2647_v1 = vadd.f32 %v2646_v34, %v6072_v45 }
 0x30d   : > { %v2648_v6 = vpop.f32.mrf.mxu0 }
 0x30e   : > { %v2835_v32 = vmax.f32 %v2756_v53, 0.0  ;;  %v2649_v27 = vadd.f32 %v2648_v6, %v6066_v3  ;;  %v2894_v48 = vpack.c.bf16 %v2834_v42, %v2830_v13  ;;  %v2760_v12 = vadd.f32 %v6000_v40, %v2647_v1  ;;  %v3599_v6 = vld [vmem:[%s5981_s14 + $0x38] sm:$0xff] }
 0x30f   : > { %v2650_v59 = vpop.f32.mrf.mxu0  ;;  %3630 = vperm.xlu1 %4610, %v3599_v6  }
 0x310   : > { %v2651_v62 = vadd.f32 %v2650_v59, %v6072_v45  ;;  %v2895_v36 = vpack.c.bf16 %v2835_v32, %v2831_v63  ;;  %v2762_v41 = vadd.f32 %v6004_v54, %v2649_v27  ;;  %v2838_v5 = vmax.f32 %v2760_v12, 0.0 }
 0x311   : > { %v2652_v9 = vpop.f32.mrf.mxu0 }
 0x312   : > { %v2764_v37 = vadd.f32 %v6012_v26, %v2651_v62  ;;  %v2653_v16 = vadd.f32 %v2652_v9, %v6066_v3  ;;  %3316 = vmatprep.mubr.bf16.mxu1 %v2895_v36  ;;  %v2839_v8 = vmax.f32 %v2762_v41, 0.0  ;;  %v6100_v26 = vpop.f32.mrf.mxu1  ;;  %v3600_v9 = vld [vmem:[%s5981_s14 + $0x40] sm:$0xff] }
 0x313   : > { %v2656_v58 = vpop.f32.mrf.mxu0  ;;  %3317 = vmatmul.mubr.bf16.vlgmr.msra.gmra.mxu1 %v2894_v48  ;;  %3633 = vperm.xlu1 %4610, %v3600_v9  }
 0x314   : > { %v2766_v15 = vadd.f32 %v6016_v49, %v2653_v16  ;;  %v2842_v38 = vmax.f32 %v2764_v37, 0.0  ;;  %v2657_v23 = vadd.f32 %v2656_v58, %v6072_v45  ;;  %v6108_v2 = vpop.f32.mrf.mxu1 }
 0x315   : > { %v2658_v33 = vpop.f32.mrf.mxu0 }
 0x316   : > { %v2843_v46 = vmax.f32 %v2766_v15, 0.0  ;;  %v2659_v54 = vadd.f32 %v2658_v33, %v6066_v3  ;;  %v2898_v49 = vpack.c.bf16 %v2842_v38, %v2838_v5  ;;  %v2770_v24 = vadd.f32 %v6024_v17, %v2657_v23  ;;  %v2803_v43 = vpop.f32.mrf.mxu1  ;;  %v3602_v33 = vld [vmem:[%s5981_s14 + $0x50] sm:$0xff] }
 0x317   : > { %v2660_v20 = vpop.f32.mrf.mxu0  ;;  %3639 = vperm.xlu1 %4610, %v3602_v33  }
 0x318   : > { %v2661_v40 = vadd.f32 %v2660_v20, %v6072_v45  ;;  %v2899_v39 = vpack.c.bf16 %v2843_v46, %v2839_v8  ;;  %v2772_v35 = vadd.f32 %v6028_v60, %v2659_v54  ;;  %v2846_v29 = vmax.f32 %v2770_v24, 0.0  ;;  %v2805_v13 = vpop.f32.mrf.mxu1 }
 0x319   : > { %v2662_v11 = vpop.f32.mrf.mxu0 }
 0x31a   : > { %v2774_v14 = vadd.f32 %v6036_v7, %v2661_v40  ;;  %v2663_v57 = vadd.f32 %v2662_v11, %v6066_v3  ;;  %3324 = vmatprep.mubr.bf16.mxu1 %v2899_v39  ;;  %v2847_v25 = vmax.f32 %v2772_v35, 0.0 }
 0x31b   : > { %v2666_v4 = vpop.f32.mrf.mxu0  ;;  %3325 = vmatmul.mubr.bf16.gmra.mxu1 %v2898_v49  ;;  %v3604_v49 = vld [vmem:[%s5981_s14 + $0x60] sm:$0xff] }
 0x31c   : > { %v2776_v18 = vadd.f32 %v6040_v55, %v2663_v57  ;;  %v2850_v51 = vmax.f32 %v2774_v14, 0.0  ;;  %v2667_v10 = vadd.f32 %v2666_v4, %v6072_v45  ;;  %3645 = vperm.xlu1 %4610, %v3604_v49  }
 0x31d   : > { %v2668_v52 = vpop.f32.mrf.mxu0 }
 0x31e   : > { %v2851_v60 = vmax.f32 %v2776_v18, 0.0  ;;  %v2669_v7 = vadd.f32 %v2668_v52, %v6066_v3  ;;  %v2902_v42 = vpack.c.bf16 %v2850_v51, %v2846_v29  ;;  %v2780_v1 = vadd.f32 %v6048_v47, %v2667_v10 }
 0x31f   : > { %v2670_v34 = vpop.f32.mrf.mxu0 }
 0x320   : > { %v2671_v17 = vadd.f32 %v2670_v34, %v6072_v45  ;;  %v2903_v53 = vpack.c.bf16 %v2851_v60, %v2847_v25  ;;  %v2782_v63 = vadd.f32 %v6052_v56, %v2669_v7  ;;  %v2854_v16 = vmax.f32 %v2780_v1, 0.0 }
 0x321   : > { %v2672_v55 = vpop.f32.mrf.mxu0 }
 0x322   : > { %v2784_v32 = vadd.f32 %v6061_v19, %v2671_v17  ;;  %v2673_v27 = vadd.f32 %v2672_v55, %v6066_v3  ;;  %3332 = vmatprep.mubr.bf16.mxu1 %v2903_v53  ;;  %v2855_v41 = vmax.f32 %v2782_v63, 0.0  ;;  %v6124_v19 = vpop.f32.mrf.mxu1 }
 0x323   : > { %v2676_v59 = vpop.f32.mrf.mxu0  ;;  %3333 = vmatmul.mubr.bf16.gmra.mxu1 %v2902_v42 }
 0x324   : > { %v2786_v62 = vadd.f32 %v6068_v22, %v2673_v27  ;;  %v2858_v36 = vmax.f32 %v2784_v32, 0.0  ;;  %v2677_v12 = vadd.f32 %v2676_v59, %v6072_v45  ;;  %v2811_v54 = vpop.f32.mrf.mxu1 }
 0x325   : > { %v2678_v48 = vpop.f32.mrf.mxu0 }
 0x326   : > { %v2859_v37 = vmax.f32 %v2786_v62, 0.0  ;;  %v2679_v56 = vadd.f32 %v2678_v48, %v6066_v3  ;;  %v2906_v22 = vpack.c.bf16 %v2858_v36, %v2854_v16  ;;  %v2790_v5 = vadd.f32 %v6075_v28, %v2677_v12 }
 0x327   : > { %v2680_v58 = vpop.f32.mrf.mxu0 }
 0x328   : > { %v2681_v47 = vadd.f32 %v2680_v58, %v6072_v45  ;;  %v2907_v15 = vpack.c.bf16 %v2859_v37, %v2855_v41  ;;  %v2792_v44 = vadd.f32 %v6082_v61, %v2679_v56  ;;  %v2862_v35 = vmax.f32 %v2790_v5, 0.0 }
 0x329   : > { %v2682_v38 = vpop.f32.mrf.mxu0 }
 0x32a   : > { %v2794_v8 = vadd.f32 %v6087_v0, %v2681_v47  ;;  %v2683_v46 = vadd.f32 %v2682_v38, %v6066_v3  ;;  %3340 = vmatprep.mubr.bf16.mxu1 %v2907_v15  ;;  %v2863_v11 = vmax.f32 %v2792_v44, 0.0  ;;  %v2813_v0 = vpop.f32.mrf.mxu1 }
 0x32b   : > { %v2686_v23 = vpop.f32.mrf.mxu0  ;;  %3341 = vmatmul.mubr.bf16.gmra.mxu1 %v2906_v22 }
 0x32c   : > { %v2796_v20 = vadd.f32 %v6094_v30, %v2683_v46  ;;  %v2866_v40 = vmax.f32 %v2794_v8, 0.0  ;;  %v2687_v14 = vadd.f32 %v2686_v23, %v6072_v45  ;;  %v3606_v30 = vld [vmem:[%s5981_s14 + $0x70] sm:$0xff]  ;;  %v2815_v25 = vpop.f32.mrf.mxu1 }
 0x32d   : > { %v2688_v39 = vpop.f32.mrf.mxu0  ;;  %3651 = vperm.xlu1 %4610, %v3606_v30  }
 0x32e   : > { %v2867_v31 = vmax.f32 %v2796_v20, 0.0  ;;  %v2689_v61 = vadd.f32 %v2688_v39, %v6066_v3  ;;  %v2910_v4 = vpack.c.bf16 %v2866_v40, %v2862_v35  ;;  %v2800_v60 = vadd.f32 %v6100_v26, %v2687_v14  ;;  %v2819_v55 = vpop.f32.mrf.mxu1  ;;  %v3592_v39 = vld [vmem:[%s5981_s14] sm:$0xff]  ;;  %v3605_v35 = vld [vmem:[%s5981_s14 + $0x68] sm:$0xff]  ;;  %v3607_v14 = vld [vmem:[%s5981_s14 + $0x78] sm:$0xff] }
 0x32f   : > { %v2690_v57 = vpop.f32.mrf.mxu0  ;;  %3609 = vperm.xlu0 %4609, %v3592_v39  }
 0x330   : > { %v2691_v28 = vadd.f32 %v2690_v57, %v6072_v45  ;;  %v2911_v24 = vpack.c.bf16 %v2867_v31, %v2863_v11  ;;  %v2802_v51 = vadd.f32 %v6108_v2, %v2689_v61  ;;  %v2870_v6 = vmax.f32 %v2800_v60, 0.0  ;;  %v2821_v62 = vpop.f32.mrf.mxu1 }
 0x331   : > { %v2692_v18 = vpop.f32.mrf.mxu0  ;;  %v5030_v57 = vmov 8   ;;  %v6173_v60 = vand.u32 127, %v433_v21 }
 0x332   : > { %v2804_v52 = vadd.f32 %v2803_v43, %v2691_v28  ;;  %v2693_v50 = vadd.f32 %v2692_v18, %v6066_v3  ;;  %3348 = vmatprep.mubr.bf16.mxu1 %v2911_v24  ;;  %v2871_v17 = vmax.f32 %v2802_v51, 0.0  ;;  %v2823_v58 = vpop.f32.mrf.mxu1  ;;  %4612 = vset.pattern.permute.xlu1 %v5030_v57  ;;  %v6156_v28 = vpop.permute.xlu1 %3612 }
 0x333   : > { %v2696_v7 = vpop.f32.mrf.mxu0  ;;  %3349 = vmatmul.mubr.bf16.gmra.mxu1 %v2910_v4  ;;  %vm3383_vm10 = vcmp.lt.s32.totalorder %v6173_v60, 8  ;;  %vm3657_vm12 = vcmp.eq.s32.totalorder %v6173_v60, %v6156_v28 }
 0x334   : > { %v2806_v29 = vadd.f32 %v2805_v13, %v2693_v50  ;;  %v2874_v10 = vmax.f32 %v2804_v52, 0.0  ;;  %v2697_v2 = vadd.f32 %v2696_v7, %v6072_v45  ;;  %v2825_v5 = vpop.f32.mrf.mxu1 }
 0x335   : > { %v2698_v34 = vpop.f32.mrf.mxu0 }
 0x336   : > { %v2875_v53 = vmax.f32 %v2806_v29, 0.0  ;;  %v2699_v42 = vadd.f32 %v2698_v34, %v6066_v3  ;;  %v2914_v27 = vpack.c.bf16 %v2874_v10, %v2870_v6  ;;  %v2810_v36 = vadd.f32 %v6124_v19, %v2697_v2  ;;  %v6158_v24 = vpop.permute.xlu1 %3615 }
 0x337   : > { %v2700_v43 = vpop.f32.mrf.mxu0  ;;  %v6863_v34 = vmov 0.0   ;;  %vm3658_vm13 = vcmp.eq.s32.totalorder %v6173_v60, %v6158_v24 }
 0x338   : > { %v2701_v63 = vadd.f32 %v2700_v43, %v6072_v45  ;;  %v2915_v32 = vpack.c.bf16 %v2875_v53, %v2871_v17  ;;  %v2812_v26 = vadd.f32 %v2811_v54, %v2699_v42  ;;  %v2878_v47 = vmax.f32 %v2810_v36, 0.0 }
 0x339   : > { %v2702_v1 = vpop.f32.mrf.mxu0 }
 0x33a   : > { %v2814_v59 = vadd.f32 %v2813_v0, %v2701_v63  ;;  %v2703_v13 = vadd.f32 %v2702_v1, %v6066_v3  ;;  %3356 = vmatprep.mubr.bf16.mxu1 %v2915_v32  ;;  %v2879_v56 = vmax.f32 %v2812_v26, 0.0  ;;  %v3601_v0 = vld [vmem:[%s5981_s14 + $0x48] sm:$0xff]  ;;  %v6160_v4 = vpop.permute.xlu1 %3618 }
 0x33b   : > { %v2706_v48 = vpop.f32.mrf.mxu0  ;;  %3357 = vmatmul.mubr.bf16.gmra.mxu1 %v2914_v27  ;;  %3636 = vperm.xlu0 %4609, %v3601_v0   ;;  %vm3659_vm14 = vcmp.eq.s32.totalorder %v6173_v60, %v6160_v4 }
 0x33c   : > { %v2816_v9 = vadd.f32 %v2815_v25, %v2703_v13  ;;  %v2882_v41 = vmax.f32 %v2814_v59, 0.0  ;;  %v2707_v15 = vadd.f32 %v2706_v48, %v6072_v45  ;;  %v6206_v13 = vld [vmem:[%s6861_s9] ss:$0 sm:$0xff] }
 0x33d   : > { %v2708_v37 = vpop.f32.mrf.mxu0 }
 0x33e   : > { %v2883_v16 = vmax.f32 %v2816_v9, 0.0  ;;  %v2709_v12 = vadd.f32 %v2708_v37, %v6066_v3  ;;  %v2918_v44 = vpack.c.bf16 %v2882_v41, %v2878_v47  ;;  %v2820_v23 = vadd.f32 %v2819_v55, %v2707_v15 }
 0x33f   : > { %v2710_v22 = vpop.f32.mrf.mxu0 }
 0x340   : > { %v2711_v38 = vadd.f32 %v2710_v22, %v6072_v45  ;;  %v2919_v33 = vpack.c.bf16 %v2883_v16, %v2879_v56  ;;  %v2822_v8 = vadd.f32 %v2821_v62, %v2709_v12  ;;  %v2886_v11 = vmax.f32 %v2820_v23, 0.0 }
 0x341   : > { %v2712_v19 = vpop.f32.mrf.mxu0 }
 0x342   : > { %v2824_v46 = vadd.f32 %v2823_v58, %v2711_v38  ;;  %v2713_v54 = vadd.f32 %v2712_v19, %v6066_v3  ;;  %3364 = vmatprep.mubr.bf16.mxu1 %v2919_v33  ;;  %v2887_v49 = vmax.f32 %v2822_v8, 0.0  ;;  %v3603_v3 = vld [vmem:[%s5981_s14 + $0x58] sm:$0xff] }
 0x343   : > { %3365 = vmatmul.mubr.bf16.gmra.mxu1 %v2918_v44  ;;  %3642 = vperm.xlu0 %4609, %v3603_v3  }
 0x344   : > { %v2826_v20 = vadd.f32 %v2825_v5, %v2713_v54  ;;  %v2890_v40 = vmax.f32 %v2824_v46, 0.0 }
 0x346   : > { %v2891_v45 = vmax.f32 %v2826_v20, 0.0  ;;  %v2922_v61 = vpack.c.bf16 %v2890_v40, %v2886_v11 }
 0x347   : > { %3648 = vperm.xlu0 %4609, %v3605_v35  }
 0x348   : > { %v2923_v31 = vpack.c.bf16 %v2891_v45, %v2887_v49 }
 0x34a   : > { %3372 = vmatprep.mubr.bf16.mxu1 %v2923_v31 }
 0x34b   : > { %3373 = vmatmul.mubr.bf16.gmra.mxu1 %v2922_v61  ;;  %3654 = vperm.xlu0 %4609, %v3607_v14  }
 0x34f   : > { %4611 = vset.pattern.permute.xlu0 %v5030_v57 }
 0x37e   : > { %v6164_v30 = vpop.permute.xlu1 %3621 }
 0x37f   : > { %vm3660_vm15 = vcmp.eq.s32.totalorder %v6173_v60, %v6164_v30 }
 0x382   : > { %v6168_v50 = vpop.permute.xlu1 %3624 }
 0x383   : > { %vm3661_vm0 = vcmp.eq.s32.totalorder %v6173_v60, %v6168_v50 }
 0x386   : > { %v3628_v29 = vpop.permute.xlu1 %3627 }
 0x387   : > { %vm3662_vm2 = vcmp.eq.s32.totalorder %v6173_v60, %v3628_v29 }
 0x388   : > { %v6181_v17 = vsel %vm3662_vm2, 1.0, %v6863_v34  ;;  %vm3832_vm2 = vcmp.eq.s32.totalorder %v6173_v60, 8 }
 0x38a   : > { %v3631_v42 = vpop.permute.xlu1 %3630 }
 0x38b   : > { %vm3663_vm3 = vcmp.eq.s32.totalorder %v6173_v60, %v3631_v42 }
 0x38c   : > { %v6189_v21 = vsel %vm3663_vm3, 1.0, %v6863_v34  ;;  %vm3849_vm3 = vcmp.eq.s32.totalorder %v6173_v60, 9 }
 0x38e   : > { %v3634_v2 = vpop.permute.xlu1 %3633 }
 0x38f   : > { %vm3664_vm4 = vcmp.eq.s32.totalorder %v6173_v60, %v3634_v2 }
 0x390   : > { %v6197_v63 = vsel %vm3664_vm4, 1.0, %v6863_v34  ;;  %vm3946_vm4 = vcmp.eq.s32.totalorder %v6173_v60, 10 }
 0x391   : > { %v6162_v18 = vpop.f32.mrf.mxu0 }
 0x392   : > { %v3640_v27 = vpop.permute.xlu1 %3639 }
 0x393   : > { %v4421_v51 = vpop.f32.mrf.mxu0  ;;  %vm3666_vm5 = vcmp.eq.s32.totalorder %v6173_v60, %v3640_v27 }
 0x394   : > { %v6201_v26 = vsel %vm3666_vm5, 1.0, %v6863_v34  ;;  %v4422_v0 = vadd.f32 %v4421_v51, %v6162_v18 }
 0x395   : > { %v6166_v52 = vpop.f32.mrf.mxu0 }
 0x396   : > { %v3222_v14 = vadd.f32 %v4422_v0, %v6206_v13 }
 0x397   : > { %v6170_v25 = vpop.f32.mrf.mxu0  ;;  %v3646_v36 = vpop.permute.xlu1 %3645 }
 0x398   : > { %vm3668_vm6 = vcmp.eq.s32.totalorder %v6173_v60, %v3646_v36  ;;  %v4425_v57 = vadd.f32 %v6170_v25, %v6166_v52 }
 0x399   : > { %v6175_v7 = vpop.f32.mrf.mxu0  ;;  %v6215_v41 = vsel %vm3668_vm6, 1.0, %v6863_v34 }
 0x39a   : > { %v3225_v27 = vadd.f32 %v4425_v57, %v6206_v13 }
 0x39b   : > { %v6178_v10 = vpop.f32.mrf.mxu0 }
 0x39d   : > { %v6183_v53 = vpop.f32.mrf.mxu0 }
 0x39f   : > { %v6186_v55 = vpop.f32.mrf.mxu0 }
 0x3a1   : > { %v6191_v6 = vpop.f32.mrf.mxu0 }
 0x3a3   : > { %v6194_v43 = vpop.f32.mrf.mxu0 }
 0x3a5   : > { %v4435_v32 = vpop.f32.mrf.mxu0 }
 0x3a7   : > { %v4436_v1 = vpop.f32.mrf.mxu0 }
 0x3a8   : > { %v4437_v59 = vadd.f32 %v4436_v1, %v4435_v32  ;;  %v4428_v1 = vadd.f32 %v6178_v10, %v6175_v7 }
 0x3a9   : > { %v6208_v62 = vpop.f32.mrf.mxu0 }
 0x3aa   : > { %v3241_v48 = vadd.f32 %v4437_v59, %v6206_v13  ;;  %v6236_v46 = vpop.permute.xlu0 %3609 }
 0x3ab   : > { %v6212_v9 = vpop.f32.mrf.mxu0  ;;  %vm3656_vm11 = vcmp.eq.s32.totalorder %v6173_v60, %v6236_v46 }
 0x3ad   : > { %v4441_v37 = vpop.f32.mrf.mxu0 }
 0x3af   : > { %v4442_v56 = vpop.f32.mrf.mxu0 }
 0x3b0   : > { %v4443_v16 = vadd.f32 %v4442_v56, %v4441_v37  ;;  %v3230_v37 = vadd.f32 %v4428_v1, %v6206_v13 }
 0x3b1   : > { %v6217_v12 = vpop.f32.mrf.mxu0 }
 0x3b2   : > { %v3249_v58 = vadd.f32 %v4443_v16, %v6206_v13 }
 0x3b3   : > { %v6220_v47 = vpop.f32.mrf.mxu0 }
 0x3b5   : > { %v6222_v15 = vpop.f32.mrf.mxu0 }
 0x3b6   : > { %v3637_v23 = vpop.permute.xlu0 %3636 }
 0x3b7   : > { %v6224_v22 = vpop.f32.mrf.mxu0  ;;  %vm3665_vm7 = vcmp.eq.s32.totalorder %v6173_v60, %v3637_v23 }
 0x3b8   : > { %v6242_v40 = vsel %vm3665_vm7, 1.0, %v6863_v34 }
 0x3b9   : > { %v6226_v38 = vpop.f32.mrf.mxu0 }
 0x3bb   : > { %v6228_v33 = vpop.f32.mrf.mxu0 }
 0x3bd   : > { %v6230_v44 = vpop.f32.mrf.mxu0 }
 0x3be   : > { %v3643_v49 = vpop.permute.xlu0 %3642 }
 0x3bf   : > { %v6232_v19 = vpop.f32.mrf.mxu0  ;;  %vm3667_vm8 = vcmp.eq.s32.totalorder %v6173_v60, %v3643_v49 }
 0x3c0   : > { %v6249_v11 = vsel %vm3667_vm8, 1.0, %v6863_v34 }
 0x3c1   : > { %v6234_v8 = vpop.f32.mrf.mxu0 }
 0x3c2   : > { %v3649_v31 = vpop.permute.xlu0 %3648 }
 0x3c3   : > { %v6238_v54 = vpop.f32.mrf.mxu0  ;;  %vm3669_vm9 = vcmp.eq.s32.totalorder %v6173_v60, %v3649_v31 }
 0x3c4   : > { %v6253_v61 = vsel %vm3669_vm9, 1.0, %v6863_v34 }
 0x3c5   : > { %v4459_v5 = vpop.f32.mrf.mxu0 }
 0x3c7   : > { %v4460_v20 = vpop.f32.mrf.mxu0 }
 0x3c8   : > { %v4461_v39 = vadd.f32 %v4460_v20, %v4459_v5 }
 0x3ca   : > { %v6245_v45 = vadd.f32 %v4461_v39, %v6206_v13 }
 0x3d3   : > { %v4484_v3 = vpop.f32.mrf.mxu1 }
 0x3d5   : > { %v4485_v35 = vpop.f32.mrf.mxu1 }
 0x3d6   : > { %v4486_v29 = vadd.f32 %v4485_v35, %v4484_v3 }
 0x3d7   : > { %v4487_v42 = vpop.f32.mrf.mxu1 }
 0x3d8   : > { %v3319_v2 = vadd.f32 %v4486_v29, %v3222_v14 }
 0x3d9   : > { %v4488_v32 = vpop.f32.mrf.mxu1 }
 0x3da   : > { %v4489_v59 = vadd.f32 %v4488_v32, %v4487_v42  ;;  %3852 = vperm.xlu0 %4611, %v3319_v2   ;;  %v4434_v42 = vadd.f32 %v6194_v43, %v6191_v6 }
 0x3db   : > { %v4490_v36 = vpop.f32.mrf.mxu1 }
 0x3dc   : > { %v3322_v18 = vadd.f32 %v4489_v59, %v3225_v27  ;;  %v3238_v59 = vadd.f32 %v4434_v42, %v6206_v13 }
 0x3dd   : > { %v4491_v51 = vpop.f32.mrf.mxu1 }
 0x3de   : > { %v4492_v56 = vadd.f32 %v4491_v51, %v4490_v36  ;;  %3857 = vperm.xlu1 %4612, %v3322_v18   ;;  %v6286_v6 = vsel %vm3383_vm10, %v3322_v18, -1e+30 }
 0x3df   : > { %v6263_v16 = vpop.f32.mrf.mxu1 }
 0x3e0   : > { %v3327_v52 = vadd.f32 %v4492_v56, %v3230_v37  ;;  %v4446_v56 = vadd.f32 %v6220_v47, %v6217_v12 }
 0x3e1   : > { %v6265_v25 = vpop.f32.mrf.mxu1 }
 0x3e2   : > { %3862 = vperm.xlu1 %4612, %v3327_v52  }
 0x3e3   : > { %v4496_v5 = vpop.f32.mrf.mxu1 }
 0x3e5   : > { %v4497_v23 = vpop.f32.mrf.mxu1 }
 0x3e6   : > { %v4498_v27 = vadd.f32 %v4497_v23, %v4496_v5 }
 0x3e7   : > { %v4499_v20 = vpop.f32.mrf.mxu1 }
 0x3e8   : > { %v6288_v43 = vadd.f32 %v4498_v27, %v3238_v59 }
 0x3e9   : > { %v4500_v39 = vpop.f32.mrf.mxu1 }
 0x3ea   : > { %v4501_v7 = vadd.f32 %v4500_v39, %v4499_v20  ;;  %v3254_v20 = vadd.f32 %v4446_v56, %v6206_v13  ;;  %v4452_v39 = vadd.f32 %v6228_v33, %v6226_v38  ;;  %v4458_v38 = vadd.f32 %v6238_v54, %v6234_v8 }
 0x3eb   : > { %v4502_v10 = vpop.f32.mrf.mxu1 }
 0x3ec   : > { %v6267_v49 = vadd.f32 %v4501_v7, %v3241_v48  ;;  %v6278_v48 = vsel %vm3383_vm10, %v3319_v2, -1e+30  ;;  %v4462_v7 = vpop.f32.mrf.mxu0 }
 0x3ed   : > { %v4503_v31 = vpop.f32.mrf.mxu1 }
 0x3ee   : > { %v4504_v51 = vadd.f32 %v4503_v31, %v4502_v10  ;;  %v4463_v33 = vpop.f32.mrf.mxu0 }
 0x3ef   : > { %v4505_v0 = vpop.f32.mrf.mxu1 }
 0x3f1   : > { %v4506_v3 = vpop.f32.mrf.mxu1 }
 0x3f2   : > { %v4507_v35 = vadd.f32 %v4506_v3, %v4505_v0  ;;  %v6315_v3 = vsel %vm3383_vm10, %v3327_v52, -1e+30  ;;  %v3270_v52 = vadd.f32 %v4458_v38, %v6206_v13 }
 0x3f3   : > { %v4508_v14 = vpop.f32.mrf.mxu1 }
 0x3f4   : > { %v6269_v57 = vadd.f32 %v4507_v35, %v3249_v58  ;;  %v4440_v58 = vadd.f32 %v6212_v9, %v6208_v62  ;;  %v6297_v62 = vsel %vm3383_vm10, %v6288_v43, -1e+30  ;;  %v3262_v35 = vadd.f32 %v4452_v39, %v6206_v13 }
 0x3f5   : > { %v4509_v29 = vpop.f32.mrf.mxu1 }
 0x3f6   : > { %v3246_v2 = vadd.f32 %v4440_v58, %v6206_v13  ;;  %v4510_v23 = vadd.f32 %v4509_v29, %v4508_v14  ;;  %v4464_v58 = vadd.f32 %v4463_v33, %v4462_v7 }
 0x3f7   : > { %v6274_v32 = vpop.f32.mrf.mxu1 }
 0x3f8   : > { %v6299_v9 = vadd.f32 %v4504_v51, %v3246_v2  ;;  %v6310_v31 = vadd.f32 %v4510_v23, %v3254_v20  ;;  %v3278_v56 = vadd.f32 %v4464_v58, %v6206_v13  ;;  %v4431_v20 = vadd.f32 %v6186_v55, %v6183_v53 }
 0x3f9   : > { %v4512_v1 = vpop.f32.mrf.mxu1  ;;  %3400 = vmax.xlane.f32.xlu0 %v6278_v48  ;;  %v4449_v53 = vadd.f32 %v6224_v22, %v6222_v15  ;;  %v6378_v22 = vsel %vm3383_vm10, %v6267_v49, -1e+30 }
 0x3fa   : > { %v6308_v47 = vsel %vm3383_vm10, %v6299_v9, -1e+30  ;;  %v6324_v42 = vsel %vm3383_vm10, %v6310_v31, -1e+30  ;;  %v4513_v55 = vadd.f32 %v4512_v1, %v6274_v32  ;;  %v6385_v32 = vpop.permute.xlu1 %3651 }
 0x3fb   : > { %v4514_v36 = vpop.f32.mrf.mxu1  ;;  %vm3670_vm1 = vcmp.eq.s32.totalorder %v6173_v60, %v6385_v32 }
 0x3fd   : > { %v4515_v37 = vpop.f32.mrf.mxu1  ;;  %3402 = vmax.xlane.f32.xlu0 %v6286_v6 }
 0x3fe   : > { %v4516_v12 = vadd.f32 %v4515_v37, %v4514_v36 }
 0x3ff   : > { %v4517_v5 = vpop.f32.mrf.mxu1 }
 0x400   : > { %v6326_v27 = vadd.f32 %v4516_v12, %v3262_v35  ;;  %v3257_v35 = vadd.f32 %v4449_v53, %v6206_v13 }
 0x401   : > { %v4518_v18 = vpop.f32.mrf.mxu1  ;;  %3408 = vmax.xlane.f32.xlu0 %v6297_v62 }
 0x402   : > { %v6333_v54 = vsel %vm3383_vm10, %v6326_v27, -1e+30  ;;  %v4519_v38 = vadd.f32 %v4518_v18, %v4517_v5 }
 0x403   : > { %v4520_v10 = vpop.f32.mrf.mxu1 }
 0x405   : > { %v4521_v0 = vpop.f32.mrf.mxu1  ;;  %3412 = vmax.xlane.f32.xlu0 %v6308_v47 }
 0x406   : > { %3404 = vmax.xlane.f32.xlu1 %v6315_v3  ;;  %v4522_v29 = vadd.f32 %v4521_v0, %v4520_v10  ;;  %v4495_v10 = vadd.f32 %v6265_v25, %v6263_v16  ;;  %v4455_v16 = vadd.f32 %v6232_v19, %v6230_v44  ;;  %v6361_v25 = vadd.f32 %v4513_v55, %v3257_v35  ;;  %v6381_v44 = vpop.permute.xlu0 %3654 }
 0x407   : > { %v4523_v14 = vpop.f32.mrf.mxu1  ;;  %vm3671_vm5 = vcmp.eq.s32.totalorder %v6173_v60, %v6381_v44 }
 0x408   : > { %v6335_v51 = vadd.f32 %v4522_v29, %v3270_v52  ;;  %v3265_v33 = vadd.f32 %v4455_v16, %v6206_v13 }
 0x409   : > { %v4524_v59 = vpop.f32.mrf.mxu1  ;;  %3416 = vmax.xlane.f32.xlu0 %v6324_v42 }
 0x40a   : > { %v4525_v36 = vadd.f32 %v4524_v59, %v4523_v14  ;;  %v3396_v39 = vsel %vm3383_vm10, %v6335_v51, -1e+30  ;;  %v6365_v14 = vadd.f32 %v4519_v38, %v3265_v33 }
 0x40b   : > { %v4526_v8 = vpop.f32.mrf.mxu1 }
 0x40c   : > { %v6338_v37 = vadd.f32 %v4525_v36, %v6245_v45  ;;  %v3233_v45 = vadd.f32 %v4431_v20, %v6206_v13 }
 0x40d   : > { %v4527_v2 = vpop.f32.mrf.mxu1  ;;  %3420 = vmax.xlane.f32.xlu0 %v6333_v54 }
 0x40e   : > { %v4528_v23 = vadd.f32 %v4527_v2, %v4526_v8  ;;  %v3330_v0 = vadd.f32 %v4495_v10, %v3233_v45 }
 0x410   : > { %v6347_v7 = vadd.f32 %v4528_v23, %v3278_v56  ;;  %v6370_v15 = vsel %vm3383_vm10, %v3330_v0, -1e+30 }
 0x411   : > { %3424 = vmax.xlane.f32.xlu0 %v3396_v39 }
 0x412   : > { %v3398_v12 = vsel %vm3383_vm10, %v6347_v7, -1e+30 }
 0x415   : > { %3428 = vmax.xlane.f32.xlu0 %v3398_v12 }
 0x417   : > { %3867 = vperm.xlu1 %4612, %v3330_v0  }
 0x42b   : > { %3897 = vperm.xlu0 %4611, %v6361_v25  }
 0x42f   : > { %3907 = vperm.xlu0 %4611, %v6365_v14  }
 0x43b   : > { %3406 = vmax.xlane.f32.xlu1 %v6370_v15 }
 0x44c   : > { %3872 = vperm.xlu1 %4612, %v6288_v43  }
 0x450   : > { %3877 = vperm.xlu1 %4612, %v6267_v49  }
 0x455   : > { %v6383_v19 = vpop.permute.xlu0 %3852 }
 0x459   : > { %v6390_v43 = vpop.permute.xlu1 %3857 }
 0x45a   : > { %6868 = vst [vmem:[#allocation5_spill] sm:$0xff] %v6390_v43 }
 0x45d   : > { %v6397_v59 = vpop.permute.xlu1 %3862 }
 0x45e   : > { %6869 = vst [vmem:[#allocation6_spill] sm:$0xff] %v6397_v59 }
 0x474   : > { %3410 = vmax.xlane.f32.xlu1 %v6378_v22 }
 0x482   : > { %v3401_v1 = vpop.xlane.xlu0 %3400 }
 0x483   : > { %v6388_v5 = vsub.f32 %v6278_v48, %v3401_v1  ;;  %v6440_v1 = vsel %vm3383_vm10, %v6269_v57, -1e+30 }
 0x485   : > { %v3448_v18 = vmul.f32 1.442695, %v6388_v5  ;;  %3882 = vperm.xlu1 %4612, %v6299_v9  }
 0x486   : > { %v6394_v49 = vpop.xlane.xlu0 %3402 }
 0x487   : > { %4892 = vpow2.f32 %v3448_v18  ;;  %v4529_v18 = vpop.f32.mrf.mxu1 }
 0x489   : > { %3887 = vperm.xlu1 %4612, %v6269_v57  }
 0x48a   : > { %v3409_v29 = vpop.xlane.xlu0 %3408 }
 0x48b   : > { %v6400_v36 = vsub.f32 %v6297_v62, %v3409_v29 }
 0x48d   : > { %v3456_v56 = vmul.f32 1.442695, %v6400_v36 }
 0x48e   : > { %v3413_v52 = vpop.xlane.xlu0 %3412 }
 0x48f   : > { %v3405_v58 = vpop.xlane.xlu1 %3404  ;;  %v6410_v23 = vsub.f32 %v6308_v47, %v3413_v52  ;;  %v3393_v52 = vsel %vm3383_vm10, %v6361_v25, -1e+30  ;;  %v3397_v25 = vsel %vm3383_vm10, %v6338_v37, -1e+30 }
 0x490   : > { %v6403_v48 = vsub.f32 %v6315_v3, %v3405_v58 }
 0x491   : > { %v3460_v62 = vmul.f32 1.442695, %v6410_v23 }
 0x492   : > { %v3452_v8 = vmul.f32 1.442695, %v6403_v48  ;;  %v3417_v2 = vpop.xlane.xlu0 %3416 }
 0x493   : > { %v6415_v3 = vsub.f32 %v6324_v42, %v3417_v2 }
 0x494   : > { %v6406_v9 = vpop.eup %4892  ;;  %4894 = vpow2.f32 %v3452_v8  ;;  %v4530_v8 = vpop.f32.mrf.mxu1 }
 0x495   : > { %3480 = vadd.xlane.f32.xlu0 %v6406_v9  ;;  %4896 = vpow2.f32 %v3456_v56  ;;  %v3464_v45 = vmul.f32 1.442695, %v6415_v3  ;;  %v4531_v57 = vadd.f32 %v4530_v8, %v4529_v18  ;;  %v3395_v56 = vsel %vm3383_vm10, %v6365_v14, -1e+30 }
 0x496   : > { %v3421_v20 = vpop.xlane.xlu0 %3420  ;;  %4898 = vpow2.f32 %v3460_v62 }
 0x497   : > { %v6419_v0 = vsub.f32 %v6333_v54, %v3421_v20  ;;  %4900 = vpow2.f32 %v3464_v45 }
 0x499   : > { %v3468_v47 = vmul.f32 1.442695, %v6419_v0 }
 0x49a   : > { %v3425_v10 = vpop.xlane.xlu0 %3424 }
 0x49b   : > { %v6422_v53 = vsub.f32 %v3396_v39, %v3425_v10  ;;  %4902 = vpow2.f32 %v3468_v47  ;;  %v4465_v39 = vpop.f32.mrf.mxu0  ;;  %v6478_v47 = vsub.f32 %v6286_v6, %v6394_v49 }
 0x49d   : > { %v3472_v42 = vmul.f32 1.442695, %v6422_v53  ;;  %v4466_v29 = vpop.f32.mrf.mxu0 }
 0x49e   : > { %v3429_v35 = vpop.xlane.xlu0 %3428  ;;  %v4467_v2 = vadd.f32 %v4466_v29, %v4465_v39 }
 0x49f   : > { %v6428_v16 = vsub.f32 %v3398_v12, %v3429_v35  ;;  %4904 = vpow2.f32 %v3472_v42  ;;  %v3450_v42 = vmul.f32 1.442695, %v6478_v47 }
 0x4a0   : > { %v3281_v62 = vadd.f32 %v4467_v2, %v6206_v13  ;;  %v6474_v13 = vpop.permute.xlu1 %3867 }
 0x4a1   : > { %v6424_v55 = vpop.eup %4894  ;;  %v3476_v54 = vmul.f32 1.442695, %v6428_v16  ;;  %6870 = vst [vmem:[#allocation7_spill] sm:$0xff] %v6474_v13 }
 0x4a2   : > { %3484 = vadd.xlane.f32.xlu0 %v6424_v55  ;;  %v6430_v38 = vpop.eup %4896  ;;  %v6462_v10 = vadd.f32 %v4531_v57, %v3281_v62 }
 0x4a3   : > { %v6434_v33 = vpop.eup %4898  ;;  %4906 = vpow2.f32 %v3476_v54 }
 0x4a4   : > { %v6442_v12 = vpop.eup %4900  ;;  %v3399_v14 = vsel %vm3383_vm10, %v6462_v10, -1e+30  ;;  %4908 = vpow2.f32 %v3450_v42 }
 0x4a6   : > { %3488 = vadd.xlane.f32.xlu0 %v6430_v38  ;;  %v6502_v29 = vpop.permute.xlu0 %3897 }
 0x4a7   : > { %6873 = vst [vmem:[#allocation10_spill] sm:$0xff] %v6502_v29 }
 0x4a8   : > { %v6449_v58 = vpop.eup %4902 }
 0x4aa   : > { %3492 = vadd.xlane.f32.xlu0 %v6434_v33  ;;  %v6504_v8 = vpop.permute.xlu0 %3907 }
 0x4ab   : > { %6874 = vst [vmem:[#allocation11_spill] sm:$0xff] %v6504_v8 }
 0x4ac   : > { %v6455_v20 = vpop.eup %4904 }
 0x4ad   : > { %3414 = vmax.xlane.f32.xlu1 %v6440_v1 }
 0x4ae   : > { %3496 = vadd.xlane.f32.xlu0 %v6442_v12 }
 0x4b0   : > { %v6464_v45 = vpop.eup %4906 }
 0x4b1   : > { %3418 = vmax.xlane.f32.xlu1 %v3393_v52 }
 0x4b2   : > { %3500 = vadd.xlane.f32.xlu0 %v6449_v58 }
 0x4b5   : > { %3422 = vmax.xlane.f32.xlu1 %v3395_v56 }
 0x4b6   : > { %3504 = vadd.xlane.f32.xlu0 %v6455_v20 }
 0x4b9   : > { %3426 = vmax.xlane.f32.xlu1 %v3397_v25 }
 0x4ba   : > { %3508 = vadd.xlane.f32.xlu0 %v6464_v45 }
 0x4bd   : > { %3430 = vmax.xlane.f32.xlu1 %v3399_v14 }
 0x4c4   : > { %v3407_v35 = vpop.xlane.xlu1 %3406 }
 0x4c5   : > { %v6482_v54 = vsub.f32 %v6370_v15, %v3407_v35 }
 0x4ce   : > { %3892 = vperm.xlu1 %4612, %v6310_v31   ;;  %v3454_v31 = vmul.f32 1.442695, %v6482_v54 }
 0x4d0   : > { %3917 = vperm.xlu0 %4611, %v6338_v37   ;;  %4910 = vpow2.f32 %v3454_v31  ;;  %v6485_v37 = vpop.permute.xlu1 %3872 }
 0x4d1   : > { %6871 = vst [vmem:[#allocation8_spill] sm:$0xff] %v6485_v37 }
 0x4d2   : > { %3902 = vperm.xlu1 %4612, %v6326_v27   ;;  %v6487_v27 = vpop.eup %4908 }
 0x4d6   : > { %3912 = vperm.xlu1 %4612, %v6335_v51   ;;  %v6489_v51 = vpop.permute.xlu1 %3877 }
 0x4d7   : > { %6872 = vst [vmem:[#allocation9_spill] sm:$0xff] %v6489_v51 }
 0x4dd   : > { %v6492_v6 = vpop.eup %4910 }
 0x4fa   : > { %3482 = vadd.xlane.f32.xlu1 %v6487_v27 }
 0x4fd   : > { %v3411_v49 = vpop.xlane.xlu1 %3410 }
 0x4fe   : > { %v6495_v39 = vsub.f32 %v6378_v22, %v3411_v49  ;;  %3486 = vadd.xlane.f32.xlu1 %v6492_v6 }
 0x500   : > { %v3458_v15 = vmul.f32 1.442695, %v6495_v39 }
 0x501   : > { %v6506_v62 = vpop.permute.xlu1 %3882 }
 0x502   : > { %4912 = vpow2.f32 %v3458_v15  ;;  %6875 = vst [vmem:[#allocation12_spill] sm:$0xff] %v6506_v62 }
 0x505   : > { %v6512_v49 = vpop.permute.xlu1 %3887 }
 0x506   : > { %6876 = vst [vmem:[#allocation13_spill] sm:$0xff] %v6512_v49 }
 0x50f   : > { %v6499_v18 = vpop.eup %4912 }
 0x510   : > { %3490 = vadd.xlane.f32.xlu1 %v6499_v18 }
 0x51e   : > { %v3481_v2 = vpop.xlane.xlu0 %3480 }
 0x51f   : > { %4914 = vrcp.f32 %v3481_v2 }
 0x520   : > { %4916 = vlog2.f32 %v3481_v2 }
 0x52c   : > { %v4915_v57 = vpop.eup %4914 }
 0x52d   : > { %v4917_v22 = vpop.eup %4916  ;;  %v6509_v42 = vmul.f32 %v4915_v57, %v6406_v9 }
 0x52e   : > { %v3545_v35 = vmul.f32 0.6931472, %v4917_v22 }
 0x530   : > { %v3576_v31 = vsub.f32 %v6388_v5, %v3545_v35 }
 0x532   : > { %v3752_v15 = vmul.f32 %v3576_v31, %v6509_v42 }
 0x534   : > { %3768 = vadd.xlane.f32.xlu0 %v3752_v15 }
 0x536   : > { %v3415_v34 = vpop.xlane.xlu1 %3414 }
 0x537   : > { %v6516_v8 = vsub.f32 %v6440_v1, %v3415_v34 }
 0x539   : > { %v3462_v2 = vmul.f32 1.442695, %v6516_v8 }
 0x53a   : > { %v3419_v29 = vpop.xlane.xlu1 %3418 }
 0x53b   : > { %4918 = vpow2.f32 %v3462_v2  ;;  %v6519_v51 = vsub.f32 %v3393_v52, %v3419_v29 }
 0x53d   : > { %v3466_v9 = vmul.f32 1.442695, %v6519_v51 }
 0x53e   : > { %v3423_v57 = vpop.xlane.xlu1 %3422 }
 0x53f   : > { %4920 = vpow2.f32 %v3466_v9  ;;  %v6522_v5 = vsub.f32 %v3395_v56, %v3423_v57  ;;  %v6877_v9 = vmov 0.0  }
 0x540   : > { %v4296_v57 = vsel %vm3656_vm11, 1.0, %v6877_v9  ;;  %v4299_v4 = vsel %vm3659_vm14, 1.0, %v6877_v9 }
 0x541   : > { %v3470_v22 = vmul.f32 1.442695, %v6522_v5 }
 0x542   : > { %v3427_v35 = vpop.xlane.xlu1 %3426 }
 0x543   : > { %4922 = vpow2.f32 %v3470_v22  ;;  %v6525_v15 = vsub.f32 %v3397_v25, %v3427_v35  ;;  %v3704_v22 = vmul.f32 %v4296_v57, %v3576_v31 }
 0x545   : > { %v3474_v34 = vmul.f32 1.442695, %v6525_v15 }
 0x546   : > { %v3431_v1 = vpop.xlane.xlu1 %3430 }
 0x547   : > { %4924 = vpow2.f32 %v3474_v34  ;;  %v6528_v49 = vsub.f32 %v3399_v14, %v3431_v1 }
 0x548   : > { %v6530_v52 = vpop.eup %4918 }
 0x549   : > { %v3478_v29 = vmul.f32 1.442695, %v6528_v49  ;;  %3494 = vadd.xlane.f32.xlu1 %v6530_v52 }
 0x54a   : > { %v6549_v35 = vpop.permute.xlu1 %3892 }
 0x54b   : > { %4926 = vpow2.f32 %v3478_v29  ;;  %6878 = vst [vmem:[#allocation14_spill] sm:$0xff] %v6549_v35  ;;  %v3485_v29 = vpop.xlane.xlu0 %3484 }
 0x54c   : > { %v6534_v56 = vpop.eup %4920  ;;  %4928 = vlog2.f32 %v3485_v29 }
 0x54d   : > { %3498 = vadd.xlane.f32.xlu1 %v6534_v56 }
 0x54e   : > { %v6551_v34 = vpop.permute.xlu1 %3902 }
 0x54f   : > { %6879 = vst [vmem:[#allocation15_spill] sm:$0xff] %v6551_v34  ;;  %v3489_v37 = vpop.xlane.xlu0 %3488 }
 0x550   : > { %v6537_v2 = vpop.eup %4922 }
 0x551   : > { %3502 = vadd.xlane.f32.xlu1 %v6537_v2 }
 0x552   : > { %v6553_v1 = vpop.permute.xlu1 %3912 }
 0x553   : > { %6880 = vst [vmem:[#allocation16_spill] sm:$0xff] %v6553_v1  ;;  %v3493_v31 = vpop.xlane.xlu0 %3492 }
 0x554   : > { %v6540_v25 = vpop.eup %4924 }
 0x555   : > { %3506 = vadd.xlane.f32.xlu1 %v6540_v25 }
 0x558   : > { %v6545_v14 = vpop.eup %4926 }
 0x559   : > { %3510 = vadd.xlane.f32.xlu1 %v6545_v14  ;;  %v4929_v59 = vpop.eup %4928 }
 0x55a   : > { %v3549_v34 = vmul.f32 0.6931472, %v4929_v59 }
 0x55d   : > { %3720 = vadd.xlane.f32.xlu1 %v3704_v22 }
 0x583   : > { %v3483_v62 = vpop.xlane.xlu1 %3482 }
 0x584   : > { %4930 = vrcp.f32 %v3483_v62 }
 0x585   : > { %4932 = vlog2.f32 %v3483_v62 }
 0x587   : > { %v3487_v46 = vpop.xlane.xlu1 %3486 }
 0x588   : > { %4934 = vlog2.f32 %v3487_v46 }
 0x589   : > { %4936 = vlog2.f32 %v3489_v37 }
 0x58a   : > { %4938 = vrcp.f32 %v3485_v29  ;;  %v4297_v29 = vsel %vm3657_vm12, 1.0, %v6877_v9 }
 0x58b   : > { %4940 = vrcp.f32 %v3487_v46  ;;  %v3497_v46 = vpop.xlane.xlu0 %3496 }
 0x58c   : > { %4942 = vlog2.f32 %v3493_v31 }
 0x58d   : > { %4944 = vrcp.f32 %v3489_v37  ;;  %v3578_v37 = vsub.f32 %v6403_v48, %v3549_v34 }
 0x58e   : > { %4946 = vlog2.f32 %v3497_v46 }
 0x591   : > { %v4931_v57 = vpop.eup %4930 }
 0x592   : > { %v4933_v22 = vpop.eup %4932  ;;  %v6558_v35 = vmul.f32 %v4931_v57, %v6487_v27 }
 0x593   : > { %v3547_v1 = vmul.f32 0.6931472, %v4933_v22 }
 0x594   : > { %6881 = vst [vmem:[#allocation17_spill] sm:$0xff] %v6558_v35 }
 0x595   : > { %v3577_v62 = vsub.f32 %v6478_v47, %v3547_v1  ;;  %v4935_v13 = vpop.eup %4934 }
 0x596   : > { %v3551_v28 = vmul.f32 0.6931472, %v4935_v13  ;;  %v4937_v27 = vpop.eup %4936  ;;  %v4298_v13 = vsel %vm3658_vm13, 1.0, %v6877_v9 }
 0x597   : > { %v3753_v59 = vmul.f32 %v3577_v62, %v6558_v35  ;;  %v3705_v22 = vmul.f32 %v4297_v29, %v3577_v62  ;;  %v4939_v57 = vpop.eup %4938  ;;  %v3553_v35 = vmul.f32 0.6931472, %v4937_v27  ;;  %v3706_v48 = vmul.f32 %v4298_v13, %v3578_v37 }
 0x598   : > { %v3579_v1 = vsub.f32 %v6482_v54, %v3551_v28  ;;  %v4941_v43 = vpop.eup %4940  ;;  %v6578_v54 = vmul.f32 %v4939_v57, %v6424_v55 }
 0x599   : > { %3770 = vadd.xlane.f32.xlu1 %v3753_v59  ;;  %3722 = vadd.xlane.f32.xlu0 %v3705_v22  ;;  %v3491_v47 = vpop.xlane.xlu1 %3490  ;;  %v6575_v34 = vmul.f32 %v4941_v43, %v6492_v6  ;;  %v3580_v28 = vsub.f32 %v6400_v36, %v3553_v35  ;;  %v4943_v59 = vpop.eup %4942  ;;  %v4300_v43 = vsel %vm3660_vm15, 1.0, %v6877_v9 }
 0x59a   : > { %4948 = vlog2.f32 %v3491_v47  ;;  %v3707_v62 = vmul.f32 %v4299_v4, %v3579_v1  ;;  %v3754_v29 = vmul.f32 %v3578_v37, %v6578_v54  ;;  %v4945_v22 = vpop.eup %4944  ;;  %v3557_v6 = vmul.f32 0.6931472, %v4943_v59 }
 0x59b   : > { %4950 = vrcp.f32 %v3493_v31  ;;  %v3755_v24 = vmul.f32 %v3579_v1, %v6575_v34  ;;  %v3501_v31 = vpop.xlane.xlu0 %3500  ;;  %v3708_v55 = vmul.f32 %v4300_v43, %v3580_v28  ;;  %v6587_v30 = vmul.f32 %v4945_v22, %v6430_v38  ;;  %v4947_v27 = vpop.eup %4946 }
 0x59c   : > { %4952 = vrcp.f32 %v3491_v47  ;;  %v3582_v36 = vsub.f32 %v6410_v23, %v3557_v6  ;;  %v3561_v4 = vmul.f32 0.6931472, %v4947_v27 }
 0x59d   : > { %3726 = vadd.xlane.f32.xlu1 %v3707_v62  ;;  %3724 = vadd.xlane.f32.xlu0 %v3706_v48  ;;  %4954 = vlog2.f32 %v3501_v31  ;;  %v3756_v37 = vmul.f32 %v3580_v28, %v6587_v30  ;;  %v4301_v62 = vsel %vm3661_vm0, 1.0, %v6877_v9 }
 0x59e   : > { %4956 = vrcp.f32 %v3497_v46  ;;  %v3710_v46 = vmul.f32 %v6181_v17, %v3582_v36 }
 0x59f   : > { %v3505_v57 = vpop.xlane.xlu0 %3504 }
 0x5a0   : > { %4958 = vlog2.f32 %v3505_v57 }
 0x5a1   : > { %3774 = vadd.xlane.f32.xlu1 %v3755_v24  ;;  %3772 = vadd.xlane.f32.xlu0 %v3754_v29  ;;  %4960 = vrcp.f32 %v3501_v31  ;;  %v3584_v29 = vsub.f32 %v6415_v3, %v3561_v4 }
 0x5a3   : > { %v3509_v28 = vpop.xlane.xlu0 %3508 }
 0x5a4   : > { %4962 = vlog2.f32 %v3509_v28 }
 0x5a5   : > { %3728 = vadd.xlane.f32.xlu0 %v3708_v55  ;;  %4964 = vrcp.f32 %v3505_v57 }
 0x5a6   : > { %4966 = vrcp.f32 %v3509_v28 }
 0x5a7   : > { %v4949_v35 = vpop.eup %4948 }
 0x5a8   : > { %v3555_v47 = vmul.f32 0.6931472, %v4949_v35  ;;  %v4951_v1 = vpop.eup %4950 }
 0x5a9   : > { %3776 = vadd.xlane.f32.xlu0 %v3756_v37  ;;  %v4953_v13 = vpop.eup %4952  ;;  %v6597_v48 = vmul.f32 %v4951_v1, %v6434_v33  ;;  %v3712_v33 = vmul.f32 %v6197_v63, %v3584_v29 }
 0x5aa   : > { %v3581_v38 = vsub.f32 %v6495_v39, %v3555_v47  ;;  %v6601_v24 = vmul.f32 %v4953_v13, %v6499_v18  ;;  %v4955_v17 = vpop.eup %4954  ;;  %v6630_v13 = vpop.permute.xlu0 %3917 }
 0x5ab   : > { %v3758_v50 = vmul.f32 %v3582_v36, %v6597_v48  ;;  %v4957_v59 = vpop.eup %4956  ;;  %v3565_v31 = vmul.f32 0.6931472, %v4955_v17 }
 0x5ac   : > { %v3709_v23 = vmul.f32 %v4301_v62, %v3581_v38  ;;  %v3757_v39 = vmul.f32 %v3581_v38, %v6601_v24  ;;  %v6607_v22 = vmul.f32 %v4957_v59, %v6442_v12 }
 0x5ad   : > { %3732 = vadd.xlane.f32.xlu0 %v3710_v46  ;;  %v3586_v3 = vsub.f32 %v6419_v0, %v3565_v31  ;;  %v4959_v43 = vpop.eup %4958 }
 0x5ae   : > { %3730 = vadd.xlane.f32.xlu1 %v3709_v23  ;;  %v3760_v18 = vmul.f32 %v3584_v29, %v6607_v22  ;;  %v4961_v6 = vpop.eup %4960  ;;  %v3569_v55 = vmul.f32 0.6931472, %v4959_v43 }
 0x5af   : > { %v3714_v27 = vmul.f32 %v6201_v26, %v3586_v3  ;;  %v6613_v37 = vmul.f32 %v4961_v6, %v6449_v58 }
 0x5b0   : > { %v3588_v12 = vsub.f32 %v6422_v53, %v3569_v55  ;;  %v4310_v53 = vsel %vm3670_vm1, 1.0, %v6877_v9 }
 0x5b1   : > { %3780 = vadd.xlane.f32.xlu0 %v3758_v50  ;;  %v3762_v63 = vmul.f32 %v3586_v3, %v6613_v37  ;;  %v4963_v36 = vpop.eup %4962 }
 0x5b2   : > { %3778 = vadd.xlane.f32.xlu1 %v3757_v39  ;;  %v4965_v35 = vpop.eup %4964  ;;  %v3573_v57 = vmul.f32 0.6931472, %v4963_v36  ;;  %v3716_v0 = vmul.f32 %v6215_v41, %v3588_v12  ;;  %v3816_v39 = vsel %vm3383_vm10, %v6509_v42, 0.0 }
 0x5b3   : > { %v6619_v47 = vmul.f32 %v4965_v35, %v6455_v20  ;;  %v4967_v1 = vpop.eup %4966 }
 0x5b4   : > { %v3590_v58 = vsub.f32 %v6428_v16, %v3573_v57  ;;  %v6627_v46 = vmul.f32 %v4967_v1, %v6464_v45 }
 0x5b5   : > { %3736 = vadd.xlane.f32.xlu0 %v3712_v33  ;;  %v3764_v26 = vmul.f32 %v3588_v12, %v6619_v47 }
 0x5b6   : > { %v3718_v4 = vmul.f32 %v4310_v53, %v3590_v58  ;;  %v3766_v41 = vmul.f32 %v3590_v58, %v6627_v46 }
 0x5b9   : > { %3784 = vadd.xlane.f32.xlu0 %v3760_v18 }
 0x5bd   : > { %3740 = vadd.xlane.f32.xlu0 %v3714_v27  ;;  %v3769_v29 = vpop.xlane.xlu0 %3768 }
 0x5c1   : > { %3788 = vadd.xlane.f32.xlu0 %v3762_v63 }
 0x5c5   : > { %3744 = vadd.xlane.f32.xlu0 %v3716_v0 }
 0x5c9   : > { %3792 = vadd.xlane.f32.xlu0 %v3764_v26 }
 0x5cd   : > { %3748 = vadd.xlane.f32.xlu0 %v3718_v4  ;;  %v4311_v4 = vsel %vm3671_vm5, 1.0, %v6877_v9 }
 0x5d1   : > { %3796 = vadd.xlane.f32.xlu0 %v3766_v41 }
 0x5d2   : > { %v3495_v20 = vpop.xlane.xlu1 %3494 }
 0x5d3   : > { %4968 = vlog2.f32 %v3495_v20 }
 0x5d4   : > { %4970 = vrcp.f32 %v3495_v20  ;;  %v6882_v20 = vld [vmem:[#allocation17_spill] sm:$0xff] }
 0x5d6   : > { %v3499_v38 = vpop.xlane.xlu1 %3498 }
 0x5d7   : > { %4972 = vlog2.f32 %v3499_v38 }
 0x5da   : > { %v3503_v32 = vpop.xlane.xlu1 %3502 }
 0x5db   : > { %4974 = vlog2.f32 %v3503_v32 }
 0x5dc   : > { %4976 = vrcp.f32 %v3499_v38 }
 0x5de   : > { %v3507_v16 = vpop.xlane.xlu1 %3506 }
 0x5df   : > { %4978 = vlog2.f32 %v3507_v16 }
 0x5e0   : > { %v4969_v62 = vpop.eup %4968  ;;  %4980 = vrcp.f32 %v3503_v32 }
 0x5e1   : > { %v3559_v23 = vmul.f32 0.6931472, %v4969_v62  ;;  %v4971_v45 = vpop.eup %4970 }
 0x5e2   : > { %v3511_v50 = vpop.xlane.xlu1 %3510 }
 0x5e3   : > { %v3583_v17 = vsub.f32 %v6516_v8, %v3559_v23  ;;  %v3800_v8 = vsub.f32 0.0, %v3769_v29  ;;  %4982 = vlog2.f32 %v3511_v50 }
 0x5e4   : > { %v4973_v28 = vpop.eup %4972  ;;  %4984 = vrcp.f32 %v3507_v16  ;;  %v6883_v16 = vld [vmem:[#allocation5_spill] sm:$0xff] }
 0x5e5   : > { %v3563_v59 = vmul.f32 0.6931472, %v4973_v28  ;;  %v3711_v33 = vmul.f32 %v6189_v21, %v3583_v17  ;;  %v6653_v21 = vmul.f32 %v4971_v45, %v6530_v52  ;;  %4986 = vrcp.f32 %v3511_v50 }
 0x5e6   : > { %v3721_v31 = vpop.xlane.xlu1 %3720  ;;  %v3819_v50 = vsel %vm3383_vm10, %v6575_v34, 0.0  ;;  %v3818_v45 = vsel %vm3383_vm10, %v6578_v54, 0.0  ;;  %v6885_v34 = vld [vmem:[#allocation6_spill] sm:$0xff] }
 0x5e7   : > { %v3833_v18 = vsel %vm3832_vm2, %v3721_v31, %v3816_v39  ;;  %3927 = vperm.xlu0 %4611, %v6462_v10   ;;  %3734 = vadd.xlane.f32.xlu1 %v3711_v33  ;;  %v3759_v43 = vmul.f32 %v3583_v17, %v6653_v21  ;;  %v3585_v6 = vsub.f32 %v6519_v51, %v3563_v59  ;;  %v6884_v33 = vld [vmem:[#allocation7_spill] sm:$0xff] }
 0x5e8   : > { %v3930_v42 = vsel %vm3849_vm3, %v6383_v19, %v3833_v18  ;;  %v4975_v55 = vpop.eup %4974 }
 0x5e9   : > { %v3947_v3 = vsel %vm3946_vm4, %v3800_v8, %v3930_v42  ;;  %v4977_v10 = vpop.eup %4976  ;;  %v3567_v27 = vmul.f32 0.6931472, %v4975_v55  ;;  %v3713_v63 = vmul.f32 %v6242_v40, %v3585_v6 }
 0x5ea   : > { %3963 = vst [vmem:[%s6644_s19] sm:$0xff] %v3947_v3  ;;  %v6662_v19 = vmul.f32 %v4977_v10, %v6534_v56 }
 0x5eb   : > { %3782 = vadd.xlane.f32.xlu1 %v3759_v43  ;;  %v3587_v12 = vsub.f32 %v6522_v5, %v3567_v27  ;;  %v3820_v43 = vsel %vm3383_vm10, %v6587_v30, 0.0  ;;  %v6886_v27 = vld [vmem:[#allocation8_spill] sm:$0xff]  ;;  %v3822_v30 = vsel %vm3383_vm10, %v6597_v48, 0.0 }
 0x5ec   : > { %v3761_v52 = vmul.f32 %v3585_v6, %v6662_v19  ;;  %v4979_v36 = vpop.eup %4978 }
 0x5ed   : > { %v4981_v35 = vpop.eup %4980  ;;  %v3571_v51 = vmul.f32 0.6931472, %v4979_v36  ;;  %v3715_v57 = vmul.f32 %v6249_v11, %v3587_v12 }
 0x5ee   : > { %v6668_v0 = vmul.f32 %v4981_v35, %v6537_v2 }
 0x5ef   : > { %3738 = vadd.xlane.f32.xlu1 %v3713_v63  ;;  %v3589_v56 = vsub.f32 %v6525_v15, %v3571_v51  ;;  %v3821_v51 = vsel %vm3383_vm10, %v6601_v24, 0.0 }
 0x5f0   : > { %v3763_v40 = vmul.f32 %v3587_v12, %v6668_v0  ;;  %v4983_v26 = vpop.eup %4982 }
 0x5f1   : > { %v4985_v58 = vpop.eup %4984  ;;  %v3575_v1 = vmul.f32 0.6931472, %v4983_v26  ;;  %v3717_v5 = vmul.f32 %v6253_v61, %v3589_v56  ;;  %v6887_v26 = vld [vmem:[#allocation12_spill] sm:$0xff] }
 0x5f2   : > { %v6674_v53 = vmul.f32 %v4985_v58, %v6540_v25  ;;  %v4987_v15 = vpop.eup %4986 }
 0x5f3   : > { %3786 = vadd.xlane.f32.xlu1 %v3761_v52  ;;  %v3591_v2 = vsub.f32 %v6528_v49, %v3575_v1  ;;  %v6682_v61 = vmul.f32 %v4987_v15, %v6545_v14  ;;  %v3817_v49 = vsel %vm3383_vm10, %v6882_v20, 0.0  ;;  %v6889_v20 = vld [vmem:[#allocation14_spill] sm:$0xff] }
 0x5f4   : > { %v3765_v11 = vmul.f32 %v3589_v56, %v6674_v53 }
 0x5f5   : > { %v3719_v41 = vmul.f32 %v4311_v4, %v3591_v2  ;;  %v3767_v25 = vmul.f32 %v3591_v2, %v6682_v61  ;;  %v3824_v4 = vsel %vm3383_vm10, %v6607_v22, 0.0 }
 0x5f7   : > { %3742 = vadd.xlane.f32.xlu1 %v3715_v57 }
 0x5fb   : > { %3790 = vadd.xlane.f32.xlu1 %v3763_v40 }
 0x5ff   : > { %3746 = vadd.xlane.f32.xlu1 %v3717_v5 }
 0x603   : > { %3794 = vadd.xlane.f32.xlu1 %v3765_v11  ;;  %v6888_v11 = vld [vmem:[#allocation9_spill] sm:$0xff] }
 0x607   : > { %3750 = vadd.xlane.f32.xlu1 %v3719_v41 }
 0x60b   : > { %3798 = vadd.xlane.f32.xlu1 %v3767_v25 }
 0x61c   : > { %3922 = vperm.xlu1 %4612, %v6347_v7  }
 0x622   : > { %v3771_v44 = vpop.xlane.xlu1 %3770  ;;  %v3723_v38 = vpop.xlane.xlu0 %3722 }
 0x623   : > { %v3801_v32 = vsub.f32 0.0, %v3771_v44  ;;  %v3834_v9 = vsel %vm3832_vm2, %v3723_v38, %v3817_v49 }
 0x624   : > { %v3931_v14 = vsel %vm3849_vm3, %v6883_v16, %v3834_v9  ;;  %v3826_v9 = vsel %vm3383_vm10, %v6613_v37, 0.0 }
 0x625   : > { %v3948_v62 = vsel %vm3946_vm4, %v3801_v32, %v3931_v14 }
 0x626   : > { %3964 = vst [vmem:[%s6644_s19 + $0x8] sm:$0xff] %v3948_v62  ;;  %v3727_v7 = vpop.xlane.xlu1 %3726  ;;  %v3725_v23 = vpop.xlane.xlu0 %3724  ;;  %v6890_v62 = vld [vmem:[#allocation15_spill] sm:$0xff] }
 0x627   : > { %v3836_v29 = vsel %vm3832_vm2, %v3727_v7, %v3819_v50  ;;  %v3835_v17 = vsel %vm3832_vm2, %v3725_v23, %v3818_v45  ;;  %v3828_v45 = vsel %vm3383_vm10, %v6619_v47, 0.0 }
 0x628   : > { %v3933_v8 = vsel %vm3849_vm3, %v6884_v33, %v3836_v29  ;;  %v3932_v18 = vsel %vm3849_vm3, %v6885_v34, %v3835_v17  ;;  %v3823_v33 = vsel %vm3383_vm10, %v6653_v21, 0.0 }
 0x62a   : > { %v3775_v28 = vpop.xlane.xlu1 %3774  ;;  %v3773_v39 = vpop.xlane.xlu0 %3772 }
 0x62b   : > { %v3803_v59 = vsub.f32 0.0, %v3775_v28  ;;  %v3802_v31 = vsub.f32 0.0, %v3773_v39  ;;  %v6891_v28 = vld [vmem:[#allocation16_spill] sm:$0xff] }
 0x62d   : > { %v3950_v54 = vsel %vm3946_vm4, %v3803_v59, %v3933_v8  ;;  %v3949_v42 = vsel %vm3946_vm4, %v3802_v31, %v3932_v18  ;;  %v6892_v18 = vld [vmem:[#allocation13_spill] sm:$0xff] }
 0x62e   : > { %3966 = vst [vmem:[%s6644_s19 + $0x18] sm:$0xff] %v3950_v54  ;;  %3965 = vst [vmem:[%s6644_s19 + $0x10] sm:$0xff] %v3949_v42  ;;  %v3729_v3 = vpop.xlane.xlu0 %3728 }
 0x62f   : > { %v3837_v6 = vsel %vm3832_vm2, %v3729_v3, %v3820_v43  ;;  %v3825_v43 = vsel %vm3383_vm10, %v6662_v19, 0.0 }
 0x630   : > { %v3934_v63 = vsel %vm3849_vm3, %v6886_v27, %v3837_v6 }
 0x632   : > { %v3777_v55 = vpop.xlane.xlu0 %3776 }
 0x633   : > { %v3804_v10 = vsub.f32 0.0, %v3777_v55 }
 0x635   : > { %v3951_v52 = vsel %vm3946_vm4, %v3804_v10, %v3934_v63  ;;  %v6893_v10 = vld [vmem:[#allocation10_spill] sm:$0xff] }
 0x636   : > { %3967 = vst [vmem:[%s6644_s19 + $0x20] sm:$0xff] %v3951_v52  ;;  %v3733_v12 = vpop.xlane.xlu0 %3732 }
 0x637   : > { %v3731_v36 = vpop.xlane.xlu1 %3730  ;;  %v3839_v35 = vsel %vm3832_vm2, %v3733_v12, %v3822_v30  ;;  %v3827_v12 = vsel %vm3383_vm10, %v6668_v0, 0.0 }
 0x638   : > { %v3838_v40 = vsel %vm3832_vm2, %v3731_v36, %v3821_v51  ;;  %v3936_v58 = vsel %vm3849_vm3, %v6887_v26, %v3839_v35  ;;  %v6894_v35 = vld [vmem:[#allocation11_spill] sm:$0xff] }
 0x639   : > { %v3935_v2 = vsel %vm3849_vm3, %v6888_v11, %v3838_v40 }
 0x63a   : > { %v3781_v57 = vpop.xlane.xlu0 %3780 }
 0x63b   : > { %v3806_v56 = vsub.f32 0.0, %v3781_v57  ;;  %v3779_v1 = vpop.xlane.xlu1 %3778 }
 0x63c   : > { %v3805_v5 = vsub.f32 0.0, %v3779_v1 }
 0x63d   : > { %v3953_v48 = vsel %vm3946_vm4, %v3806_v56, %v3936_v58  ;;  %v3829_v56 = vsel %vm3383_vm10, %v6674_v53, 0.0  ;;  %v3831_v53 = vsel %vm3383_vm10, %v6682_v61, 0.0 }
 0x63e   : > { %3969 = vst [vmem:[%s6644_s19 + $0x30] sm:$0xff] %v3953_v48  ;;  %v3737_v24 = vpop.xlane.xlu0 %3736  ;;  %v3952_v15 = vsel %vm3946_vm4, %v3805_v5, %v3935_v2 }
 0x63f   : > { %3968 = vst [vmem:[%s6644_s19 + $0x28] sm:$0xff] %v3952_v15  ;;  %v3841_v41 = vsel %vm3832_vm2, %v3737_v24, %v3824_v4 }
 0x640   : > { %v3938_v49 = vsel %vm3849_vm3, %v6889_v20, %v3841_v41 }
 0x642   : > { %v3785_v25 = vpop.xlane.xlu0 %3784 }
 0x643   : > { %v3808_v44 = vsub.f32 0.0, %v3785_v25  ;;  %v3830_v25 = vsel %vm3383_vm10, %v6627_v46, 0.0 }
 0x645   : > { %v3955_v38 = vsel %vm3946_vm4, %v3808_v44, %v3938_v49 }
 0x646   : > { %3971 = vst [vmem:[%s6644_s19 + $0x40] sm:$0xff] %v3955_v38  ;;  %v3741_v32 = vpop.xlane.xlu0 %3740 }
 0x647   : > { %v3843_v22 = vsel %vm3832_vm2, %v3741_v32, %v3826_v9 }
 0x648   : > { %v3940_v7 = vsel %vm3849_vm3, %v6890_v62, %v3843_v22 }
 0x64a   : > { %v3789_v16 = vpop.xlane.xlu0 %3788 }
 0x64b   : > { %v3810_v14 = vsub.f32 0.0, %v3789_v16 }
 0x64d   : > { %v3957_v23 = vsel %vm3946_vm4, %v3810_v14, %v3940_v7 }
 0x64e   : > { %3973 = vst [vmem:[%s6644_s19 + $0x50] sm:$0xff] %v3957_v23  ;;  %v3745_v50 = vpop.xlane.xlu0 %3744 }
 0x64f   : > { %v3845_v37 = vsel %vm3832_vm2, %v3745_v50, %v3828_v45 }
 0x650   : > { %v3942_v39 = vsel %vm3849_vm3, %v6891_v28, %v3845_v37 }
 0x652   : > { %v3793_v29 = vpop.xlane.xlu0 %3792 }
 0x653   : > { %v3812_v17 = vsub.f32 0.0, %v3793_v29 }
 0x655   : > { %v3959_v59 = vsel %vm3946_vm4, %v3812_v17, %v3942_v39 }
 0x656   : > { %3975 = vst [vmem:[%s6644_s19 + $0x60] sm:$0xff] %v3959_v59  ;;  %v3749_v26 = vpop.xlane.xlu0 %3748 }
 0x657   : > { %v3847_v20 = vsel %vm3832_vm2, %v3749_v26, %v3830_v25 }
 0x65a   : > { %v3797_v2 = vpop.xlane.xlu0 %3796 }
 0x65b   : > { %v3814_v61 = vsub.f32 0.0, %v3797_v2 }
 0x662   : > { %v3928_v4 = vpop.permute.xlu0 %3927 }
 0x670   : > { %v3735_v31 = vpop.xlane.xlu1 %3734 }
 0x671   : > { %v3840_v47 = vsel %vm3832_vm2, %v3735_v31, %v3823_v33 }
 0x672   : > { %v3937_v54 = vsel %vm3849_vm3, %v6892_v18, %v3840_v47 }
 0x674   : > { %v3783_v8 = vpop.xlane.xlu1 %3782 }
 0x675   : > { %v3807_v34 = vsub.f32 0.0, %v3783_v8 }
 0x677   : > { %v3954_v42 = vsel %vm3946_vm4, %v3807_v34, %v3937_v54 }
 0x678   : > { %3970 = vst [vmem:[%s6644_s19 + $0x38] sm:$0xff] %v3954_v42  ;;  %v3739_v3 = vpop.xlane.xlu1 %3738 }
 0x679   : > { %v3842_v21 = vsel %vm3832_vm2, %v3739_v3, %v3825_v43 }
 0x67a   : > { %v3939_v27 = vsel %vm3849_vm3, %v6893_v10, %v3842_v21 }
 0x67c   : > { %v3787_v6 = vpop.xlane.xlu1 %3786 }
 0x67d   : > { %v3809_v55 = vsub.f32 0.0, %v3787_v6 }
 0x67f   : > { %v3956_v63 = vsel %vm3946_vm4, %v3809_v55, %v3939_v27 }
 0x680   : > { %3972 = vst [vmem:[%s6644_s19 + $0x48] sm:$0xff] %v3956_v63  ;;  %v3743_v52 = vpop.xlane.xlu1 %3742 }
 0x681   : > { %v3844_v19 = vsel %vm3832_vm2, %v3743_v52, %v3827_v12 }
 0x682   : > { %v3941_v51 = vsel %vm3849_vm3, %v6894_v35, %v3844_v19 }
 0x684   : > { %v3791_v30 = vpop.xlane.xlu1 %3790 }
 0x685   : > { %v3811_v36 = vsub.f32 0.0, %v3791_v30 }
 0x687   : > { %v3958_v57 = vsel %vm3946_vm4, %v3811_v36, %v3941_v51 }
 0x688   : > { %3974 = vst [vmem:[%s6644_s19 + $0x58] sm:$0xff] %v3958_v57  ;;  %v3747_v40 = vpop.xlane.xlu1 %3746 }
 0x689   : > { %v3846_v0 = vsel %vm3832_vm2, %v3747_v40, %v3829_v56 }
 0x68a   : > { %v3943_v48 = vsel %vm3849_vm3, %v6630_v13, %v3846_v0 }
 0x68c   : > { %v3795_v58 = vpop.xlane.xlu1 %3794 }
 0x68d   : > { %v3813_v1 = vsub.f32 0.0, %v3795_v58 }
 0x68f   : > { %v3960_v5 = vsel %vm3946_vm4, %v3813_v1, %v3943_v48 }
 0x690   : > { %3976 = vst [vmem:[%s6644_s19 + $0x68] sm:$0xff] %v3960_v5  ;;  %v3751_v11 = vpop.xlane.xlu1 %3750 }
 0x691   : > { %v3848_v24 = vsel %vm3832_vm2, %v3751_v11, %v3831_v53 }
 0x692   : > { %v3945_v13 = vsel %vm3849_vm3, %v3928_v4, %v3848_v24 }
 0x694   : > { %v3799_v15 = vpop.xlane.xlu1 %3798 }
 0x695   : > { %v3815_v41 = vsub.f32 0.0, %v3799_v15 }
 0x697   : > { %v3962_v44 = vsel %vm3946_vm4, %v3815_v41, %v3945_v13 }
 0x698   : > { %3978 = vst [vmem:[%s6644_s19 + $0x78] sm:$0xff] %v3962_v44  ;;  %v3923_v49 = vpop.permute.xlu1 %3922 }
 0x699   : > { %v3944_v38 = vsel %vm3849_vm3, %v3923_v49, %v3847_v20 }
 0x69a   : > { %v3961_v32 = vsel %vm3946_vm4, %v3814_v61, %v3944_v38 }
 0x69b   : > { %3977 = vst [vmem:[%s6644_s19 + $0x70] sm:$0xff] %v3961_v32 }
 0x69c PF: > { %s21_s13 = sadd.s32 1, %s5024_s13  }
 0x69d   : > { %p18_p1 = scmp.ge.s32.totalorder %s21_s13, 6  }
 0x69f   :  { %20 = sbr.rel (!%p18_p1) target bundleno = 1 (0x1), region = 98 }
 0x6a4   :  { %4001 = vsyncpa [#allocation3], 1 }
 0x6a5   :  { %4003 = vsyncpa [#allocation3 + $0x1], 1 }

</bundles_post_ra>
